<compile_context>
chip_gen: v5e
topology: v5e:2x2
jax: 0.10.0
libtpu: 0.0.40
codegen_flags: <defaults>
</compile_context>

<pallas_src>
import jax
import jax.numpy as jnp
from jax.experimental import pallas as pl
from jax.experimental.pallas import tpu as pltpu

HID = 50   # logical hidden width of the PyTorch model
HP = 64    # padded hidden width (sublane-aligned)

_MXU_PRECISION = jax.lax.Precision.HIGHEST   # exact f32 on the MXU


def mu_kernel(v_ref, w23_ref, wcol_ref, o_ref):
    # v_ref:    (1, tm)      batch tile, batch on the lane axis (lane-dense I/O)
    # w23_ref:  (2, HP, HP)  layers 2 and 3 as (fan_out, fan_in), zero-padded
    # wcol_ref: (HP, 8)      columns: [w1 | b1 | b2 | b3 | w4 | b4 | 0 | 0]
    v = v_ref[...]                               # (1, tm)

    w1 = wcol_ref[:, 0:1]                        # (HP, 1)
    b1 = wcol_ref[:, 1:2]
    b2 = wcol_ref[:, 2:3]
    b3 = wcol_ref[:, 3:4]
    w4 = wcol_ref[:, 4:5]                        # (HP, 1) layer-4 weight column
    b4 = wcol_ref[0:1, 5:6]                      # (1, 1)

    # Layer 1 (1 -> 50): K=1 outer product == broadcast mul-add on the VPU.
    h = jnp.maximum(w1 * v + b1, 0.0)            # (HP, tm)

    # Layers 2, 3 (50 -> 50): MXU matmuls, f32 accumulation, pinned precision.
    # The small (HP, HP) weight is the LHS -> stationary operand on the MXU.
    h = jnp.dot(w23_ref[0], h, preferred_element_type=jnp.float32,
                precision=_MXU_PRECISION)
    h = jnp.maximum(h + b2, 0.0)
    h = jnp.dot(w23_ref[1], h, preferred_element_type=jnp.float32,
                precision=_MXU_PRECISION)
    h = jnp.maximum(h + b3, 0.0)

    # Layer 4 (50 -> 1): VPU multiply + XLU sublane reduction instead of an
    # M=1 matmul — keeps the MXU free for the two real layers.
    out = jnp.sum(h * w4, axis=0, keepdims=True) + b4   # (1, tm)
    o_ref[...] = out.astype(o_ref.dtype)                 # lane-dense store


def _round_up(x, m):
    return -(-x // m) * m


def choose_tile(n, *, tm_cap=4096):
    """Pick (tm, n_steps): 128-aligned tile, <= tm_cap, with >= 2 grid steps
    whenever the (padded) batch allows it so v7x's second TensorCore gets work,
    while never padding a tiny batch by more than one 128-lane chunk."""
    n128 = max(128, _round_up(n, 128))
    n_steps = max(1, -(-n128 // tm_cap))
    if n_steps == 1 and n128 >= 1024:
        n_steps = 2
    tm = _round_up(-(-n128 // n_steps), 128)
    return tm, n_steps


def mu_forward(v, packed, *, tm=None, tm_cap=4096):
    """v: (N, 1) float32. packed: dict from pack_params. Returns (N, 1)."""
    N = v.shape[0]
    w23, wcol = packed["w23"], packed["wcol"]

    if tm is None:
        tm, n_steps = choose_tile(N, tm_cap=tm_cap)
    else:
        assert tm % 128 == 0, "tile must be a multiple of the lane width"
        n_steps = max(1, -(-N // tm))
    Np = tm * n_steps

    # Flip batch onto the lane axis and pad; zero padding is harmless (it only
    # produces extra outputs that are sliced away).
    v_t = v.reshape(1, N)
    if Np != N:
        v_t = jnp.pad(v_t, ((0, 0), (0, Np - N)))

    n_param_bytes = 4 * (w23.size + wcol.size)
    out_t = pl.pallas_call(
        mu_kernel,
        out_shape=jax.ShapeDtypeStruct((1, Np), v.dtype),
        grid_spec=pltpu.PrefetchScalarGridSpec(
            num_scalar_prefetch=0,
            grid=(n_steps,),
            in_specs=[
                pl.BlockSpec((1, tm), lambda i: (0, i)),          # v tile
                pl.BlockSpec((2, HP, HP), lambda i: (0, 0, 0)),   # w2, w3
                pl.BlockSpec((HP, 8), lambda i: (0, 0)),          # w1/b1..b3/w4/b4
            ],
            out_specs=pl.BlockSpec((1, tm), lambda i: (0, i)),
        ),
        compiler_params=pltpu.CompilerParams(
            dimension_semantics=("parallel",)),
        cost_estimate=pl.CostEstimate(
            flops=2 * Np * (HP + HP * HP + HP * HP + HP),
            transcendentals=0,
            bytes_accessed=8 * Np + n_param_bytes),
    )(v_t, w23, wcol)

    return out_t[:, :N].reshape(N, 1)


def init_params(key):
    """Deterministic init mirroring nn.Linear default: U(-1/sqrt(fan_in), +)."""
    dims = [(1, HID), (HID, HID), (HID, HID), (HID, 1)]
    params = {}
    keys = jax.random.split(key, 2 * len(dims))
    for idx, (fan_in, fan_out) in enumerate(dims):
        bound = 1.0 / jnp.sqrt(float(fan_in))
        w = jax.random.uniform(keys[2 * idx], (fan_in, fan_out),
                               minval=-bound, maxval=bound, dtype=jnp.float32)
        b = jax.random.uniform(keys[2 * idx + 1], (1, fan_out),
                               minval=-bound, maxval=bound, dtype=jnp.float32)
        params[f"w{idx + 1}"] = w
        params[f"b{idx + 1}"] = b
    return params


def pack_params(p, hp=HP):
    """Transpose to (fan_out, fan_in), zero-pad 50->hp, pack into 2 slabs."""
    def padto(a, shape):
        return jnp.pad(a, [(0, s - d) for d, s in zip(a.shape, shape)])

    wcol = jnp.concatenate([
        padto(p["w1"].T, (hp, 1)),          # layer-1 weight column
        padto(p["b1"].T, (hp, 1)),
        padto(p["b2"].T, (hp, 1)),
        padto(p["b3"].T, (hp, 1)),
        padto(p["w4"],   (hp, 1)),          # layer-4 weight as a hidden-dim column
        padto(p["b4"].T, (hp, 1)),          # b4 lives at row 0
        jnp.zeros((hp, 2), jnp.float32),    # pad to 8 lanes
    ], axis=1)                               # (hp, 8)

    w2t = padto(p["w2"].T, (hp, hp))
    w3t = padto(p["w3"].T, (hp, hp))
    w23 = jnp.stack([w2t, w3t], axis=0)      # (2, hp, hp)
    return {"w23": w23, "wcol": wcol}


def mu_ref(v, p):
    """Pure-JAX reference of the PyTorch forward (same pinned precision)."""
    P = _MXU_PRECISION
    h = jnp.maximum(jnp.dot(v, p["w1"], precision=P) + p["b1"], 0.0)
    h = jnp.maximum(jnp.dot(h, p["w2"], precision=P) + p["b2"], 0.0)
    h = jnp.maximum(jnp.dot(h, p["w3"], precision=P) + p["b3"], 0.0)
    return jnp.dot(h, p["w4"], precision=P) + p["b4"]


if __name__ == "__main__":
    key = jax.random.PRNGKey(0)
    k_param, k_v = jax.random.split(key)
    params = init_params(k_param)
    packed = pack_params(params)

    N = 1000  # pads to 1024 -> adaptive tile tm=512, grid of 2 "parallel" steps
    v = jax.random.normal(k_v, (N, 1), dtype=jnp.float32)

    out = mu_forward(v, packed)
    out = jax.block_until_ready(out)

    ref = mu_ref(v, params)
    assert out.shape == (N, 1)
    assert jnp.allclose(out, ref, atol=2e-5, rtol=2e-5), "mismatch vs reference"

    print("KERNEL_OK")
</pallas_src>

<mosaic_0001>
module attributes {stable_mosaic.version = 11 : i64} {
  func.func @mu_kernel(%arg0: i32, %arg1: memref<1x512xf32, #tpu.memory_space<vmem>>, %arg2: memref<2x64x64xf32, #tpu.memory_space<vmem>>, %arg3: memref<64x8xf32, #tpu.memory_space<vmem>>, %arg4: memref<1x512xf32, #tpu.memory_space<vmem>>) attributes {dimension_semantics = [#tpu.dimension_semantics<parallel>], iteration_bounds = array<i64: 2>, scalar_prefetch = 0 : i64, scratch_operands = 0 : i64, tpu.core_type = #tpu.core_type<tc>, window_params = [{transform_indices = @transform_0, window_bounds = array<i64: 1, 512>}, {pipeline_mode = #tpu.pipeline_mode<synchronous>, transform_indices = @transform_1, window_bounds = array<i64: 2, 64, 64>}, {pipeline_mode = #tpu.pipeline_mode<synchronous>, transform_indices = @transform_2, window_bounds = array<i64: 64, 8>}, {transform_indices = @transform_3, window_bounds = array<i64: 1, 512>}]} {
    %c0 = arith.constant 0 : index
    %c0_0 = arith.constant 0 : index
    %0 = vector.load %arg1[%c0, %c0_0] : memref<1x512xf32, #tpu.memory_space<vmem>>, vector<1x512xf32>
    %c0_1 = arith.constant 0 : index
    %c0_2 = arith.constant 0 : index
    %1 = vector.load %arg3[%c0_1, %c0_2] : memref<64x8xf32, #tpu.memory_space<vmem>>, vector<64x1xf32>
    %c0_3 = arith.constant 0 : index
    %c1 = arith.constant 1 : index
    %2 = vector.load %arg3[%c0_3, %c1] : memref<64x8xf32, #tpu.memory_space<vmem>>, vector<64x1xf32>
    %c0_4 = arith.constant 0 : index
    %c2 = arith.constant 2 : index
    %3 = vector.load %arg3[%c0_4, %c2] : memref<64x8xf32, #tpu.memory_space<vmem>>, vector<64x1xf32>
    %c0_5 = arith.constant 0 : index
    %c3 = arith.constant 3 : index
    %4 = vector.load %arg3[%c0_5, %c3] : memref<64x8xf32, #tpu.memory_space<vmem>>, vector<64x1xf32>
    %c0_6 = arith.constant 0 : index
    %c4 = arith.constant 4 : index
    %5 = vector.load %arg3[%c0_6, %c4] : memref<64x8xf32, #tpu.memory_space<vmem>>, vector<64x1xf32>
    %c0_7 = arith.constant 0 : index
    %c5 = arith.constant 5 : index
    %6 = vector.load %arg3[%c0_7, %c5] : memref<64x8xf32, #tpu.memory_space<vmem>>, vector<1x1xf32>
    %7 = vector.broadcast %1 : vector<64x1xf32> to vector<64x512xf32>
    %8 = vector.broadcast %0 : vector<1x512xf32> to vector<64x512xf32>
    %9 = arith.mulf %7, %8 : vector<64x512xf32>
    %10 = vector.broadcast %2 : vector<64x1xf32> to vector<64x512xf32>
    %11 = arith.addf %9, %10 : vector<64x512xf32>
    %cst = arith.constant 0.000000e+00 : f32
    %12 = vector.broadcast %cst : f32 to vector<64x512xf32>
    %13 = arith.maximumf %11, %12 : vector<64x512xf32>
    %c0_8 = arith.constant 0 : index
    %c0_9 = arith.constant 0 : index
    %c0_10 = arith.constant 0 : index
    %14 = vector.load %arg2[%c0_8, %c0_9, %c0_10] : memref<2x64x64xf32, #tpu.memory_space<vmem>>, vector<1x64x64xf32>
    %15 = vector.shape_cast %14 : vector<1x64x64xf32> to vector<64x64xf32>
    %cst_11 = arith.constant dense<0.000000e+00> : vector<64x512xf32>
    %16 = tpu.matmul %15, %13, %cst_11 {dimension_numbers = #tpu.dot_dimension_numbers<[1], [0], [0], [1], [0, 0, 1, 1], [], []>, precision = #tpu.contract_precision<fp32>} : vector<64x64xf32>, vector<64x512xf32>, vector<64x512xf32> -> vector<64x512xf32>
    %17 = vector.broadcast %3 : vector<64x1xf32> to vector<64x512xf32>
    %18 = arith.addf %16, %17 : vector<64x512xf32>
    %cst_12 = arith.constant 0.000000e+00 : f32
    %19 = vector.broadcast %cst_12 : f32 to vector<64x512xf32>
    %20 = arith.maximumf %18, %19 : vector<64x512xf32>
    %c1_13 = arith.constant 1 : index
    %c0_14 = arith.constant 0 : index
    %c0_15 = arith.constant 0 : index
    %21 = vector.load %arg2[%c1_13, %c0_14, %c0_15] : memref<2x64x64xf32, #tpu.memory_space<vmem>>, vector<1x64x64xf32>
    %22 = vector.shape_cast %21 : vector<1x64x64xf32> to vector<64x64xf32>
    %cst_16 = arith.constant dense<0.000000e+00> : vector<64x512xf32>
    %23 = tpu.matmul %22, %20, %cst_16 {dimension_numbers = #tpu.dot_dimension_numbers<[1], [0], [0], [1], [0, 0, 1, 1], [], []>, precision = #tpu.contract_precision<fp32>} : vector<64x64xf32>, vector<64x512xf32>, vector<64x512xf32> -> vector<64x512xf32>
    %24 = vector.broadcast %4 : vector<64x1xf32> to vector<64x512xf32>
    %25 = arith.addf %23, %24 : vector<64x512xf32>
    %cst_17 = arith.constant 0.000000e+00 : f32
    %26 = vector.broadcast %cst_17 : f32 to vector<64x512xf32>
    %27 = arith.maximumf %25, %26 : vector<64x512xf32>
    %28 = vector.broadcast %5 : vector<64x1xf32> to vector<64x512xf32>
    %29 = arith.mulf %27, %28 : vector<64x512xf32>
    %cst_18 = arith.constant dense<0.000000e+00> : vector<512xf32>
    %30 = vector.multi_reduction <add>, %29, %cst_18 [0] : vector<64x512xf32> to vector<512xf32>
    %31 = vector.shape_cast %30 : vector<512xf32> to vector<1x512xf32>
    %32 = vector.broadcast %6 : vector<1x1xf32> to vector<1x512xf32>
    %33 = arith.addf %31, %32 : vector<1x512xf32>
    %c0_19 = arith.constant 0 : index
    %c0_20 = arith.constant 0 : index
    %34 = vector.load %arg4[%c0_19, %c0_20] : memref<1x512xf32, #tpu.memory_space<vmem>>, vector<1x512xf32>
    tpu.vector_store %arg4[%c0_19, %c0_20], %33 {strides = array<i32>} : memref<1x512xf32, #tpu.memory_space<vmem>>, vector<1x512xf32>,
    return
  }
  func.func @transform_0(%arg0: i32) -> (i32, i32) {
    %c0_i32 = arith.constant 0 : i32
    %c0_i32_0 = arith.constant 0 : i32
    return %c0_i32, %arg0 : i32, i32
  }
  func.func @transform_1(%arg0: i32) -> (i32, i32, i32) {
    %c0_i32 = arith.constant 0 : i32
    %c0_i32_0 = arith.constant 0 : i32
    %c0_i32_1 = arith.constant 0 : i32
    %c0_i32_2 = arith.constant 0 : i32
    return %c0_i32, %c0_i32_0, %c0_i32_1 : i32, i32, i32
  }
  func.func @transform_2(%arg0: i32) -> (i32, i32) {
    %c0_i32 = arith.constant 0 : i32
    %c0_i32_0 = arith.constant 0 : i32
    %c0_i32_1 = arith.constant 0 : i32
    return %c0_i32, %c0_i32_0 : i32, i32
  }
  func.func @transform_3(%arg0: i32) -> (i32, i32) {
    %c0_i32 = arith.constant 0 : i32
    %c0_i32_0 = arith.constant 0 : i32
    return %c0_i32, %arg0 : i32, i32
  }
}

</mosaic_0001>

<bundles_post_ra>
// kernel: tpu_custom_call.1
= control target key start
LH: loop header
LB: loop body
LE: loop exit
PB: predicated region body
PF: predicated region fallthrough
CT: control target
= control target key end

     0   :  { %8 = vsyncpa [#allocation3], 0  ;;  %s7167_s0 = inlined_call_operand.vmem [shape: f32[1,1024], index: 0, kind: input, shape index: {}]   ;;  %s7168_s1 = inlined_call_operand.hbm [shape: f32[2,64,64], index: 1, kind: input, shape index: {}]   ;;  %s7169_s2 = inlined_call_operand.vmem [shape: f32[64,8], index: 2, kind: input, shape index: {}]   ;;  %s7170_s3 = inlined_call_operand.hbm [shape: f32[1,1024], index: 3, kind: output, shape index: {}]  }
   0x1   :  { %9 = vsyncpa [#allocation4], 0 }
   0x2   :  { %11 = vsyncpa [#allocation4 + $0x1], 0  ;;  %s4653_s12 = smov 0   ;;  %s4655_s13 = smov 0  }
   0x3   :  { %s4657_s14 = smov 0   ;;  %s4659_s15 = smov 0  }
   0x4 LB: > { %s4674_s16 = sadd.s32 4294967295, %s4622_s15   ;;  %s4427_s17 = sadd.s32 4294967294, %s4622_s15   ;;  %s4622_s15 = sphi %s4659_s15, %s7652_s15   ;;  %s4618_s14 = sphi %s4657_s14, %s7651_s14   ;;  %s4614_s13 = sphi %s4655_s13, %s7650_s13   ;;  %s4610_s12 = sphi %s4653_s12, %s7649_s12  }
   0x5   : > { %s4678_s18 = sadd.s32 1, %s4622_s15   ;;  %s92_s19 = sadd.s32 1, %s4618_s14 }
   0x6   : > { %s89_s20 = ssub.s32 %s4622_s15, %s4678_s18  ;;  %p102_p0 = scmp.ne.s32.totalorder %s4618_s14, %s4614_s13 }
   0x7   : > { %p90_p1 = scmp.eq.s32.totalorder %s89_s20, 0  ;;  %p103_p2 = scmp.eq.s32.totalorder %s4674_s16, 1 }
   0x8   : > { %p108_p3 = scmp.ne.s32.totalorder %s4614_s13, %s4610_s12  ;;  %p109_p4 = scmp.eq.s32.totalorder %s4427_s17, 1 }
   0x9   : > { %s4689_s21 = scalar_select %p90_p1, %s4618_s14, %s92_s19  }
   0xa   : > { %p4691_p5 = por %p103_p2, %p102_p0  ;;  %p4695_p6 = por %p109_p4, %p108_p3 }
   0xb   : > { %p4428_p7 = scmp.ge.s32.totalorder %s4622_s15, 1  ;;  %p116_p8 = scmp.lt.s32.totalorder %s4622_s15, 3 }
   0xc   : > { %p4453_p9 = scmp.eq.s32.totalorder %s4674_s16, 0  ;;  %s127_s26 = sshll.u32 %s7168_s1, 4  ;;  %s128_s26 = int_to_ptr.hbm [resolvable:$true] %s127_s26 }
   0xd   : > { %p117_p10 = pnand %p4428_p7, %p116_p8  ;;  %s4624_s27 = smov [#allocation2]  }
   0xe   : > { %s129_s28 = sshll.u32 %s4624_s27, 4  ;;  %s4625_s29 = smov 128   ;;  %s130_s28 = int_to_ptr.vmem [resolvable:$true] %s129_s28 }
   0xf   : > { %p4445_p11 = pneg %p117_p10  ;;  %s4626_s30 = smov 8  }
  0x10   : > { %156 = sbr.rel (%p117_p10) target bundleno = 1142 (0x476), region = 32 }
  0x11   : > { %p4446_p12 = pnand %p4453_p9, %p4445_p11 }
  0x13   : > { %4448 = dma.hbm_to_vmem [thread:$0]  (!%p4446_p12), %s128_s26, 2048, %s130_s28, [#allocation3], %s4625_s29, %s4625_s29, %s4626_s30  }
  0x15   : > { %4601 = dma.done.wait (%p4453_p9), [#allocation3], 2048  }
  0x16   : > { %4603 = vsyncadd (%p4453_p9), [#allocation3], 4294965248  ;;  %v4627_v0 = vmov 1   ;;  %v4628_v1 = vmov 0   ;;  %v4714_v2 = vld [vmem:[%s7169_s2 + $0x38] sm:$0xff]  ;;  %v4721_v3 = vld [vmem:[%s7169_s2 + $0x30] sm:$0xff] }
  0x17   : > { %4498 = vset.pattern.permute.xlu1 %v4627_v0  ;;  %4497 = vset.pattern.permute.xlu0 %v4628_v1  ;;  %v4727_v4 = vld [vmem:[%s7169_s2 + $0x28] sm:$0xff]  ;;  %v4732_v5 = vld [vmem:[%s7169_s2 + $0x20] sm:$0xff]  ;;  %v4740_v6 = vld [vmem:[%s7169_s2 + $0x18] sm:$0xff]  ;;  %s4768_s29 = sshll.u32 %s4674_s16, 2  ;;  %vm413_vm0 = vcmask 523264   ;;  %vm4331_vm1 = vcmask 1040384  }
  0x18   : > { %4500 = vset.pattern.permute.xlu2 %v4627_v0  ;;  %306 = vperm.xlu1 %4498, %v4714_v2   ;;  %v4748_v7 = vld [vmem:[%s7169_s2 + $0x10] sm:$0xff]  ;;  %v4753_v8 = vld [vmem:[%s7169_s2 + $0x8] sm:$0xff]  ;;  %v4761_v9 = vld [vmem:[%s7169_s2] sm:$0xff]  ;;  %p181_p13 = scmp.lt.s32.totalorder %s4768_s29, 7  ;;  %s177_s16 = sand.u32 1, %s4614_s13   ;;  %vm4333_vm2 = vcmask 1042434  }
  0x19   : > { %233 = vperm.xlu0 %4497, %v4714_v2   ;;  %302 = vperm.xlu2 %4500, %v4721_v3   ;;  %s4433_s7 = sshll.u32 %s177_s16, 2  ;;  %s4354_s10 = scalar_lea.hbm %s7170_s3, %s4768_s29  ;;  %vm4335_vm3 = vcmask 1041408  }
  0x1a   : > { %s182_s30 = scalar_select %p181_p13, %s4768_s29, 7 }
  0x1b   : > { %s179_s11 = scalar_lea.vmem [#allocation5], %s4433_s7  ;;  %s4358_s19 = sshll.u32 %s4354_s10, 4  ;;  %s4359_s19 = int_to_ptr.hbm [resolvable:$true] %s4358_s19 }
  0x1c   : > { %s183_s6 = scalar_lea.vmem %s7167_s0, %s182_s30  ;;  %s4356_s17 = sshll.u32 %s179_s11, 4  ;;  %s4357_s17 = int_to_ptr.vmem [resolvable:$true] %s4356_s17 }
  0x1d   : > { %v186_v11 = vld [vmem:[%s183_s6] sm:$0xf]  ;;  %s4344_s20 = scalar_lea.sflag [#allocation4], %s177_s16  ;;  %s4570_s29 = sshra.s32 %s4359_s19, 4  ;;  %s4571_s29 = int_to_ptr.hbm [resolvable:$true] %s4570_s29 }
  0x1e   : > { %v4777_v12 = vperm.slane %v186_v11, 2  ;;  %v4779_v13 = vperm.slane %v186_v11, 3  ;;  %v4795_v20 = vperm.slane %v186_v11, 0  ;;  %v4846_v52 = vperm.slane %v186_v11, 1  ;;  %s4572_s24 = scalar_lea.hbm %s4571_s29, 4  ;;  %s4576_s27 = scalar_lea.hbm %s7170_s3, 8 }
  0x1f   : > { %p4573_p0 = scmp.ne.s32.totalorder %s4571_s29, %s4572_s24  ;;  %p4577_p3 = scmp.lt.s32.totalorder %s4571_s29, %s7170_s3 }
  0x20   : > { %4499 = vset.pattern.permute.xlu1 %v4628_v1  ;;  %7356 = vst [vmem:[#allocation8_spill] sm:$0xff] %v4779_v13  ;;  %p4578_p4 = scmp.lt.s32.totalorder %s4576_s27, %s4572_s24 }
  0x21   : > { %228 = vperm.xlu0 %4497, %v4721_v3   ;;  %223 = vperm.xlu1 %4499, %v4727_v4   ;;  %p4574_p1 = pnand %p4573_p0, %p4691_p5 }
  0x22   : > { %4501 = vset.pattern.permute.xlu2 %v4628_v1  ;;  %p4579_p7 = por %p4578_p4, %p4577_p3 }
  0x23   : > { %218 = vperm.xlu2 %4501, %v4732_v5   ;;  %p4575_p2 = pneg %p4574_p1 }
  0x25   : > { %p4580_p8 = pnand %p4579_p7, %p4575_p2 }
  0x29   : > { %4502 = vset.pattern.permute.xlu0 %v4627_v0  ;;  %213 = vperm.xlu1 %4499, %v4740_v6  }
  0x2a   : > { %298 = vperm.xlu0 %4502, %v4727_v4  }
  0x2b   : > { %4503 = vset.pattern.permute.xlu2 %v4627_v0 }
  0x2c   : > { %294 = vperm.xlu2 %4503, %v4732_v5  }
  0x31   : > { %208 = vperm.xlu1 %4499, %v4748_v7  }
  0x32   : > { %4504 = vset.pattern.permute.xlu0 %v4628_v1 }
  0x33   : > { %203 = vperm.xlu0 %4504, %v4753_v8  }
  0x34   : > { %290 = vperm.xlu2 %4503, %v4740_v6  }
  0x39   : > { %4505 = vset.pattern.permute.xlu1 %v4627_v0 }
  0x3a   : > { %286 = vperm.xlu1 %4505, %v4748_v7  }
  0x3c   : > { %4506 = vset.pattern.permute.xlu2 %v4628_v1 }
  0x3d   : > { %198 = vperm.xlu2 %4506, %v4761_v9  }
  0x42   : > { %282 = vperm.xlu1 %4505, %v4753_v8  }
  0x45   : > { %4507 = vset.pattern.permute.xlu2 %v4627_v0 }
  0x46   : > { %278 = vperm.xlu2 %4507, %v4761_v9  }
  0x73   : > { %v4772_v10 = vpop.permute.xlu2 %302 }
  0x7d   : > { %v4781_v14 = vpop.permute.xlu2 %218 }
  0x7e   : > { %v263_v15 = vmul.f32 %v4777_v12, %v4781_v14  ;;  %v264_v16 = vmul.f32 %v4779_v13, %v4781_v14  ;;  %v261_v30 = vmul.f32 %v4795_v20, %v4781_v14 }
  0x86   : > { %v4787_v17 = vpop.permute.xlu2 %294 }
  0x87   : > { %v4790_v18 = vadd.f32 %v4787_v17, %v263_v15  ;;  %v4793_v19 = vadd.f32 %v4787_v17, %v264_v16  ;;  %v325_v33 = vadd.f32 %v4787_v17, %v261_v30 }
  0x89   : > { %7357 = vst [vmem:[#allocation9_spill] sm:$0xff] %v4793_v19  ;;  %v357_v43 = vmax.f32 %v325_v33, 0.0 }
  0x8a   : > { %v307_v21 = vpop.permute.xlu1 %306 }
  0x8b   : > { %v234_v22 = vpop.permute.xlu0 %233  ;;  %v4850_v54 = vand.u32 4294901760, %v357_v43 }
  0x8c   : > { %v273_v23 = vmul.f32 %v4795_v20, %v234_v22  ;;  %v275_v24 = vmul.f32 %v4777_v12, %v234_v22  ;;  %v276_v25 = vmul.f32 %v4779_v13, %v234_v22  ;;  %v274_v1 = vmul.f32 %v4846_v52, %v234_v22 }
  0x8d   : > { %v4875_v15 = vsub.f32 %v357_v43, %v4850_v54 }
  0x8e   : > { %v337_v26 = vadd.f32 %v307_v21, %v273_v23  ;;  %v4800_v27 = vadd.f32 %v307_v21, %v275_v24  ;;  %v4802_v28 = vadd.f32 %v307_v21, %v276_v25  ;;  %v4804_v29 = vpop.permute.xlu2 %290 }
  0x90   : > { %7358 = vst [vmem:[#allocation10_spill] sm:$0xff] %v4802_v28  ;;  %v369_v31 = vmax.f32 %v337_v26, 0.0 }
  0x92   : > { %v4808_v32 = vand.u32 4294901760, %v369_v31 }
  0x93   : > { %v229_v34 = vpop.permute.xlu0 %228  ;;  %v4813_v37 = vpop.permute.xlu1 %223 }
  0x94   : > { %v269_v35 = vmul.f32 %v4795_v20, %v229_v34  ;;  %v271_v36 = vmul.f32 %v4777_v12, %v229_v34  ;;  %447 = vmatpush.msra.mxu0 %v4808_v32  ;;  %v272_v38 = vmul.f32 %v4779_v13, %v229_v34  ;;  %v267_v39 = vmul.f32 %v4777_v12, %v4813_v37 }
  0x95   : > { %698 = vmatpush.msra.mxu3 %v4808_v32  ;;  %v268_v42 = vmul.f32 %v4779_v13, %v4813_v37  ;;  %v4830_v45 = vsub.f32 %v369_v31, %v4808_v32  ;;  %v265_v53 = vmul.f32 %v4795_v20, %v4813_v37  ;;  %v4886_v31 = vadd.f32 %v307_v21, %v274_v1 }
  0x96   : > { %v333_v40 = vadd.f32 %v4772_v10, %v269_v35  ;;  %v4822_v41 = vadd.f32 %v4772_v10, %v271_v36  ;;  %v4827_v44 = vadd.f32 %v4772_v10, %v272_v38  ;;  %v7171_v35 = vand.u32 4294901760, %v4875_v15 }
  0x97   : > { %v4832_v47 = vpop.permute.xlu2 %198  ;;  %626 = vmatpush.msra.mxu2 %v4830_v45  ;;  %v7175_v48 = vand.u32 4294901760, %v4830_v45 }
  0x98   : > { %7359 = vst [vmem:[#allocation11_spill] sm:$0xff] %v4827_v44  ;;  %v365_v46 = vmax.f32 %v333_v40, 0.0  ;;  %v4838_v49 = vmul.f32 %v4777_v12, %v4832_v47  ;;  %v4844_v51 = vmul.f32 %v4779_v13, %v4832_v47 }
  0x99   : > { %v538_v61 = vsub.f32 %v4830_v45, %v7175_v48  ;;  %v374_v48 = vld [vmem:[#allocation2 + $0x8] sm:$0xff] }
  0x9a   : > { %v4840_v50 = vand.u32 4294901760, %v365_v46  ;;  %7360 = vst [vmem:[#allocation12_spill] sm:$0xff] %v4844_v51 }
  0x9b   : > { %v4852_v56 = vpop.permute.xlu1 %213  ;;  %v539_v25 = vand.u32 4294901760, %v538_v61  ;;  %v245_v61 = vmul.f32 %v4795_v20, %v4832_v47 }
  0x9c   : > { %v299_v55 = vpop.permute.xlu0 %298  ;;  %449 = vmatpush.msra.mxu0 %v4840_v50  ;;  %700 = vmatpush.msra.mxu3 %v4840_v50  ;;  %v4857_v57 = vsub.f32 %v365_v46, %v4840_v50  ;;  %v257_v62 = vmul.f32 %v4795_v20, %v4852_v56  ;;  %v259_v63 = vmul.f32 %v4777_v12, %v4852_v56 }
  0x9d   : > { %v329_v58 = vadd.f32 %v299_v55, %v265_v53  ;;  %v4859_v59 = vadd.f32 %v299_v55, %v267_v39  ;;  %v4861_v60 = vadd.f32 %v299_v55, %v268_v42  ;;  %v260_v0 = vmul.f32 %v4779_v13, %v4852_v56  ;;  %540 = vmatpush.msra.mxu1 %v539_v25  ;;  %v373_v42 = vld [vmem:[#allocation2] sm:$0xff] }
  0x9e   : > { %629 = vmatpush.msra.mxu2 %v4857_v57  ;;  %v321_v16 = vadd.f32 %v4804_v29, %v257_v62  ;;  %v4879_v23 = vadd.f32 %v4804_v29, %v259_v63  ;;  %v7174_v22 = vand.u32 4294901760, %v4857_v57  ;;  %v270_v39 = vmul.f32 %v4846_v52, %v229_v34 }
  0x9f   : > { %7361 = vst [vmem:[#allocation13_spill] sm:$0xff] %v4861_v60  ;;  %v361_v11 = vmax.f32 %v329_v58, 0.0  ;;  %v4882_v24 = vadd.f32 %v4804_v29, %v260_v0  ;;  %v262_v53 = vmul.f32 %v4846_v52, %v4781_v14  ;;  %v370_v58 = vmax.f32 %v4886_v31, 0.0 }
  0xa0   : > { %v353_v30 = vmax.f32 %v321_v16, 0.0  ;;  %v544_v43 = vsub.f32 %v4857_v57, %v7174_v22  ;;  %v556_v62 = vsub.f32 %v4875_v15, %v7171_v35  ;;  %v415_v1 = vsel %vm413_vm0, %v373_v42, 0  ;;  %v4933_v25 = vpop.permute.xlu2 %278 }
  0xa1   : > { %7362 = vst [vmem:[#allocation14_spill] sm:$0xff] %v4882_v24  ;;  %v4884_v26 = vand.u32 4294901760, %v361_v11  ;;  %v266_v16 = vmul.f32 %v4846_v52, %v4813_v37  ;;  %v4942_v35 = vadd.f32 %v4787_v17, %v262_v53  ;;  %v4629_v22 = vmov 2  }
  0xa2   : > { %v4897_v38 = vand.u32 4294901760, %v353_v30  ;;  %v545_v63 = vand.u32 4294901760, %v544_v43  ;;  %v4939_v43 = vand.u32 4294901760, %v370_v58  ;;  %4509 = vset.pattern.permute.xlu1 %v4629_v22  ;;  %4508 = vset.pattern.permute.xlu0 %v4629_v22  ;;  %v7374_v60 = vand.u32 4294901760, %v4830_v45 }
  0xa3   : > { %451 = vmatpush.msra.mxu0 %v4884_v26  ;;  %v4891_v33 = vsub.f32 %v361_v11, %v4884_v26  ;;  %702 = vmatpush.msra.mxu3 %v4884_v26  ;;  %v4895_v36 = vpop.permute.xlu1 %208  ;;  %v334_v11 = vadd.f32 %v4772_v10, %v270_v39  ;;  %v330_v42 = vadd.f32 %v299_v55, %v266_v16  ;;  %v4944_v10 = vand.u32 4294901760, %v415_v1 }
  0xa4   : > { %v255_v21 = vmul.f32 %v4777_v12, %v4895_v36  ;;  %v256_v40 = vmul.f32 %v4779_v13, %v4895_v36  ;;  %v4911_v34 = vsub.f32 %v353_v30, %v4897_v38  ;;  %546 = vmatpush.msra.mxu1 %v545_v63  ;;  %v253_v37 = vmul.f32 %v4795_v20, %v4895_v36 }
  0xa5   : > { %453 = vmatpush.msra.mxu0 %v4850_v54  ;;  %632 = vmatpush.msra.mxu2 %v4891_v33  ;;  %v7172_v46 = vand.u32 4294901760, %v4891_v33  ;;  %v309_v39 = vadd.f32 %v4933_v25, %v245_v61  ;;  %v557_v63 = vand.u32 4294901760, %v556_v62  ;;  %v4955_v51 = vpop.permute.xlu0 %203  ;;  %v4958_v61 = vsub.f32 %v415_v1, %v4944_v10 }
  0xa6   : > { %704 = vmatpush.msra.mxu3 %v4850_v54  ;;  %v7173_v0 = vand.u32 4294901760, %v4911_v34  ;;  %406 = vperm.xlu1 %4509, %v4721_v3   ;;  %v254_v1 = vmul.f32 %v4846_v52, %v4895_v36  ;;  %v418_v3 = vsel %vm413_vm0, %v374_v48, 0 }
  0xa7   : > { %455 = vmatpush.msra.mxu0 %v4897_v38  ;;  %635 = vmatpush.msra.mxu2 %v4875_v15  ;;  %v550_v14 = vsub.f32 %v4891_v33, %v7172_v46  ;;  %v258_v46 = vmul.f32 %v4846_v52, %v4852_v56  ;;  %7365 = vst [vmem:[#allocation17_spill] sm:$0xff] %v4958_v61  ;;  %v358_v56 = vmax.f32 %v4942_v35, 0.0  ;;  %v341_v62 = vmax.f32 %v309_v39, 0.0 }
  0xa8   : > { %706 = vmatpush.msra.mxu3 %v4897_v38  ;;  %v562_v31 = vsub.f32 %v4911_v34, %v7173_v0  ;;  %4510 = vset.pattern.permute.xlu2 %v4629_v22  ;;  %v246_v22 = vmul.f32 %v4846_v52, %v4832_v47  ;;  %v249_v35 = vmul.f32 %v4795_v20, %v4955_v51  ;;  %v4984_v36 = vand.u32 4294901760, %v4958_v61 }
  0xa9   : > { %638 = vmatpush.msra.mxu2 %v4911_v34  ;;  %v551_v30 = vand.u32 4294901760, %v550_v14  ;;  %v366_v14 = vmax.f32 %v334_v11, 0.0  ;;  %410 = vperm.xlu0 %4508, %v4714_v2   ;;  %v250_v2 = vmul.f32 %v4846_v52, %v4955_v51  ;;  %v4986_v48 = vand.u32 4294901760, %v358_v56 }
  0xaa   : > { %v563_v16 = vand.u32 4294901760, %v562_v31  ;;  %v322_v31 = vadd.f32 %v4804_v29, %v258_v46  ;;  %402 = vperm.xlu2 %4510, %v4727_v4   ;;  %7366 = vst [vmem:[#allocation18_spill] sm:$0xff] %v4984_v36  ;;  %v4993_v20 = vand.u32 4294901760, %v341_v62  ;;  %v4995_v47 = vand.u32 4294901760, %v418_v3 }
  0xab   : > { %552 = vmatpush.msra.mxu1 %v551_v30  ;;  %v362_v30 = vmax.f32 %v330_v42, 0.0 }
  0xac   : > { %v287_v0 = vpop.permute.xlu1 %286  ;;  %v354_v52 = vmax.f32 %v322_v31, 0.0  ;;  %v465_v31 = vsub.f32 %v4958_v61, %v4984_v36 }
  0xad   : > { %v317_v17 = vadd.f32 %v287_v0, %v253_v37  ;;  %v4951_v53 = vadd.f32 %v287_v0, %v255_v21  ;;  %v4953_v55 = vadd.f32 %v287_v0, %v256_v40  ;;  %558 = vmatpush.msra.mxu1 %v557_v63  ;;  %v4963_v21 = vsub.f32 %v370_v58, %v4939_v43 }
  0xae   : > { %v4966_v40 = vand.u32 4294901760, %v366_v14  ;;  %v4981_v42 = vand.u32 4294901760, %v362_v30  ;;  %v318_v29 = vadd.f32 %v287_v0, %v254_v1  ;;  %v5003_v37 = vadd.f32 %v4933_v25, %v246_v22  ;;  %398 = vperm.xlu1 %4509, %v4732_v5  }
  0xaf   : > { %7363 = vst [vmem:[#allocation15_spill] sm:$0xff] %v4951_v53  ;;  %v349_v11 = vmax.f32 %v317_v17, 0.0  ;;  %564 = vmatpush.msra.mxu1 %v563_v16  ;;  %v5017_v22 = vsub.f32 %v341_v62, %v4993_v20  ;;  %v5041_v24 = vand.u32 4294901760, %v465_v31 }
  0xb0   : > { %7364 = vst [vmem:[#allocation16_spill] sm:$0xff] %v4953_v55  ;;  %v5000_v0 = vsub.f32 %v366_v14, %v4966_v40  ;;  %v350_v16 = vmax.f32 %v318_v29, 0.0  ;;  %v5013_v14 = vsub.f32 %v362_v30, %v4981_v42  ;;  %v5026_v29 = vand.u32 4294901760, %v354_v52 }
  0xb1   : > { %v4979_v58 = vand.u32 4294901760, %v349_v11  ;;  %390 = vperm.xlu0 %4508, %v4748_v7   ;;  %7369 = vst [vmem:[#allocation20_spill] sm:$0xff] %v5041_v24 }
  0xb2   : > { %394 = vperm.xlu2 %4510, %v4740_v6   ;;  %v5039_v55 = vand.u32 4294901760, %v350_v16  ;;  %v7371_v31 = vand.u32 4294901760, %v5000_v0  ;;  %v5061_v19 = vsub.f32 %v354_v52, %v5026_v29 }
  0xb3   : > { %457 = vmatpush.msra.mxu0 %v4979_v58  ;;  %708 = vmatpush.msra.mxu3 %v4979_v58  ;;  %v4991_v4 = vsub.f32 %v349_v11, %v4979_v58 }
  0xb4   : > { %v4997_v46 = vpop.permute.xlu1 %282  ;;  %v5074_v52 = vsub.f32 %v350_v16, %v5039_v55 }
  0xb5   : > { %v313_v39 = vadd.f32 %v4997_v46, %v249_v35  ;;  %v314_v63 = vadd.f32 %v4997_v46, %v250_v2  ;;  %641 = vmatpush.msra.mxu2 %v4991_v4  ;;  %v7176_v11 = vand.u32 4294901760, %v4991_v4  ;;  %v5020_v35 = vsub.f32 %v358_v56, %v4986_v48 }
  0xb6   : > { %v5023_v2 = vsub.f32 %v418_v3, %v4995_v47  ;;  %v342_v56 = vmax.f32 %v5003_v37, 0.0  ;;  %v7368_v3 = vand.u32 4294901760, %v4963_v21  ;;  %386 = vperm.xlu1 %4509, %v4753_v8  }
  0xb7   : > { %v345_v1 = vmax.f32 %v313_v39, 0.0  ;;  %v346_v17 = vmax.f32 %v314_v63, 0.0  ;;  %v568_v30 = vsub.f32 %v4991_v4, %v7176_v11  ;;  %v375_v39 = vld [vmem:[#allocation2 + $0x10] sm:$0xff] }
  0xb8   : > { %7367 = vst [vmem:[#allocation19_spill] sm:$0xff] %v5023_v2  ;;  %v992_v7 = vsub.f32 %v4963_v21, %v7368_v3  ;;  %v5051_v5 = vand.u32 4294901760, %v5023_v2  ;;  %v421_v3 = vsel %vm413_vm0, %v375_v39, 0 }
  0xb9   : > { %v5034_v62 = vand.u32 4294901760, %v345_v1  ;;  %v569_v63 = vand.u32 4294901760, %v568_v30  ;;  %v5054_v13 = vand.u32 4294901760, %v346_v17  ;;  %v998_v30 = vsub.f32 %v5000_v0, %v7371_v31 }
  0xba   : > { %7370 = vst [vmem:[#allocation21_spill] sm:$0xff] %v5051_v5  ;;  %v7372_v31 = vand.u32 4294901760, %v5013_v14  ;;  %v5076_v37 = vand.u32 4294901760, %v421_v3  ;;  %382 = vperm.xlu2 %4510, %v4761_v9  }
  0xbb   : > { %459 = vmatpush.msra.mxu0 %v5034_v62  ;;  %710 = vmatpush.msra.mxu3 %v5034_v62  ;;  %v5047_v6 = vsub.f32 %v345_v1, %v5034_v62  ;;  %v5063_v1 = vand.u32 4294901760, %v342_v56  ;;  %v999_v16 = vand.u32 4294901760, %v998_v30  ;;  %v1021_v30 = vand.u32 4294901760, %v5074_v52 }
  0xbc   : > { %570 = vmatpush.msra.mxu1 %v569_v63  ;;  %v993_v63 = vand.u32 4294901760, %v992_v7  ;;  %v1004_v11 = vsub.f32 %v5013_v14, %v7372_v31  ;;  %7373 = vst [vmem:[#allocation22_spill] sm:$0xff] %v5076_v37  ;;  %v7375_v7 = vand.u32 4294901760, %v5017_v22  ;;  %v473_v31 = vsub.f32 %v5023_v2, %v5051_v5 }
  0xbd   : > { %461 = vmatpush.msra.mxu0 %v4993_v20  ;;  %644 = vmatpush.msra.mxu2 %v5047_v6  ;;  %v7182_v39 = vand.u32 4294901760, %v5047_v6  ;;  %v5103_v53 = vsub.f32 %v342_v56, %v5063_v1 }
  0xbe   : > { %712 = vmatpush.msra.mxu3 %v4993_v20  ;;  %467 = vmatmul.f32.vlgmr.msra.gmra.mxu0 %v5041_v24  ;;  %v580_v28 = vsub.f32 %v5017_v22, %v7375_v7  ;;  %v5095_v24 = vsub.f32 %v346_v17, %v5054_v13  ;;  %v7377_v7 = vand.u32 4294901760, %v4857_v57  ;;  %v7379_v17 = vand.u32 4294901760, %v4891_v33 }
  0xbf   : > { %716 = vmatmul.f32.vlgmr.msra.gmra.mxu3 %v4984_v36  ;;  %773 = vmatpush.msrb.mxu0 %v7374_v60  ;;  %v574_v44 = vsub.f32 %v5047_v6, %v7182_v39  ;;  %v7376_v36 = vand.u32 4294901760, %v5020_v35  ;;  %v5110_v57 = vand.u32 4294901760, %v473_v31  ;;  %v1033_v33 = vand.u32 4294901760, %v5103_v53 }
  0xc0   : > { %994 = vmatpush.msrb.mxu3 %v993_v63  ;;  %647 = vmatpush.msra.mxu2 %v5017_v22  ;;  %v1005_v63 = vand.u32 4294901760, %v1004_v11  ;;  %v581_v60 = vand.u32 4294901760, %v580_v28  ;;  %v1022_v28 = vsub.f32 %v5074_v52, %v1021_v30 }
  0xc1   : > { %v1010_v45 = vsub.f32 %v5020_v35, %v7376_v36  ;;  %650 = vmatmul.f32.vlgmr.msra.gmra.mxu2 %v4958_v61  ;;  %777 = vmatpush.msrb.mxu0 %v7377_v7  ;;  %v575_v39 = vand.u32 4294901760, %v574_v44  ;;  %v5106_v36 = vsub.f32 %v421_v3, %v5076_v37  ;;  %7380 = vst [vmem:[#allocation24_spill] sm:$0xff] %v5110_v57  ;;  %v376_v44 = vld [vmem:[#allocation2 + $0x18] sm:$0xff]  ;;  %v1027_v7 = vand.u32 4294901760, %v5095_v24 }
  0xc2   : > { %901 = vmatpush.msrb.mxu2 %v4939_v43  ;;  %1000 = vmatpush.msrb.mxu3 %v999_v16  ;;  %v7381_v16 = vand.u32 4294901760, %v5061_v19  ;;  %v7382_v3 = vand.u32 4294901760, %v4875_v15  ;;  %v424_v31 = vsel %vm413_vm0, %v376_v44, 0  ;;  %v7384_v15 = vand.u32 4294901760, %v4911_v34 }
  0xc3   : > { %7378 = vst [vmem:[#allocation23_spill] sm:$0xff] %v5106_v36  ;;  %781 = vmatpush.msrb.mxu0 %v7379_v17  ;;  %576 = vmatpush.msra.mxu1 %v575_v39  ;;  %v1011_v11 = vand.u32 4294901760, %v1010_v45  ;;  %v5125_v39 = vand.u32 4294901760, %v5106_v36  ;;  %v1023_v17 = vand.u32 4294901760, %v1022_v28  ;;  %v1034_v34 = vsub.f32 %v5103_v53, %v1033_v33 }
  0xc4   : > { %903 = vmatpush.msrb.mxu2 %v4966_v40  ;;  %1006 = vmatpush.msrb.mxu3 %v1005_v63  ;;  %v1016_v56 = vsub.f32 %v5061_v19, %v7381_v16  ;;  %v5138_v63 = vand.u32 4294901760, %v424_v31 }
  0xc5   : > { %785 = vmatpush.msrb.mxu0 %v7382_v3  ;;  %582 = vmatpush.msra.mxu1 %v581_v60  ;;  %7383 = vst [vmem:[#allocation25_spill] sm:$0xff] %v5125_v39  ;;  %v1028_v60 = vsub.f32 %v5095_v24, %v1027_v7  ;;  %v481_v44 = vsub.f32 %v5106_v36, %v5125_v39 }
  0xc6   : > { %905 = vmatpush.msrb.mxu2 %v4981_v42  ;;  %1012 = vmatpush.msrb.mxu3 %v1011_v11  ;;  %v1017_v45 = vand.u32 4294901760, %v1016_v56  ;;  %7385 = vst [vmem:[#allocation26_spill] sm:$0xff] %v5138_v63  ;;  %v7386_v11 = vand.u32 4294901760, %v4991_v4  ;;  %v7387_v56 = vand.u32 4294901760, %v5047_v6  ;;  %v5154_v3 = vsub.f32 %v424_v31, %v5138_v63 }
  0xc7   : > { %475 = vmatmul.f32.gmra.mxu0 %v5110_v57  ;;  %584 = vmatmul.f32.vlgmr.msra.gmra.mxu1 %v4944_v10  ;;  %v1029_v16 = vand.u32 4294901760, %v1028_v60  ;;  %v1035_v4 = vand.u32 4294901760, %v1034_v34  ;;  %v5157_v28 = vand.u32 4294901760, %v481_v44  ;;  %v7395_v60 = vand.u32 4294901760, %v5000_v0 }
  0xc8   : > { %722 = vmatmul.f32.gmra.mxu3 %v5051_v5  ;;  %789 = vmatpush.msrb.mxu0 %v7384_v15  ;;  %7388 = vst [vmem:[#allocation27_spill] sm:$0xff] %v5154_v3  ;;  %v7390_v15 = vand.u32 4294901760, %v5017_v22  ;;  %v7393_v22 = vand.u32 4294901760, %v4963_v21 }
  0xc9   : > { %844 = vmatpush.msrb.mxu1 %v4808_v32  ;;  %907 = vmatpush.msrb.mxu2 %v4986_v48  ;;  %v377_v32 = vld [vmem:[#allocation2 + $0x20] sm:$0xff]  ;;  %7389 = vst [vmem:[#allocation28_spill] sm:$0xff] %v5157_v28 }
  0xca   : > { %1018 = vmatpush.msrb.mxu3 %v1017_v45  ;;  %655 = vmatmul.f32.gmra.mxu2 %v5023_v2 }
  0xcb   : > { %793 = vmatpush.msrb.mxu0 %v7386_v11  ;;  %846 = vmatpush.msrb.mxu1 %v4840_v50  ;;  %v427_v50 = vsel %vm413_vm0, %v377_v32, 0  ;;  %v363_v32 = vmax.f32 %v4859_v59, 0.0  ;;  %v355_v59 = vmax.f32 %v4879_v23, 0.0 }
  0xcc   : > { %909 = vmatpush.msrb.mxu2 %v5026_v29  ;;  %1024 = vmatpush.msrb.mxu3 %v1023_v17  ;;  %v5169_v6 = vand.u32 4294901760, %v427_v50 }
  0xcd   : > { %797 = vmatpush.msrb.mxu0 %v7387_v56  ;;  %848 = vmatpush.msrb.mxu1 %v4884_v26  ;;  %v5167_v26 = vand.u32 4294901760, %v5154_v3  ;;  %v251_v56 = vmul.f32 %v4777_v12, %v4955_v51 }
  0xce   : > { %911 = vmatpush.msrb.mxu2 %v5039_v55  ;;  %1030 = vmatpush.msrb.mxu3 %v1029_v16  ;;  %7392 = vst [vmem:[#allocation30_spill] sm:$0xff] %v5169_v6  ;;  %v5183_v45 = vsub.f32 %v427_v50, %v5169_v6  ;;  %v5306_v50 = vand.u32 4294901760, %v363_v32 }
  0xcf   : > { %801 = vmatpush.msrb.mxu0 %v7390_v15  ;;  %850 = vmatpush.msrb.mxu1 %v4850_v54  ;;  %7391 = vst [vmem:[#allocation29_spill] sm:$0xff] %v5167_v26  ;;  %v378_v54 = vld [vmem:[#allocation2 + $0x28] sm:$0xff]  ;;  %v489_v31 = vsub.f32 %v5154_v3, %v5167_v26  ;;  %v315_v15 = vadd.f32 %v4997_v46, %v251_v56 }
  0xd0   : > { %913 = vmatpush.msrb.mxu2 %v5054_v13  ;;  %1036 = vmatpush.msrb.mxu3 %v1035_v4  ;;  %7394 = vst [vmem:[#allocation31_spill] sm:$0xff] %v5183_v45  ;;  %v359_v4 = vmax.f32 %v4790_v18, 0.0  ;;  %v311_v18 = vadd.f32 %v4933_v25, %v4838_v49  ;;  %v5323_v23 = vsub.f32 %v363_v32, %v5306_v50  ;;  %v7414_v49 = vld [vmem:[#allocation20_spill] sm:$0xff] }
  0xd1   : > { %1080 = vmatpush.msra.mxu0 %v4963_v21  ;;  %588 = vmatmul.f32.gmra.mxu1 %v4995_v47  ;;  %v7396_v21 = vand.u32 4294901760, %v5013_v14  ;;  %v5196_v17 = vand.u32 4294901760, %v489_v31 }
  0xd2   : > { %1298 = vmatpush.msra.mxu3 %v4939_v43  ;;  %483 = vmatmul.f32.gmra.mxu0 %v5157_v28  ;;  %v5314_v12 = vand.u32 4294901760, %v359_v4 }
  0xd3   : > { %728 = vmatmul.f32.gmra.mxu3 %v5125_v39  ;;  %852 = vmatpush.msrb.mxu1 %v4897_v38  ;;  %v430_v38 = vsel %vm413_vm0, %v378_v54, 0  ;;  %7397 = vst [vmem:[#allocation32_spill] sm:$0xff] %v5196_v17 }
  0xd4   : > { %915 = vmatpush.msrb.mxu2 %v5063_v1  ;;  %1083 = vmatpush.msra.mxu0 %v5000_v0  ;;  %v5201_v34 = vand.u32 4294901760, %v430_v38  ;;  %v379_v0 = vld [vmem:[#allocation2 + $0x30] sm:$0xff] }
  0xd5   : > { %1300 = vmatpush.msra.mxu3 %v4966_v40  ;;  %660 = vmatmul.f32.gmra.mxu2 %v5106_v36 }
  0xd6   : > { %1227 = vmatpush.msra.mxu2 %v7393_v22  ;;  %854 = vmatpush.msrb.mxu1 %v4979_v58  ;;  %v5199_v58 = vand.u32 4294901760, %v5183_v45  ;;  %7399 = vst [vmem:[#allocation34_spill] sm:$0xff] %v5201_v34  ;;  %v5215_v44 = vsub.f32 %v430_v38, %v5201_v34  ;;  %v7413_v22 = vld [vmem:[#allocation15_spill] sm:$0xff] }
  0xd7   : > { %1086 = vmatpush.msra.mxu0 %v5013_v14  ;;  %1302 = vmatpush.msra.mxu3 %v4981_v42  ;;  %v351_v31 = vmax.f32 %v7413_v22, 0.0 }
  0xd8   : > { %1231 = vmatpush.msra.mxu2 %v7395_v60  ;;  %856 = vmatpush.msrb.mxu1 %v5034_v62  ;;  %7398 = vst [vmem:[#allocation33_spill] sm:$0xff] %v5199_v58  ;;  %v7400_v62 = vand.u32 4294901760, %v5020_v35  ;;  %v497_v14 = vsub.f32 %v5183_v45, %v5199_v58  ;;  %v5230_v11 = vand.u32 4294901760, %v5215_v44  ;;  %v347_v60 = vmax.f32 %v315_v15, 0.0 }
  0xd9   : > { %1089 = vmatpush.msra.mxu0 %v5020_v35  ;;  %1304 = vmatpush.msra.mxu3 %v4986_v48  ;;  %7401 = vst [vmem:[#allocation35_spill] sm:$0xff] %v5215_v44 }
  0xda   : > { %1235 = vmatpush.msra.mxu2 %v7396_v21  ;;  %858 = vmatpush.msrb.mxu1 %v4993_v20  ;;  %v7402_v20 = vand.u32 4294901760, %v5061_v19  ;;  %v5227_v35 = vand.u32 4294901760, %v497_v14  ;;  %7404 = vst [vmem:[#allocation37_spill] sm:$0xff] %v5230_v11  ;;  %v5328_v21 = vand.u32 4294901760, %v355_v59  ;;  %v343_v14 = vmax.f32 %v311_v18, 0.0 }
  0xdb   : > { %1092 = vmatpush.msra.mxu0 %v5061_v19  ;;  %1306 = vmatpush.msra.mxu3 %v5026_v29  ;;  %v380_v19 = vld [vmem:[#allocation2 + $0x38] sm:$0xff] }
  0xdc   : > { %1152 = vmatpush.msra.mxu1 %v4939_v43  ;;  %1239 = vmatpush.msra.mxu2 %v7400_v62  ;;  %v433_v43 = vsel %vm413_vm0, %v379_v0, 0  ;;  %7403 = vst [vmem:[#allocation36_spill] sm:$0xff] %v5227_v35  ;;  %v5332_v0 = vsub.f32 %v359_v4, %v5314_v12 }
  0xdd   : > { %491 = vmatmul.f32.gmra.mxu0 %v5196_v17  ;;  %592 = vmatmul.f32.gmra.mxu1 %v5076_v37  ;;  %v5232_v8 = vand.u32 4294901760, %v433_v43 }
  0xde   : > { %734 = vmatmul.f32.gmra.mxu3 %v5167_v26  ;;  %1095 = vmatpush.msra.mxu0 %v5074_v52 }
  0xdf   : > { %1154 = vmatpush.msra.mxu1 %v4966_v40  ;;  %1243 = vmatpush.msra.mxu2 %v7402_v20  ;;  %v505_v40 = vsub.f32 %v5215_v44, %v5230_v11 }
  0xe0   : > { %1308 = vmatpush.msra.mxu3 %v5039_v55  ;;  %665 = vmatmul.f32.gmra.mxu2 %v5154_v3 }
  0xe1   : > { %1098 = vmatpush.msra.mxu0 %v5095_v24  ;;  %1156 = vmatpush.msra.mxu1 %v4981_v42  ;;  %v5247_v42 = vsub.f32 %v433_v43, %v5232_v8  ;;  %v5258_v24 = vand.u32 4294901760, %v505_v40  ;;  %v5337_v43 = vand.u32 4294901760, %v351_v31  ;;  %v5347_v40 = vsub.f32 %v355_v59, %v5328_v21 }
  0xe2   : > { %1247 = vmatpush.msra.mxu2 %v1021_v30  ;;  %1310 = vmatpush.msra.mxu3 %v5054_v13 }
  0xe3   : > { %1101 = vmatpush.msra.mxu0 %v5103_v53  ;;  %1158 = vmatpush.msra.mxu1 %v4986_v48  ;;  %7405 = vst [vmem:[#allocation38_spill] sm:$0xff] %v5247_v42  ;;  %v436_v48 = vsel %vm413_vm0, %v380_v19, 0  ;;  %v5261_v52 = vand.u32 4294901760, %v5247_v42  ;;  %v7188_v19 = vand.u32 4294901760, %v5323_v23  ;;  %v7186_v59 = vand.u32 4294901760, %v5347_v40 }
  0xe4   : > { %1251 = vmatpush.msra.mxu2 %v1027_v7  ;;  %1312 = vmatpush.msra.mxu3 %v5063_v1  ;;  %7406 = vst [vmem:[#allocation39_spill] sm:$0xff] %v5258_v24  ;;  %v371_v7 = vmax.f32 %v4800_v27, 0.0 }
  0xe5   : > { %499 = vmatmul.f32.gmra.mxu0 %v5227_v35  ;;  %1160 = vmatpush.msra.mxu1 %v5026_v29  ;;  %7407 = vst [vmem:[#allocation40_spill] sm:$0xff] %v5261_v52  ;;  %v5263_v29 = vand.u32 4294901760, %v436_v48  ;;  %v513_v53 = vsub.f32 %v5247_v42, %v5261_v52  ;;  %v1458_v56 = vsub.f32 %v5323_v23, %v7188_v19 }
  0xe6   : > { %1255 = vmatpush.msra.mxu2 %v1033_v33  ;;  %596 = vmatmul.f32.gmra.mxu1 %v5138_v63  ;;  %v367_v33 = vmax.f32 %v4822_v41, 0.0  ;;  %v5295_v16 = vand.u32 4294901760, %v371_v7 }
  0xe7   : > { %740 = vmatmul.f32.gmra.mxu3 %v5199_v58  ;;  %1162 = vmatpush.msra.mxu1 %v5039_v55  ;;  %7408 = vst [vmem:[#allocation41_spill] sm:$0xff] %v5263_v29  ;;  %v5271_v9 = vsub.f32 %v436_v48, %v5263_v29  ;;  %v5276_v55 = vand.u32 4294901760, %v513_v53  ;;  %v5349_v48 = vand.u32 4294901760, %v347_v60 }
  0xe8   : > { %670 = vmatmul.f32.gmra.mxu2 %v5183_v45  ;;  %v5301_v27 = vand.u32 4294901760, %v367_v33  ;;  %v5304_v41 = vsub.f32 %v371_v7, %v5295_v16  ;;  %v5359_v7 = vsub.f32 %v351_v31, %v5337_v43 }
  0xe9   : > { %1164 = vmatpush.msra.mxu1 %v5054_v13  ;;  %7409 = vst [vmem:[#allocation42_spill] sm:$0xff] %v5271_v9  ;;  %v5279_v13 = vand.u32 4294901760, %v5271_v9  ;;  %v5371_v4 = vsub.f32 %v347_v60, %v5349_v48  ;;  %v1459_v60 = vand.u32 4294901760, %v1458_v56 }
  0xea   : > { %7410 = vst [vmem:[#allocation43_spill] sm:$0xff] %v5276_v55  ;;  %v5312_v54 = vsub.f32 %v367_v33, %v5301_v27  ;;  %v7190_v38 = vand.u32 4294901760, %v5304_v41  ;;  %v5361_v33 = vand.u32 4294901760, %v343_v14  ;;  %v7185_v31 = vand.u32 4294901760, %v5359_v7 }
  0xeb   : > { %1166 = vmatpush.msra.mxu1 %v5063_v1  ;;  %7411 = vst [vmem:[#allocation44_spill] sm:$0xff] %v5279_v13  ;;  %v521_v1 = vsub.f32 %v5271_v9, %v5279_v13 }
  0xec   : > { %v7189_v62 = vand.u32 4294901760, %v5312_v54  ;;  %v1446_v20 = vsub.f32 %v5304_v41, %v7190_v38  ;;  %v5381_v22 = vsub.f32 %v343_v14, %v5361_v33  ;;  %v7421_v38 = vld [vmem:[#allocation14_spill] sm:$0xff] }
  0xed   : > { %507 = vmatmul.f32.gmra.mxu0 %v5258_v24  ;;  %v5287_v30 = vand.u32 4294901760, %v521_v1  ;;  %v7187_v1 = vand.u32 4294901760, %v5332_v0 }
  0xee   : > { %600 = vmatmul.f32.gmra.mxu1 %v5169_v6  ;;  %v1452_v53 = vsub.f32 %v5312_v54, %v7189_v62  ;;  %v1447_v32 = vand.u32 4294901760, %v1446_v20  ;;  %v1470_v20 = vsub.f32 %v5347_v40, %v7186_v59  ;;  %v7184_v56 = vand.u32 4294901760, %v5381_v22 }
  0xef   : > { %746 = vmatmul.f32.gmra.mxu3 %v5230_v11  ;;  %7412 = vst [vmem:[#allocation45_spill] sm:$0xff] %v5287_v30  ;;  %v1464_v18 = vsub.f32 %v5332_v0, %v7187_v1  ;;  %v7419_v1 = vld [vmem:[#allocation8_spill] sm:$0xff] }
  0xf0   : > { %675 = vmatmul.f32.gmra.mxu2 %v5215_v44  ;;  %v1453_v15 = vand.u32 4294901760, %v1452_v53  ;;  %v7183_v53 = vand.u32 4294901760, %v5371_v4  ;;  %v252_v19 = vmul.f32 %v7419_v1, %v4955_v51  ;;  %v7424_v1 = vld [vmem:[#allocation12_spill] sm:$0xff] }
  0xf1   : > { %v1465_v14 = vand.u32 4294901760, %v1464_v18 }
  0xf2   : > { %v1482_v18 = vsub.f32 %v5371_v4, %v7183_v53 }
  0xf5   : > { %515 = vmatmul.f32.gmra.mxu0 %v5276_v55 }
  0xf6   : > { %604 = vmatmul.f32.gmra.mxu1 %v5201_v34 }
  0xf7   : > { %752 = vmatmul.f32.gmra.mxu3 %v5261_v52 }
  0xf8   : > { %680 = vmatmul.f32.gmra.mxu2 %v5247_v42 }
  0xfd   : > { %523 = vmatmul.f32.gmra.mxu0 %v5287_v30 }
  0xfe   : > { %608 = vmatmul.f32.gmra.mxu1 %v5232_v8 }
  0xff   : > { %758 = vmatmul.f32.gmra.mxu3 %v5279_v13 }
 0x100   : > { %685 = vmatmul.f32.gmra.mxu2 %v5271_v9 }
 0x105   : > { %803 = vmatmul.f32.vlgmr.msrb.gmra.mxu0 %v4944_v10 }
 0x106   : > { %1355 = vmatpush.msrb.mxu0 %v5295_v16  ;;  %612 = vmatmul.f32.gmra.mxu1 %v5263_v29 }
 0x107   : > { %1038 = vmatmul.f32.vlgmr.msrb.gmra.mxu3 %v4944_v10 }
 0x108   : > { %1606 = vmatpush.msrb.mxu3 %v5295_v16  ;;  %1357 = vmatpush.msrb.mxu0 %v5301_v27 }
 0x109   : > { %921 = vmatmul.f32.vlgmr.msrb.gmra.mxu2 %v7414_v49 }
 0x10a   : > { %1534 = vmatpush.msrb.mxu2 %v5304_v41  ;;  %1608 = vmatpush.msrb.mxu3 %v5301_v27 }
 0x10b   : > { %1359 = vmatpush.msrb.mxu0 %v5306_v50 }
 0x10c   : > { %1537 = vmatpush.msrb.mxu2 %v5312_v54  ;;  %1610 = vmatpush.msrb.mxu3 %v5306_v50 }
 0x10d   : > { %1361 = vmatpush.msrb.mxu0 %v5314_v12 }
 0x10e   : > { %1540 = vmatpush.msrb.mxu2 %v5323_v23  ;;  %1612 = vmatpush.msrb.mxu3 %v5314_v12 }
 0x10f   : > { %807 = vmatmul.f32.gmra.mxu0 %v4995_v47  ;;  %860 = vmatmul.f32.vlgmr.msrb.gmra.mxu1 %v4944_v10 }
 0x110   : > { %1042 = vmatmul.f32.gmra.mxu3 %v4995_v47  ;;  %1363 = vmatpush.msrb.mxu0 %v5328_v21 }
 0x111   : > { %1448 = vmatpush.msrb.mxu1 %v1447_v32  ;;  %1543 = vmatpush.msrb.mxu2 %v5332_v0  ;;  %v1476_v32 = vsub.f32 %v5359_v7, %v7185_v31 }
 0x112   : > { %1614 = vmatpush.msrb.mxu3 %v5328_v21  ;;  %929 = vmatmul.f32.gmra.mxu2 %v5110_v57 }
 0x113   : > { %1365 = vmatpush.msrb.mxu0 %v5337_v43  ;;  %1454 = vmatpush.msrb.mxu1 %v1453_v15  ;;  %v1471_v15 = vand.u32 4294901760, %v1470_v20  ;;  %v1483_v20 = vand.u32 4294901760, %v1482_v18 }
 0x114   : > { %1546 = vmatpush.msrb.mxu2 %v5347_v40  ;;  %1616 = vmatpush.msrb.mxu3 %v5337_v43 }
 0x115   : > { %1367 = vmatpush.msrb.mxu0 %v5349_v48  ;;  %1460 = vmatpush.msrb.mxu1 %v1459_v60  ;;  %v1477_v60 = vand.u32 4294901760, %v1476_v32 }
 0x116   : > { %1549 = vmatpush.msrb.mxu2 %v5359_v7  ;;  %1618 = vmatpush.msrb.mxu3 %v5349_v48 }
 0x117   : > { %1369 = vmatpush.msrb.mxu0 %v5361_v33  ;;  %1466 = vmatpush.msrb.mxu1 %v1465_v14  ;;  %v1488_v14 = vsub.f32 %v5381_v22, %v7184_v56  ;;  %v7418_v56 = vld [vmem:[#allocation9_spill] sm:$0xff] }
 0x118   : > { %1552 = vmatpush.msrb.mxu2 %v5371_v4  ;;  %1620 = vmatpush.msrb.mxu3 %v5361_v33  ;;  %v360_v31 = vmax.f32 %v7418_v56, 0.0  ;;  %v316_v56 = vadd.f32 %v4997_v46, %v252_v19 }
 0x119   : > { %811 = vmatmul.f32.gmra.mxu0 %v5076_v37  ;;  %864 = vmatmul.f32.gmra.mxu1 %v4995_v47  ;;  %v1489_v53 = vand.u32 4294901760, %v1488_v14  ;;  %v7417_v14 = vld [vmem:[#allocation13_spill] sm:$0xff] }
 0x11a   : > { %1046 = vmatmul.f32.gmra.mxu3 %v5076_v37  ;;  %1472 = vmatpush.msrb.mxu1 %v1471_v15  ;;  %v7416_v15 = vld [vmem:[#allocation11_spill] sm:$0xff]  ;;  %v5445_v62 = vand.u32 4294901760, %v360_v31  ;;  %v348_v19 = vmax.f32 %v316_v56, 0.0 }
 0x11b   : > { %1555 = vmatpush.msrb.mxu2 %v5381_v22  ;;  %v368_v18 = vmax.f32 %v7416_v15, 0.0 }
 0x11c   : > { %937 = vmatmul.f32.gmra.mxu2 %v5157_v28  ;;  %1478 = vmatpush.msrb.mxu1 %v1477_v60  ;;  %v5463_v46 = vsub.f32 %v360_v31, %v5445_v62 }
 0x11d   : > { %v5433_v59 = vand.u32 4294901760, %v368_v18 }
 0x11e   : > { %1484 = vmatpush.msrb.mxu1 %v1483_v20  ;;  %v364_v20 = vmax.f32 %v7417_v14, 0.0 }
 0x120   : > { %1490 = vmatpush.msrb.mxu1 %v1489_v53  ;;  %v7415_v53 = vld [vmem:[#allocation10_spill] sm:$0xff]  ;;  %v5443_v14 = vand.u32 4294901760, %v364_v20 }
 0x121   : > { %815 = vmatmul.f32.gmra.mxu0 %v5138_v63  ;;  %868 = vmatmul.f32.gmra.mxu1 %v5076_v37  ;;  %v372_v32 = vmax.f32 %v7415_v53, 0.0 }
 0x122   : > { %1050 = vmatmul.f32.gmra.mxu3 %v5138_v63  ;;  %v5453_v51 = vsub.f32 %v364_v20, %v5443_v14 }
 0x123   : > { %v5426_v60 = vand.u32 4294901760, %v372_v32 }
 0x124   : > { %945 = vmatmul.f32.gmra.mxu2 %v5196_v17  ;;  %7423 = vst [vmem:[#allocation11_spill] sm:$0xff] %v5453_v51 }
 0x125   : > { %v5441_v15 = vsub.f32 %v372_v32, %v5426_v60 }
 0x127   : > { %v7205_v17 = vand.u32 4294901760, %v5441_v15 }
 0x129   : > { %819 = vmatmul.f32.gmra.mxu0 %v5169_v6  ;;  %872 = vmatmul.f32.gmra.mxu1 %v5138_v63 }
 0x12a   : > { %1054 = vmatmul.f32.gmra.mxu3 %v5169_v6 }
 0x12c   : > { %953 = vmatmul.f32.gmra.mxu2 %v5227_v35  ;;  %v5450_v35 = vsub.f32 %v368_v18, %v5433_v59  ;;  %v5483_v18 = vand.u32 4294901760, %v348_v19 }
 0x12e   : > { %7422 = vst [vmem:[#allocation10_spill] sm:$0xff] %v5450_v35 }
 0x131   : > { %823 = vmatmul.f32.gmra.mxu0 %v5201_v34  ;;  %876 = vmatmul.f32.gmra.mxu1 %v5169_v6 }
 0x132   : > { %1058 = vmatmul.f32.gmra.mxu3 %v5201_v34 }
 0x134   : > { %961 = vmatmul.f32.gmra.mxu2 %v5258_v24  ;;  %v356_v24 = vmax.f32 %v7421_v38, 0.0 }
 0x136   : > { %v5465_v38 = vand.u32 4294901760, %v356_v24 }
 0x138   : > { %v5490_v49 = vsub.f32 %v356_v24, %v5465_v38  ;;  %v5506_v24 = vsub.f32 %v348_v19, %v5483_v18 }
 0x139   : > { %827 = vmatmul.f32.gmra.mxu0 %v5232_v8  ;;  %880 = vmatmul.f32.gmra.mxu1 %v5201_v34 }
 0x13a   : > { %1062 = vmatmul.f32.gmra.mxu3 %v5232_v8 }
 0x13b   : > { %v5438_v53 = vpop.f32.mrf.mxu0 }
 0x13c   : > { %969 = vmatmul.f32.gmra.mxu2 %v5276_v55  ;;  %7420 = vst [vmem:[#allocation15_spill] sm:$0xff] %v5438_v53  ;;  %v312_v55 = vadd.f32 %v4933_v25, %v7424_v1  ;;  %v7425_v53 = vld [vmem:[#allocation16_spill] sm:$0xff]  ;;  %v1900_v1 = vsub.f32 %v5441_v15, %v7205_v17 }
 0x13d   : > { %v352_v32 = vmax.f32 %v7425_v53, 0.0 }
 0x13e   : > { %v344_v25 = vmax.f32 %v312_v55, 0.0 }
 0x13f   : > { %v5471_v53 = vand.u32 4294901760, %v352_v32 }
 0x140   : > { %v5492_v17 = vand.u32 4294901760, %v344_v25 }
 0x141   : > { %831 = vmatmul.f32.gmra.mxu0 %v5263_v29  ;;  %884 = vmatmul.f32.gmra.mxu1 %v5232_v8  ;;  %v5495_v28 = vsub.f32 %v352_v32, %v5471_v53 }
 0x142   : > { %1066 = vmatmul.f32.gmra.mxu3 %v5263_v29  ;;  %v5468_v20 = vpop.f32.mrf.mxu3 }
 0x143   : > { %7426 = vst [vmem:[#allocation13_spill] sm:$0xff] %v5468_v20  ;;  %v7430_v20 = vand.u32 4294901760, %v5450_v35  ;;  %v7211_v19 = vand.u32 4294901760, %v5495_v28 }
 0x144   : > { %977 = vmatmul.f32.gmra.mxu2 %v5287_v30  ;;  %v5477_v31 = vpop.f32.mrf.mxu2  ;;  %v5479_v57 = vpop.f32.mrf.mxu0  ;;  %v7210_v30 = vand.u32 4294901760, %v5463_v46 }
 0x145   : > { %7427 = vst [vmem:[#allocation9_spill] sm:$0xff] %v5477_v31  ;;  %v5481_v56 = vpop.f32.mrf.mxu1  ;;  %v1906_v55 = vsub.f32 %v5450_v35, %v7430_v20  ;;  %v1901_v31 = vand.u32 4294901760, %v1900_v1  ;;  %v7432_v20 = vand.u32 4294901760, %v5304_v41  ;;  %v7214_v1 = vand.u32 4294901760, %v5490_v49 }
 0x146   : > { %7428 = vst [vmem:[#allocation8_spill] sm:$0xff] %v5479_v57  ;;  %v1918_v35 = vsub.f32 %v5463_v46, %v7210_v30 }
 0x147   : > { %7429 = vst [vmem:[#allocation14_spill] sm:$0xff] %v5481_v56  ;;  %v7431_v56 = vand.u32 4294901760, %v5453_v51  ;;  %v1907_v32 = vand.u32 4294901760, %v1906_v55  ;;  %v7435_v55 = vand.u32 4294901760, %v5323_v23 }
 0x149   : > { %888 = vmatmul.f32.gmra.mxu1 %v5263_v29  ;;  %1104 = vmatmul.f32.vlgmr.msra.gmra.mxu0 %v4958_v61  ;;  %v1912_v57 = vsub.f32 %v5453_v51, %v7431_v56  ;;  %v7433_v56 = vand.u32 4294901760, %v5312_v54  ;;  %v5516_v51 = vsub.f32 %v344_v25, %v5492_v17  ;;  %v1924_v54 = vsub.f32 %v5490_v49, %v7214_v1 }
 0x14a   : > { %1314 = vmatmul.f32.vlgmr.msra.gmra.mxu3 %v4944_v10  ;;  %1681 = vmatpush.msra.mxu0 %v7432_v20  ;;  %v1919_v20 = vand.u32 4294901760, %v1918_v35  ;;  %v7213_v25 = vand.u32 4294901760, %v5506_v24  ;;  %v1930_v35 = vsub.f32 %v5495_v28, %v7211_v19 }
 0x14b   : > { %1902 = vmatpush.msra.mxu3 %v1901_v31  ;;  %v1913_v41 = vand.u32 4294901760, %v1912_v57  ;;  %v5520_v31 = vpop.f32.mrf.mxu3  ;;  %v7437_v57 = vand.u32 4294901760, %v5332_v0  ;;  %v7212_v23 = vand.u32 4294901760, %v5516_v51  ;;  %v7439_v0 = vand.u32 4294901760, %v5347_v40 }
 0x14c   : > { %1257 = vmatmul.f32.vlgmr.msra.gmra.mxu2 %v4944_v10  ;;  %1685 = vmatpush.msra.mxu0 %v7433_v56  ;;  %7434 = vst [vmem:[#allocation12_spill] sm:$0xff] %v5520_v31  ;;  %v7440_v40 = vand.u32 4294901760, %v5359_v7  ;;  %v7444_v7 = vand.u32 4294901760, %v5381_v22 }
 0x14d   : > { %1809 = vmatpush.msra.mxu2 %v5426_v60  ;;  %1908 = vmatpush.msra.mxu3 %v1907_v32  ;;  %v5529_v56 = vpop.f32.mrf.mxu2  ;;  %v1942_v19 = vsub.f32 %v5516_v51, %v7212_v23 }
 0x14e   : > { %1689 = vmatpush.msra.mxu0 %v7435_v55  ;;  %7436 = vst [vmem:[#allocation16_spill] sm:$0xff] %v5529_v56  ;;  %v5535_v30 = vpop.f32.mrf.mxu1  ;;  %v1925_v55 = vand.u32 4294901760, %v1924_v54 }
 0x14f   : > { %1811 = vmatpush.msra.mxu2 %v5433_v59  ;;  %1914 = vmatpush.msra.mxu3 %v1913_v41  ;;  %v5533_v32 = vpop.f32.mrf.mxu0  ;;  %v7438_v41 = vld [vmem:[#allocation18_spill] sm:$0xff] }
 0x150   : > { %1693 = vmatpush.msra.mxu0 %v7437_v57  ;;  %v1931_v57 = vand.u32 4294901760, %v1930_v35  ;;  %v1943_v35 = vand.u32 4294901760, %v1942_v19 }
 0x151   : > { %1813 = vmatpush.msra.mxu2 %v5443_v14  ;;  %1920 = vmatpush.msra.mxu3 %v1919_v20  ;;  %v1936_v20 = vsub.f32 %v5506_v24, %v7213_v25 }
 0x152   : > { %1109 = vmatmul.f32.gmra.mxu0 %v5023_v2  ;;  %1170 = vmatmul.f32.vlgmr.msra.gmra.mxu1 %v7438_v41 }
 0x153   : > { %1318 = vmatmul.f32.gmra.mxu3 %v4995_v47  ;;  %1697 = vmatpush.msra.mxu0 %v7439_v0  ;;  %v1937_v54 = vand.u32 4294901760, %v1936_v20  ;;  %v7442_v0 = vand.u32 4294901760, %v5371_v4 }
 0x154   : > { %1752 = vmatpush.msra.mxu1 %v5295_v16  ;;  %1815 = vmatpush.msra.mxu2 %v5445_v62 }
 0x155   : > { %1926 = vmatpush.msra.mxu3 %v1925_v55  ;;  %1261 = vmatmul.f32.gmra.mxu2 %v4995_v47 }
 0x156   : > { %1701 = vmatpush.msra.mxu0 %v7440_v40  ;;  %1754 = vmatpush.msra.mxu1 %v5301_v27  ;;  %v5560_v16 = vpop.f32.mrf.mxu3 }
 0x157   : > { %1817 = vmatpush.msra.mxu2 %v5465_v38  ;;  %1932 = vmatpush.msra.mxu3 %v1931_v57  ;;  %7441 = vst [vmem:[#allocation46_spill] sm:$0xff] %v5560_v16 }
 0x158   : > { %1705 = vmatpush.msra.mxu0 %v7442_v0  ;;  %1756 = vmatpush.msra.mxu1 %v5306_v50  ;;  %v5566_v55 = vpop.f32.mrf.mxu2  ;;  %v5619_v0 = vpop.permute.xlu1 %406 }
 0x159   : > { %1819 = vmatpush.msra.mxu2 %v5471_v53  ;;  %1938 = vmatpush.msra.mxu3 %v1937_v54  ;;  %7443 = vst [vmem:[#allocation47_spill] sm:$0xff] %v5566_v55 }
 0x15a   : > { %1709 = vmatpush.msra.mxu0 %v7444_v7  ;;  %1758 = vmatpush.msra.mxu1 %v5314_v12  ;;  %v5571_v27 = vpop.f32.mrf.mxu0  ;;  %v5573_v20 = vpop.f32.mrf.mxu1  ;;  %7447 = vst [vmem:[#allocation50_spill] sm:$0xff] %v5619_v0 }
 0x15b   : > { %1821 = vmatpush.msra.mxu2 %v5483_v18  ;;  %1944 = vmatpush.msra.mxu3 %v1943_v35 }
 0x15c   : > { %1114 = vmatmul.f32.gmra.mxu0 %v5106_v36  ;;  %1176 = vmatmul.f32.gmra.mxu1 %v5051_v5 }
 0x15d   : > { %1322 = vmatmul.f32.gmra.mxu3 %v5076_v37  ;;  %1760 = vmatpush.msra.mxu1 %v5328_v21 }
 0x15e   : > { %1823 = vmatpush.msra.mxu2 %v5492_v17 }
 0x15f   : > { %1265 = vmatmul.f32.gmra.mxu2 %v5076_v37  ;;  %1762 = vmatpush.msra.mxu1 %v5337_v43 }
 0x161   : > { %1764 = vmatpush.msra.mxu1 %v5349_v48  ;;  %v5584_v50 = vpop.f32.mrf.mxu3 }
 0x162   : > { %7445 = vst [vmem:[#allocation48_spill] sm:$0xff] %v5584_v50  ;;  %v5586_v12 = vpop.f32.mrf.mxu0 }
 0x163   : > { %1766 = vmatpush.msra.mxu1 %v5361_v33  ;;  %v5591_v4 = vpop.f32.mrf.mxu1  ;;  %v5593_v21 = vpop.f32.mrf.mxu2 }
 0x164   : > { %1119 = vmatmul.f32.gmra.mxu0 %v5154_v3  ;;  %1182 = vmatmul.f32.gmra.mxu1 %v5125_v39 }
 0x165   : > { %1326 = vmatmul.f32.gmra.mxu3 %v5138_v63 }
 0x167   : > { %1269 = vmatmul.f32.gmra.mxu2 %v5138_v63 }
 0x16a   : > { %v5597_v43 = vpop.f32.mrf.mxu0  ;;  %v5599_v48 = vpop.f32.mrf.mxu3 }
 0x16b   : > { %7446 = vst [vmem:[#allocation49_spill] sm:$0xff] %v5599_v48  ;;  %v5603_v33 = vpop.f32.mrf.mxu1  ;;  %v5605_v22 = vpop.f32.mrf.mxu2 }
 0x16c   : > { %1124 = vmatmul.f32.gmra.mxu0 %v5183_v45  ;;  %1188 = vmatmul.f32.gmra.mxu1 %v5167_v26 }
 0x16d   : > { %1330 = vmatmul.f32.gmra.mxu3 %v5169_v6 }
 0x16f   : > { %1273 = vmatmul.f32.gmra.mxu2 %v5169_v6 }
 0x172   : > { %v516_v19 = vpop.f32.mrf.mxu0  ;;  %v5609_v57 = vpop.f32.mrf.mxu3 }
 0x173   : > { %v5613_v40 = vpop.f32.mrf.mxu1  ;;  %v5615_v54 = vpop.f32.mrf.mxu2  ;;  %v517_v35 = vadd.f32 %v516_v19, %v5619_v0 }
 0x174   : > { %1129 = vmatmul.f32.gmra.mxu0 %v5215_v44  ;;  %1194 = vmatmul.f32.gmra.mxu1 %v5199_v58 }
 0x175   : > { %1334 = vmatmul.f32.gmra.mxu3 %v5201_v34 }
 0x177   : > { %1277 = vmatmul.f32.gmra.mxu2 %v5201_v34 }
 0x17a   : > { %v5622_v7 = vpop.f32.mrf.mxu0  ;;  %v753_v23 = vpop.f32.mrf.mxu3 }
 0x17b   : > { %v609_v25 = vpop.f32.mrf.mxu1  ;;  %v681_v1 = vpop.f32.mrf.mxu2 }
 0x17c   : > { %1134 = vmatmul.f32.gmra.mxu0 %v5247_v42  ;;  %1200 = vmatmul.f32.gmra.mxu1 %v5230_v11  ;;  %v610_v31 = vadd.f32 %v609_v25, %v517_v35  ;;  %v7450_v35 = vld [vmem:[#allocation10_spill] sm:$0xff] }
 0x17d   : > { %1338 = vmatmul.f32.gmra.mxu3 %v5232_v8 }
 0x17e   : > { %v682_v16 = vadd.f32 %v681_v1, %v610_v31  ;;  %v7448_v1 = vld [vmem:[#allocation20_spill] sm:$0xff] }
 0x17f   : > { %1281 = vmatmul.f32.gmra.mxu2 %v5232_v8 }
 0x180   : > { %v5628_v50 = vadd.f32 %v753_v23, %v682_v16 }
 0x182   : > { %v5630_v56 = vpop.f32.mrf.mxu0  ;;  %v5632_v19 = vpop.f32.mrf.mxu3 }
 0x183   : > { %v5636_v48 = vpop.f32.mrf.mxu1  ;;  %v5638_v55 = vpop.f32.mrf.mxu2 }
 0x184   : > { %1139 = vmatmul.f32.gmra.mxu0 %v5271_v9  ;;  %1206 = vmatmul.f32.gmra.mxu1 %v5261_v52 }
 0x185   : > { %1342 = vmatmul.f32.gmra.mxu3 %v5263_v29 }
 0x187   : > { %1285 = vmatmul.f32.gmra.mxu2 %v5263_v29  ;;  %v7451_v29 = vand.u32 4294901760, %v5441_v15 }
 0x18a   : > { %v5642_v25 = vpop.f32.mrf.mxu3 }
 0x18c   : > { %1212 = vmatmul.f32.gmra.mxu1 %v5279_v13  ;;  %1375 = vmatmul.f32.vlgmr.msrb.gmra.mxu0 %v7448_v1  ;;  %v5646_v31 = vpop.f32.mrf.mxu0  ;;  %v5648_v23 = vpop.f32.mrf.mxu1  ;;  %v7452_v1 = vld [vmem:[#allocation11_spill] sm:$0xff] }
 0x18d   : > { %7449 = vst [vmem:[#allocation51_spill] sm:$0xff] %v5648_v23  ;;  %1624 = vmatmul.f32.vlgmr.msrb.gmra.mxu3 %v7438_v41  ;;  %1988 = vmatpush.msrb.mxu0 %v5441_v15  ;;  %v5652_v16 = vpop.f32.mrf.mxu2  ;;  %v7453_v23 = vand.u32 4294901760, %v7450_v35  ;;  %v7456_v15 = vld [vmem:[#allocation24_spill] sm:$0xff] }
 0x18e   : > { %2206 = vmatpush.msrb.mxu3 %v5426_v60 }
 0x18f   : > { %1558 = vmatmul.f32.vlgmr.msrb.gmra.mxu2 %v4958_v61  ;;  %1991 = vmatpush.msrb.mxu0 %v7450_v35  ;;  %v7455_v61 = vand.u32 4294901760, %v7452_v1 }
 0x190   : > { %2135 = vmatpush.msrb.mxu2 %v7451_v29  ;;  %2208 = vmatpush.msrb.mxu3 %v5433_v59 }
 0x191   : > { %1994 = vmatpush.msrb.mxu0 %v7452_v1  ;;  %v7459_v1 = vand.u32 4294901760, %v5490_v49 }
 0x192   : > { %2139 = vmatpush.msrb.mxu2 %v7453_v23  ;;  %2210 = vmatpush.msrb.mxu3 %v5443_v14 }
 0x193   : > { %1997 = vmatpush.msrb.mxu0 %v5463_v46  ;;  %v5665_v41 = vpop.f32.mrf.mxu3 }
 0x194   : > { %7454 = vst [vmem:[#allocation10_spill] sm:$0xff] %v5665_v41  ;;  %2143 = vmatpush.msrb.mxu2 %v7455_v61  ;;  %2212 = vmatpush.msrb.mxu3 %v5445_v62  ;;  %v7458_v61 = vand.u32 4294901760, %v5463_v46 }
 0x195   : > { %1383 = vmatmul.f32.gmra.mxu0 %v7456_v15  ;;  %1492 = vmatmul.f32.vlgmr.msrb.gmra.mxu1 %v4944_v10  ;;  %v5672_v29 = vpop.f32.mrf.mxu2 }
 0x196   : > { %7457 = vst [vmem:[#allocation11_spill] sm:$0xff] %v5672_v29  ;;  %1630 = vmatmul.f32.gmra.mxu3 %v5051_v5  ;;  %2000 = vmatpush.msrb.mxu0 %v5490_v49  ;;  %v5676_v23 = vpop.f32.mrf.mxu0  ;;  %v5678_v35 = vpop.f32.mrf.mxu1  ;;  %v7462_v49 = vand.u32 4294901760, %v5506_v24 }
 0x197   : > { %2060 = vmatpush.msrb.mxu1 %v5426_v60  ;;  %2147 = vmatpush.msrb.mxu2 %v7458_v61  ;;  %v7460_v60 = vand.u32 4294901760, %v5495_v28 }
 0x198   : > { %2214 = vmatpush.msrb.mxu3 %v5465_v38  ;;  %1563 = vmatmul.f32.gmra.mxu2 %v5023_v2 }
 0x199   : > { %2003 = vmatpush.msrb.mxu0 %v5495_v28  ;;  %2062 = vmatpush.msrb.mxu1 %v5433_v59 }
 0x19a   : > { %2151 = vmatpush.msrb.mxu2 %v7459_v1  ;;  %2216 = vmatpush.msrb.mxu3 %v5471_v53 }
 0x19b   : > { %2006 = vmatpush.msrb.mxu0 %v5506_v24  ;;  %2064 = vmatpush.msrb.mxu1 %v5443_v14  ;;  %v7463_v14 = vld [vmem:[#allocation28_spill] sm:$0xff] }
 0x19c   : > { %2155 = vmatpush.msrb.mxu2 %v7460_v60  ;;  %2218 = vmatpush.msrb.mxu3 %v5483_v18 }
 0x19d   : > { %2009 = vmatpush.msrb.mxu0 %v5516_v51  ;;  %2066 = vmatpush.msrb.mxu1 %v5445_v62  ;;  %v5697_v46 = vpop.f32.mrf.mxu3  ;;  %v7465_v62 = vand.u32 4294901760, %v5516_v51 }
 0x19e   : > { %7461 = vst [vmem:[#allocation24_spill] sm:$0xff] %v5697_v46  ;;  %2159 = vmatpush.msrb.mxu2 %v7462_v49  ;;  %2220 = vmatpush.msrb.mxu3 %v5492_v17  ;;  %v5702_v59 = vpop.f32.mrf.mxu0  ;;  %v5704_v61 = vpop.f32.mrf.mxu1  ;;  %v7467_v49 = vld [vmem:[#allocation32_spill] sm:$0xff] }
 0x19f   : > { %1391 = vmatmul.f32.gmra.mxu0 %v7463_v14  ;;  %1496 = vmatmul.f32.gmra.mxu1 %v4995_v47  ;;  %v5708_v28 = vpop.f32.mrf.mxu2 }
 0x1a0   : > { %7464 = vst [vmem:[#allocation28_spill] sm:$0xff] %v5708_v28  ;;  %1636 = vmatmul.f32.gmra.mxu3 %v5125_v39  ;;  %2068 = vmatpush.msrb.mxu1 %v5465_v38  ;;  %v5728_v38 = vpop.permute.xlu2 %402  ;;  %v7472_v39 = vld [vmem:[#allocation36_spill] sm:$0xff] }
 0x1a1   : > { %2163 = vmatpush.msrb.mxu2 %v7465_v62  ;;  %7469 = vst [vmem:[#allocation53_spill] sm:$0xff] %v5728_v38 }
 0x1a2   : > { %1568 = vmatmul.f32.gmra.mxu2 %v5106_v36  ;;  %2070 = vmatpush.msrb.mxu1 %v5471_v53  ;;  %v5742_v36 = vpop.permute.xlu1 %398 }
 0x1a3   : > { %7474 = vst [vmem:[#allocation56_spill] sm:$0xff] %v5742_v36 }
 0x1a4   : > { %2072 = vmatpush.msrb.mxu1 %v5483_v18  ;;  %v5732_v18 = vpop.permute.xlu0 %410 }
 0x1a5   : > { %v5717_v24 = vpop.f32.mrf.mxu3  ;;  %7470 = vst [vmem:[#allocation54_spill] sm:$0xff] %v5732_v18  ;;  %v525_v29 = vadd.f32 %v5622_v7, %v5732_v18 }
 0x1a6   : > { %7466 = vst [vmem:[#allocation52_spill] sm:$0xff] %v5717_v24  ;;  %2074 = vmatpush.msrb.mxu1 %v5492_v17  ;;  %v5720_v1 = vpop.f32.mrf.mxu0  ;;  %v5722_v60 = vpop.f32.mrf.mxu1  ;;  %v7477_v24 = vld [vmem:[#allocation39_spill] sm:$0xff] }
 0x1a7   : > { %1399 = vmatmul.f32.gmra.mxu0 %v7467_v49  ;;  %1500 = vmatmul.f32.gmra.mxu1 %v5076_v37  ;;  %v5726_v51 = vpop.f32.mrf.mxu2 }
 0x1a8   : > { %7468 = vst [vmem:[#allocation32_spill] sm:$0xff] %v5726_v51  ;;  %1642 = vmatmul.f32.gmra.mxu3 %v5167_v26  ;;  %v5745_v26 = vpop.permute.xlu2 %394 }
 0x1a9   : > { %7475 = vst [vmem:[#allocation57_spill] sm:$0xff] %v5745_v26  ;;  %v493_v7 = vadd.f32 %v5571_v27, %v5745_v26 }
 0x1aa   : > { %1573 = vmatmul.f32.gmra.mxu2 %v5154_v3  ;;  %v509_v3 = vadd.f32 %v5597_v43, %v5728_v38 }
 0x1ac   : > { %v606_v43 = vadd.f32 %v5613_v40, %v509_v3  ;;  %v7479_v40 = vld [vmem:[#allocation8_spill] sm:$0xff] }
 0x1ad   : > { %v5734_v53 = vpop.f32.mrf.mxu3 }
 0x1ae   : > { %7471 = vst [vmem:[#allocation55_spill] sm:$0xff] %v5734_v53  ;;  %v824_v17 = vpop.f32.mrf.mxu0  ;;  %v5736_v62 = vpop.f32.mrf.mxu1  ;;  %v677_v3 = vadd.f32 %v5615_v54, %v606_v43 }
 0x1af   : > { %1407 = vmatmul.f32.gmra.mxu0 %v7472_v39  ;;  %1504 = vmatmul.f32.gmra.mxu1 %v5138_v63  ;;  %v5740_v5 = vpop.f32.mrf.mxu2  ;;  %v5764_v53 = vpop.permute.xlu1 %386 }
 0x1b0   : > { %7473 = vst [vmem:[#allocation36_spill] sm:$0xff] %v5740_v5  ;;  %1648 = vmatmul.f32.gmra.mxu3 %v5199_v58  ;;  %v5758_v58 = vpop.permute.xlu0 %390  ;;  %v5772_v51 = vpop.permute.xlu2 %382  ;;  %v598_v5 = vadd.f32 %v5591_v4, %v493_v7  ;;  %v748_v54 = vadd.f32 %v5609_v57, %v677_v3  ;;  %v7482_v7 = vld [vmem:[#allocation14_spill] sm:$0xff] }
 0x1b1   : > { %7478 = vst [vmem:[#allocation59_spill] sm:$0xff] %v5758_v58  ;;  %v485_v18 = vadd.f32 %v5533_v32, %v5758_v58 }
 0x1b2   : > { %1578 = vmatmul.f32.gmra.mxu2 %v5183_v45  ;;  %v501_v45 = vadd.f32 %v5586_v12, %v5742_v36 }
 0x1b3   : > { %v594_v32 = vadd.f32 %v5573_v20, %v485_v18  ;;  %v667_v20 = vadd.f32 %v5593_v21, %v598_v5  ;;  %v7486_v5 = vld [vmem:[#allocation48_spill] sm:$0xff] }
 0x1b4   : > { %v602_v12 = vadd.f32 %v5603_v33, %v501_v45 }
 0x1b5   : > { %v5750_v2 = vpop.f32.mrf.mxu3  ;;  %v736_v21 = vadd.f32 %v7486_v5, %v667_v20  ;;  %v7490_v20 = vld [vmem:[#allocation12_spill] sm:$0xff] }
 0x1b6   : > { %7476 = vst [vmem:[#allocation58_spill] sm:$0xff] %v5750_v2  ;;  %v828_v41 = vpop.f32.mrf.mxu0  ;;  %v881_v46 = vpop.f32.mrf.mxu1  ;;  %v614_v2 = vadd.f32 %v5636_v48, %v525_v29  ;;  %v7481_v29 = vld [vmem:[#allocation43_spill] sm:$0xff]  ;;  %v672_v33 = vadd.f32 %v5605_v22, %v602_v12 }
 0x1b7   : > { %1415 = vmatmul.f32.gmra.mxu0 %v7477_v24  ;;  %1508 = vmatmul.f32.gmra.mxu1 %v5169_v6  ;;  %v5756_v28 = vpop.f32.mrf.mxu2  ;;  %v829_v4 = vadd.f32 %v828_v41, %v5628_v50  ;;  %v7483_v12 = vld [vmem:[#allocation47_spill] sm:$0xff]  ;;  %v7484_v50 = vld [vmem:[#allocation49_spill] sm:$0xff] }
 0x1b8   : > { %1654 = vmatmul.f32.gmra.mxu3 %v5230_v11  ;;  %v477_v11 = vadd.f32 %v7479_v40, %v5764_v53  ;;  %v687_v48 = vadd.f32 %v5638_v55, %v614_v2  ;;  %v825_v2 = vadd.f32 %v824_v17, %v748_v54  ;;  %v662_v57 = vadd.f32 %v7483_v12, %v594_v32  ;;  %v7488_v32 = vld [vmem:[#allocation46_spill] sm:$0xff] }
 0x1b9   : > { %v742_v3 = vadd.f32 %v7484_v50, %v672_v33  ;;  %v817_v33 = vadd.f32 %v5702_v59, %v736_v21  ;;  %v7492_v21 = vld [vmem:[#allocation51_spill] sm:$0xff] }
 0x1ba   : > { %1583 = vmatmul.f32.gmra.mxu2 %v5215_v44  ;;  %v7480_v44 = vld [vmem:[#allocation15_spill] sm:$0xff]  ;;  %v760_v41 = vadd.f32 %v5632_v19, %v687_v48  ;;  %v882_v40 = vadd.f32 %v881_v46, %v825_v2  ;;  %v7489_v19 = vld [vmem:[#allocation45_spill] sm:$0xff] }
 0x1bb   : > { %v469_v36 = vadd.f32 %v7480_v44, %v5772_v51  ;;  %v590_v44 = vadd.f32 %v5535_v30, %v477_v11 }
 0x1bd   : > { %v1063_v24 = vpop.f32.mrf.mxu3  ;;  %v586_v22 = vadd.f32 %v7482_v7, %v469_v36  ;;  %v7487_v36 = vld [vmem:[#allocation9_spill] sm:$0xff] }
 0x1be   : > { %v832_v27 = vpop.f32.mrf.mxu0  ;;  %v885_v26 = vpop.f32.mrf.mxu1 }
 0x1bf   : > { %1423 = vmatmul.f32.gmra.mxu0 %v7481_v29  ;;  %1512 = vmatmul.f32.gmra.mxu1 %v5201_v34  ;;  %v970_v45 = vpop.f32.mrf.mxu2  ;;  %v886_v55 = vadd.f32 %v885_v26, %v829_v4  ;;  %v833_v11 = vadd.f32 %v832_v27, %v760_v41  ;;  %v821_v26 = vadd.f32 %v5720_v1, %v742_v3 }
 0x1c0   : > { %1660 = vmatmul.f32.gmra.mxu3 %v5261_v52  ;;  %v971_v43 = vadd.f32 %v970_v45, %v5619_v0  ;;  %v7485_v45 = vld [vmem:[#allocation16_spill] sm:$0xff]  ;;  %v652_v4 = vadd.f32 %v7487_v36, %v586_v22  ;;  %v923_v27 = vadd.f32 %v5652_v16, %v5772_v51  ;;  %v874_v22 = vadd.f32 %v5722_v60, %v817_v33 }
 0x1c1   : > { %v657_v52 = vadd.f32 %v7485_v45, %v590_v44  ;;  %v878_v1 = vadd.f32 %v5736_v62, %v821_v26  ;;  %v2274_v44 = vmax.f32 %v882_v40, 0.0  ;;  %v7493_v26 = vld [vmem:[#allocation41_spill] sm:$0xff]  ;;  %v7505_v0 = vld [vmem:[#allocation32_spill] sm:$0xff] }
 0x1c2   : > { %1588 = vmatmul.f32.gmra.mxu2 %v5247_v42  ;;  %v5793_v18 = vadd.f32 %v1063_v24, %v971_v43  ;;  %v2278_v24 = vmax.f32 %v886_v55, 0.0  ;;  %v730_v43 = vadd.f32 %v7488_v32, %v662_v57  ;;  %v7491_v57 = vld [vmem:[#allocation13_spill] sm:$0xff]  ;;  %v1040_v62 = vadd.f32 %v5642_v25, %v923_v27 }
 0x1c3   : > { %v724_v2 = vadd.f32 %v7490_v20, %v657_v52  ;;  %v718_v16 = vadd.f32 %v7491_v57, %v652_v4  ;;  %v2270_v52 = vmax.f32 %v878_v1, 0.0  ;;  %v5827_v3 = vand.u32 4294901760, %v2274_v44 }
 0x1c4   : > { %v813_v7 = vadd.f32 %v5676_v23, %v730_v43  ;;  %v5818_v12 = vand.u32 4294901760, %v2278_v24 }
 0x1c5   : > { %v5800_v30 = vpop.f32.mrf.mxu3  ;;  %v809_v59 = vadd.f32 %v5646_v31, %v724_v2  ;;  %v805_v23 = vadd.f32 %v5630_v56, %v718_v16  ;;  %v5843_v36 = vand.u32 4294901760, %v2270_v52  ;;  %v5848_v4 = vsub.f32 %v2274_v44, %v5827_v3 }
 0x1c6   : > { %v889_v17 = vpop.f32.mrf.mxu1  ;;  %v1105_v54 = vpop.f32.mrf.mxu0  ;;  %v870_v50 = vadd.f32 %v5704_v61, %v813_v7  ;;  %v5835_v31 = vsub.f32 %v2278_v24, %v5818_v12 }
 0x1c7   : > { %1431 = vmatmul.f32.gmra.mxu0 %v7489_v19  ;;  %1516 = vmatmul.f32.gmra.mxu1 %v5232_v8  ;;  %v890_v46 = vadd.f32 %v889_v17, %v833_v11  ;;  %v5808_v48 = vpop.f32.mrf.mxu2  ;;  %v866_v60 = vadd.f32 %v5678_v35, %v809_v59  ;;  %v2266_v11 = vmax.f32 %v874_v22, 0.0  ;;  %v1106_v5 = vadd.f32 %v1105_v54, %v1040_v62 }
 0x1c8   : > { %1666 = vmatmul.f32.gmra.mxu3 %v5279_v13  ;;  %v862_v25 = vadd.f32 %v7492_v21, %v805_v23  ;;  %v2262_v17 = vmax.f32 %v870_v50, 0.0  ;;  %7494 = vst [vmem:[#allocation8_spill] sm:$0xff] %v5843_v36  ;;  %v7242_v1 = vand.u32 4294901760, %v5835_v31  ;;  %v7241_v7 = vand.u32 4294901760, %v5848_v4  ;;  %v7503_v13 = vld [vmem:[#allocation39_spill] sm:$0xff] }
 0x1c9   : > { %v2282_v55 = vmax.f32 %v890_v46, 0.0  ;;  %v2258_v32 = vmax.f32 %v866_v60, 0.0  ;;  %v5851_v43 = vand.u32 4294901760, %v2266_v11  ;;  %v7496_v46 = vld [vmem:[#allocation20_spill] sm:$0xff] }
 0x1ca   : > { %1593 = vmatmul.f32.gmra.mxu2 %v5271_v9  ;;  %v2254_v20 = vmax.f32 %v862_v25, 0.0  ;;  %v5861_v44 = vand.u32 4294901760, %v2262_v17  ;;  %v2457_v16 = vsub.f32 %v5835_v31, %v7242_v1  ;;  %v2463_v23 = vsub.f32 %v5848_v4, %v7241_v7  ;;  %v7501_v7 = vld [vmem:[#allocation56_spill] sm:$0xff] }
 0x1cb   : > { %v5823_v41 = vand.u32 4294901760, %v2282_v55  ;;  %7495 = vst [vmem:[#allocation15_spill] sm:$0xff] %v5851_v43  ;;  %v5872_v22 = vand.u32 4294901760, %v2258_v32  ;;  %v5879_v59 = vsub.f32 %v2266_v11, %v5851_v43  ;;  %v7502_v1 = vld [vmem:[#allocation36_spill] sm:$0xff] }
 0x1cc   : > { %7497 = vst [vmem:[#allocation43_spill] sm:$0xff] %v5861_v44  ;;  %v5885_v50 = vand.u32 4294901760, %v2254_v20  ;;  %v5895_v60 = vsub.f32 %v2262_v17, %v5861_v44  ;;  %v2458_v21 = vand.u32 4294901760, %v2457_v16  ;;  %v2464_v17 = vand.u32 4294901760, %v2463_v23 }
 0x1cd   : > { %v5832_v40 = vsub.f32 %v2282_v55, %v5823_v41  ;;  %v1315_v45 = vpop.f32.mrf.mxu3  ;;  %v5867_v55 = vsub.f32 %v2270_v52, %v5843_v36  ;;  %7498 = vst [vmem:[#allocation14_spill] sm:$0xff] %v5872_v22  ;;  %v5906_v25 = vsub.f32 %v2258_v32, %v5872_v22 }
 0x1ce   : > { %7499 = vst [vmem:[#allocation47_spill] sm:$0xff] %v5885_v50 }
 0x1cf   : > { %v7243_v61 = vand.u32 4294901760, %v5832_v40  ;;  %1520 = vmatmul.f32.gmra.mxu1 %v7493_v26  ;;  %1711 = vmatmul.f32.vlgmr.msra.gmra.mxu0 %v4944_v10  ;;  %v5841_v56 = vpop.f32.mrf.mxu0  ;;  %v1171_v35 = vpop.f32.mrf.mxu1 }
 0x1d0   : > { %1946 = vmatmul.f32.vlgmr.msra.gmra.mxu3 %v4944_v10  ;;  %2360 = vmatpush.msra.mxu0 %v5823_v41  ;;  %v1172_v24 = vadd.f32 %v1171_v35, %v1106_v5  ;;  %v1258_v54 = vpop.f32.mrf.mxu2  ;;  %v7237_v35 = vand.u32 4294901760, %v5879_v59 }
 0x1d1   : > { %2611 = vmatpush.msra.mxu3 %v5823_v41  ;;  %v2451_v33 = vsub.f32 %v5832_v40, %v7243_v61  ;;  %v955_v61 = vadd.f32 %v7502_v1, %v7501_v7 }
 0x1d2   : > { %1829 = vmatmul.f32.vlgmr.msra.gmra.mxu2 %v7496_v46  ;;  %v1259_v27 = vadd.f32 %v1258_v54, %v1172_v24  ;;  %2362 = vmatpush.msra.mxu0 %v5818_v12  ;;  %v7236_v54 = vand.u32 4294901760, %v5895_v60  ;;  %v2475_v32 = vsub.f32 %v5879_v59, %v7237_v35  ;;  %v7239_v46 = vand.u32 4294901760, %v5906_v25 }
 0x1d3   : > { %2539 = vmatpush.msra.mxu2 %v5832_v40  ;;  %2613 = vmatpush.msra.mxu3 %v5818_v12  ;;  %v2452_v57 = vand.u32 4294901760, %v2451_v33 }
 0x1d4   : > { %v5863_v2 = vadd.f32 %v1315_v45, %v1259_v27  ;;  %2364 = vmatpush.msra.mxu0 %v5827_v3  ;;  %v7240_v45 = vand.u32 4294901760, %v5867_v55  ;;  %v2481_v33 = vsub.f32 %v5895_v60, %v7236_v54 }
 0x1d5   : > { %2542 = vmatpush.msra.mxu2 %v5835_v31  ;;  %2615 = vmatpush.msra.mxu3 %v5827_v3 }
 0x1d6   : > { %2366 = vmatpush.msra.mxu0 %v5843_v36  ;;  %v5881_v62 = vpop.f32.mrf.mxu3  ;;  %v2469_v24 = vsub.f32 %v5867_v55, %v7240_v45  ;;  %v2482_v54 = vand.u32 4294901760, %v2481_v33 }
 0x1d7   : > { %1715 = vmatmul.f32.gmra.mxu0 %v4995_v47  ;;  %1768 = vmatmul.f32.vlgmr.msra.gmra.mxu1 %v4944_v10 }
 0x1d8   : > { %1950 = vmatmul.f32.gmra.mxu3 %v4995_v47  ;;  %2545 = vmatpush.msra.mxu2 %v5848_v4  ;;  %v5889_v52 = vpop.f32.mrf.mxu2  ;;  %v2470_v27 = vand.u32 4294901760, %v2469_v24  ;;  %v2487_v24 = vsub.f32 %v5906_v25, %v7239_v46 }
 0x1d9   : > { %2617 = vmatpush.msra.mxu3 %v5843_v36  ;;  %2368 = vmatpush.msra.mxu0 %v5851_v43  ;;  %v5900_v11 = vpop.f32.mrf.mxu0  ;;  %v5902_v5 = vpop.f32.mrf.mxu1 }
 0x1da   : > { %1837 = vmatmul.f32.gmra.mxu2 %v7456_v15  ;;  %2453 = vmatpush.msra.mxu1 %v2452_v57  ;;  %v5916_v15 = vsub.f32 %v2254_v20, %v5885_v50 }
 0x1db   : > { %2548 = vmatpush.msra.mxu2 %v5867_v55  ;;  %2619 = vmatpush.msra.mxu3 %v5851_v43  ;;  %v7509_v43 = vld [vmem:[#allocation52_spill] sm:$0xff] }
 0x1dc   : > { %2370 = vmatpush.msra.mxu0 %v5861_v44  ;;  %2459 = vmatpush.msra.mxu1 %v2458_v21  ;;  %7500 = vst [vmem:[#allocation49_spill] sm:$0xff] %v5916_v15  ;;  %v7238_v57 = vand.u32 4294901760, %v5916_v15  ;;  %v2476_v21 = vand.u32 4294901760, %v2475_v32 }
 0x1dd   : > { %2551 = vmatpush.msra.mxu2 %v5879_v59  ;;  %2621 = vmatpush.msra.mxu3 %v5861_v44 }
 0x1de   : > { %2372 = vmatpush.msra.mxu0 %v5872_v22  ;;  %2465 = vmatpush.msra.mxu1 %v2464_v17  ;;  %v2493_v35 = vsub.f32 %v5916_v15, %v7238_v57 }
 0x1df   : > { %1719 = vmatmul.f32.gmra.mxu0 %v5076_v37  ;;  %1772 = vmatmul.f32.gmra.mxu1 %v4995_v47 }
 0x1e0   : > { %1954 = vmatmul.f32.gmra.mxu3 %v5076_v37  ;;  %2554 = vmatpush.msra.mxu2 %v5895_v60  ;;  %v5933_v20 = vpop.f32.mrf.mxu3  ;;  %v2494_v32 = vand.u32 4294901760, %v2493_v35 }
 0x1e1   : > { %2623 = vmatpush.msra.mxu3 %v5872_v22  ;;  %2374 = vmatpush.msra.mxu0 %v5885_v50  ;;  %v1120_v16 = vpop.f32.mrf.mxu0  ;;  %v5938_v23 = vpop.f32.mrf.mxu1 }
 0x1e2   : > { %1845 = vmatmul.f32.gmra.mxu2 %v7463_v14  ;;  %2471 = vmatpush.msra.mxu1 %v2470_v27  ;;  %v5941_v17 = vpop.f32.mrf.mxu2  ;;  %v2488_v14 = vand.u32 4294901760, %v2487_v24 }
 0x1e3   : > { %2557 = vmatpush.msra.mxu2 %v5906_v25  ;;  %2625 = vmatpush.msra.mxu3 %v5885_v50 }
 0x1e4   : > { %2477 = vmatpush.msra.mxu1 %v2476_v21 }
 0x1e5   : > { %2560 = vmatpush.msra.mxu2 %v5916_v15 }
 0x1e6   : > { %2483 = vmatpush.msra.mxu1 %v2482_v54 }
 0x1e7   : > { %1723 = vmatmul.f32.gmra.mxu0 %v5138_v63  ;;  %1776 = vmatmul.f32.gmra.mxu1 %v5076_v37 }
 0x1e8   : > { %1958 = vmatmul.f32.gmra.mxu3 %v5138_v63  ;;  %2489 = vmatpush.msra.mxu1 %v2488_v14  ;;  %v5955_v27 = vpop.f32.mrf.mxu3 }
 0x1e9   : > { %v1125_v21 = vpop.f32.mrf.mxu0  ;;  %v1189_v33 = vpop.f32.mrf.mxu1 }
 0x1ea   : > { %1853 = vmatmul.f32.gmra.mxu2 %v7467_v49  ;;  %2495 = vmatpush.msra.mxu1 %v2494_v32  ;;  %v1270_v57 = vpop.f32.mrf.mxu2  ;;  %v963_v49 = vadd.f32 %v5756_v28, %v5728_v38  ;;  %v7508_v28 = vld [vmem:[#allocation28_spill] sm:$0xff] }
 0x1eb   : > { %v939_v38 = vadd.f32 %v7508_v28, %v5758_v58 }
 0x1ef   : > { %1727 = vmatmul.f32.gmra.mxu0 %v5169_v6  ;;  %1780 = vmatmul.f32.gmra.mxu1 %v5138_v63  ;;  %v7506_v63 = vld [vmem:[#allocation58_spill] sm:$0xff] }
 0x1f0   : > { %1962 = vmatmul.f32.gmra.mxu3 %v5169_v6  ;;  %v1331_v54 = vpop.f32.mrf.mxu3  ;;  %v1060_v50 = vadd.f32 %v7506_v63, %v963_v49  ;;  %v7510_v63 = vld [vmem:[#allocation11_spill] sm:$0xff] }
 0x1f1   : > { %v1130_v24 = vpop.f32.mrf.mxu0  ;;  %v1195_v46 = vpop.f32.mrf.mxu1 }
 0x1f2   : > { %1861 = vmatmul.f32.gmra.mxu2 %v7472_v39  ;;  %v1274_v35 = vpop.f32.mrf.mxu2  ;;  %v7504_v39 = vld [vmem:[#allocation57_spill] sm:$0xff]  ;;  %v1131_v44 = vadd.f32 %v1130_v24, %v1060_v50  ;;  %v7511_v24 = vld [vmem:[#allocation54_spill] sm:$0xff] }
 0x1f3   : > { %v947_v42 = vadd.f32 %v7505_v0, %v7504_v39  ;;  %v979_v49 = vadd.f32 %v5808_v48, %v7511_v24 }
 0x1f5   : > { %v1052_v1 = vadd.f32 %v7509_v43, %v947_v42  ;;  %v1068_v58 = vadd.f32 %v5800_v30, %v979_v49 }
 0x1f7   : > { %1731 = vmatmul.f32.gmra.mxu0 %v5201_v34  ;;  %1784 = vmatmul.f32.gmra.mxu1 %v5169_v6  ;;  %v7507_v6 = vld [vmem:[#allocation55_spill] sm:$0xff]  ;;  %v1121_v28 = vadd.f32 %v1120_v16, %v1052_v1 }
 0x1f8   : > { %1966 = vmatmul.f32.gmra.mxu3 %v5201_v34  ;;  %v1335_v14 = vpop.f32.mrf.mxu3  ;;  %v1056_v22 = vadd.f32 %v7507_v6, %v955_v61  ;;  %v931_v6 = vadd.f32 %v7510_v63, %v5764_v53 }
 0x1f9   : > { %v1135_v32 = vpop.f32.mrf.mxu0  ;;  %v1201_v45 = vpop.f32.mrf.mxu1 }
 0x1fa   : > { %1869 = vmatmul.f32.gmra.mxu2 %v7503_v13  ;;  %v1278_v9 = vpop.f32.mrf.mxu2  ;;  %v1126_v7 = vadd.f32 %v1125_v21, %v1056_v22  ;;  %v1136_v13 = vadd.f32 %v1135_v32, %v5793_v18  ;;  %v1202_v37 = vadd.f32 %v1201_v45, %v1131_v44  ;;  %v7512_v22 = vld [vmem:[#allocation24_spill] sm:$0xff]  ;;  %v1190_v44 = vadd.f32 %v1189_v33, %v1121_v28  ;;  %v7513_v32 = vld [vmem:[#allocation10_spill] sm:$0xff] }
 0x1fb   : > { %v1048_v18 = vadd.f32 %v7512_v22, %v939_v38 }
 0x1fc   : > { %v1196_v39 = vadd.f32 %v1195_v46, %v1126_v7  ;;  %v1279_v45 = vadd.f32 %v1278_v9, %v1202_v37  ;;  %v1271_v38 = vadd.f32 %v1270_v57, %v1190_v44  ;;  %v7517_v44 = vand.u32 4294901760, %v5848_v4 }
 0x1fd   : > { %v1116_v63 = vadd.f32 %v5900_v11, %v1048_v18 }
 0x1fe   : > { %v1275_v36 = vadd.f32 %v1274_v35, %v1196_v39  ;;  %v1328_v35 = vadd.f32 %v5955_v27, %v1271_v38  ;;  %v7519_v38 = vld [vmem:[#allocation19_spill] sm:$0xff] }
 0x1ff   : > { %1735 = vmatmul.f32.gmra.mxu0 %v5232_v8  ;;  %1788 = vmatmul.f32.gmra.mxu1 %v5201_v34  ;;  %v1044_v34 = vadd.f32 %v7513_v32, %v931_v6  ;;  %v1184_v7 = vadd.f32 %v5938_v23, %v1116_v63  ;;  %v7518_v63 = vand.u32 4294901760, %v5867_v55  ;;  %v7521_v55 = vand.u32 4294901760, %v5879_v59 }
 0x200   : > { %1970 = vmatmul.f32.gmra.mxu3 %v5232_v8  ;;  %v1339_v0 = vpop.f32.mrf.mxu3  ;;  %v1332_v33 = vadd.f32 %v1331_v54, %v1275_v36  ;;  %v2267_v54 = vmax.f32 %v1328_v35, 0.0 }
 0x201   : > { %v1140_v61 = vpop.f32.mrf.mxu0  ;;  %v1207_v50 = vpop.f32.mrf.mxu1  ;;  %v1111_v48 = vadd.f32 %v5841_v56, %v1044_v34  ;;  %v1267_v23 = vadd.f32 %v5941_v17, %v1184_v7 }
 0x202   : > { %1877 = vmatmul.f32.gmra.mxu2 %v7481_v29  ;;  %v1208_v42 = vadd.f32 %v1207_v50, %v1136_v13  ;;  %v1282_v43 = vpop.f32.mrf.mxu2  ;;  %v1336_v29 = vadd.f32 %v1335_v14, %v1279_v45  ;;  %v1141_v37 = vadd.f32 %v1140_v61, %v1068_v58  ;;  %v2271_v39 = vmax.f32 %v1332_v33, 0.0 }
 0x203   : > { %v1178_v11 = vadd.f32 %v5902_v5, %v1111_v48  ;;  %v1324_v5 = vadd.f32 %v5933_v20, %v1267_v23  ;;  %v7516_v50 = vand.u32 4294901760, %v5835_v31  ;;  %v6022_v18 = vand.u32 4294901760, %v2267_v54 }
 0x204   : > { %v1283_v21 = vadd.f32 %v1282_v43, %v1208_v42  ;;  %v2275_v57 = vmax.f32 %v1336_v29, 0.0  ;;  %v6015_v6 = vand.u32 4294901760, %v2271_v39  ;;  %v2255_v48 = vmax.f32 %v5863_v2, 0.0  ;;  %v7520_v29 = vld [vmem:[#allocation18_spill] sm:$0xff] }
 0x205   : > { %v2263_v42 = vmax.f32 %v1324_v5, 0.0 }
 0x206   : > { %v1340_v15 = vadd.f32 %v1339_v0, %v1283_v21  ;;  %v6006_v17 = vand.u32 4294901760, %v2275_v57  ;;  %v6035_v21 = vsub.f32 %v2271_v39, %v6015_v6 }
 0x207   : > { %1739 = vmatmul.f32.gmra.mxu0 %v7493_v26  ;;  %1792 = vmatmul.f32.gmra.mxu1 %v5232_v8  ;;  %v6042_v4 = vand.u32 4294901760, %v2263_v42 }
 0x208   : > { %v2279_v9 = vmax.f32 %v1340_v15, 0.0  ;;  %1974 = vmatmul.f32.gmra.mxu3 %v7493_v26  ;;  %v1343_v46 = vpop.f32.mrf.mxu3  ;;  %v1263_v15 = vadd.f32 %v5889_v52, %v1178_v11  ;;  %v7515_v52 = vand.u32 4294901760, %v5832_v40  ;;  %v6025_v40 = vsub.f32 %v2275_v57, %v6006_v17 }
 0x209   : > { %v1213_v30 = vpop.f32.mrf.mxu1  ;;  %v1376_v16 = vpop.f32.mrf.mxu0  ;;  %v6073_v23 = vsub.f32 %v2263_v42, %v6042_v4 }
 0x20a   : > { %1885 = vmatmul.f32.gmra.mxu2 %v7489_v19  ;;  %v1214_v34 = vadd.f32 %v1213_v30, %v1141_v37  ;;  %v1286_v56 = vpop.f32.mrf.mxu2  ;;  %v5999_v14 = vand.u32 4294901760, %v2279_v9  ;;  %v1377_v36 = vadd.f32 %v1376_v16, %v5772_v51  ;;  %v7514_v19 = vld [vmem:[#allocation17_spill] sm:$0xff]  ;;  %v1320_v20 = vadd.f32 %v5881_v62, %v1263_v15 }
 0x20b   : > { %v6049_v37 = vsub.f32 %v2267_v54, %v6022_v18  ;;  %v7522_v16 = vand.u32 4294901760, %v5895_v60  ;;  %v7526_v54 = vld [vmem:[#allocation8_spill] sm:$0xff] }
 0x20c   : > { %v1287_v58 = vadd.f32 %v1286_v56, %v1214_v34  ;;  %v6009_v27 = vsub.f32 %v2279_v9, %v5999_v14  ;;  %v2259_v31 = vmax.f32 %v1320_v20, 0.0  ;;  %v7271_v34 = vand.u32 4294901760, %v6035_v21 }
 0x20d   : > { %v6070_v56 = vand.u32 4294901760, %v2255_v48  ;;  %v7270_v15 = vand.u32 4294901760, %v6049_v37 }
 0x20e   : > { %v1344_v1 = vadd.f32 %v1343_v46, %v1287_v58  ;;  %v2916_v46 = vand.u32 4294901760, %v6025_v40  ;;  %v6061_v11 = vand.u32 4294901760, %v2259_v31  ;;  %v2923_v5 = vsub.f32 %v6035_v21, %v7271_v34  ;;  %v6271_v34 = vld [vmem:[%s7169_s2 + $0x38] sm:$0xff] }
 0x20f   : > { %1796 = vmatmul.f32.gmra.mxu1 %v7493_v26  ;;  %2012 = vmatmul.f32.vlgmr.msrb.gmra.mxu0 %v7514_v19 }
 0x210   : > { %v2283_v13 = vmax.f32 %v1344_v1, 0.0  ;;  %2222 = vmatmul.f32.vlgmr.msrb.gmra.mxu3 %v4944_v10  ;;  %2686 = vmatpush.msrb.mxu0 %v7515_v52  ;;  %v1625_v0 = vpop.f32.mrf.mxu3  ;;  %v2917_v58 = vsub.f32 %v6025_v40, %v2916_v46  ;;  %v6084_v39 = vsub.f32 %v2259_v31, %v6061_v11  ;;  %v7528_v52 = vld [vmem:[#allocation21_spill] sm:$0xff]  ;;  %v7532_v31 = vld [vmem:[#allocation43_spill] sm:$0xff] }
 0x212   : > { %v6017_v61 = vand.u32 4294901760, %v2283_v13  ;;  %2165 = vmatmul.f32.vlgmr.msrb.gmra.mxu2 %v4944_v10  ;;  %2690 = vmatpush.msrb.mxu0 %v7516_v50  ;;  %v1384_v49 = vpop.f32.mrf.mxu0  ;;  %v1493_v28 = vpop.f32.mrf.mxu1  ;;  %v2910_v10 = vand.u32 4294901760, %v6009_v27  ;;  %v2918_v20 = vand.u32 4294901760, %v2917_v58  ;;  %v2929_v50 = vsub.f32 %v6049_v37, %v7270_v15  ;;  %v7538_v58 = vld [vmem:[#allocation57_spill] sm:$0xff] }
 0x213   : > { %v1494_v43 = vadd.f32 %v1493_v28, %v1377_v36  ;;  %v1559_v22 = vpop.f32.mrf.mxu2  ;;  %v1385_v30 = vadd.f32 %v1384_v49, %v5764_v53  ;;  %v6094_v36 = vsub.f32 %v2255_v48, %v6070_v56  ;;  %v7530_v49 = vld [vmem:[#allocation59_spill] sm:$0xff] }
 0x214   : > { %v6028_v62 = vsub.f32 %v2283_v13, %v6017_v61  ;;  %2694 = vmatpush.msrb.mxu0 %v7517_v44  ;;  %2814 = vmatpush.msrb.mxu2 %v6017_v61  ;;  %v2911_v9 = vsub.f32 %v6009_v27, %v2910_v10  ;;  %v7527_v13 = vld [vmem:[#allocation23_spill] sm:$0xff]  ;;  %v2924_v44 = vand.u32 4294901760, %v2923_v5 }
 0x215   : > { %v1560_v45 = vadd.f32 %v1559_v22, %v1494_v43  ;;  %v7531_v43 = vld [vmem:[#allocation15_spill] sm:$0xff]  ;;  %v7268_v22 = vand.u32 4294901760, %v6084_v39  ;;  %v7267_v48 = vand.u32 4294901760, %v6094_v36 }
 0x216   : > { %v2904_v32 = vand.u32 4294901760, %v6028_v62  ;;  %2698 = vmatpush.msrb.mxu0 %v7518_v63  ;;  %2816 = vmatpush.msrb.mxu2 %v5999_v14  ;;  %v2912_v60 = vand.u32 4294901760, %v2911_v9 }
 0x217   : > { %v6044_v7 = vadd.f32 %v1625_v0, %v1560_v45  ;;  %2017 = vmatmul.f32.gmra.mxu0 %v7519_v38  ;;  %2078 = vmatmul.f32.vlgmr.msrb.gmra.mxu1 %v7520_v29  ;;  %v7529_v0 = vld [vmem:[#allocation22_spill] sm:$0xff] }
 0x218   : > { %2226 = vmatmul.f32.gmra.mxu3 %v4995_v47  ;;  %2702 = vmatpush.msrb.mxu0 %v7521_v55  ;;  %v2905_v2 = vsub.f32 %v6028_v62, %v2904_v32  ;;  %v2930_v55 = vand.u32 4294901760, %v2929_v50  ;;  %v7539_v50 = vld [vmem:[#allocation31_spill] sm:$0xff] }
 0x219   : > { %2757 = vmatpush.msrb.mxu1 %v5823_v41  ;;  %2818 = vmatpush.msrb.mxu2 %v6006_v17  ;;  %v1631_v59 = vpop.f32.mrf.mxu3  ;;  %v7523_v41 = vand.u32 4294901760, %v5906_v25  ;;  %v7524_v25 = vld [vmem:[#allocation49_spill] sm:$0xff] }
 0x21a   : > { %2169 = vmatmul.f32.gmra.mxu2 %v4995_v47  ;;  %2706 = vmatpush.msrb.mxu0 %v7522_v16  ;;  %v2906_v33 = vand.u32 4294901760, %v2905_v2  ;;  %v7525_v1 = vand.u32 4294901760, %v7524_v25  ;;  %v7533_v2 = vld [vmem:[#allocation14_spill] sm:$0xff] }
 0x21b   : > { %2759 = vmatpush.msrb.mxu1 %v5818_v12  ;;  %v1564_v35 = vpop.f32.mrf.mxu2  ;;  %2820 = vmatpush.msrb.mxu2 %v6015_v6 }
 0x21c   : > { %2710 = vmatpush.msrb.mxu0 %v7523_v41  ;;  %v1392_v47 = vpop.f32.mrf.mxu0  ;;  %v1497_v57 = vpop.f32.mrf.mxu1  ;;  %2907 = vmatpush.msrb.mxu3 %v2906_v33  ;;  %v7534_v33 = vld [vmem:[#allocation47_spill] sm:$0xff] }
 0x21d   : > { %2761 = vmatpush.msrb.mxu1 %v5827_v3  ;;  %v1498_v12 = vadd.f32 %v1497_v57, %v1385_v30  ;;  %2822 = vmatpush.msrb.mxu2 %v6022_v18  ;;  %v7269_v3 = vand.u32 4294901760, %v6073_v23  ;;  %v1393_v28 = vadd.f32 %v1392_v47, %v7530_v49  ;;  %v2947_v47 = vsub.f32 %v6094_v36, %v7267_v48  ;;  %v7536_v57 = vld [vmem:[#allocation25_spill] sm:$0xff] }
 0x21e   : > { %2714 = vmatpush.msrb.mxu0 %v7525_v1  ;;  %2913 = vmatpush.msrb.mxu3 %v2912_v60  ;;  %v7537_v60 = vld [vmem:[#allocation26_spill] sm:$0xff] }
 0x21f   : > { %v1565_v19 = vadd.f32 %v1564_v35, %v1498_v12  ;;  %2763 = vmatpush.msrb.mxu1 %v7526_v54  ;;  %2022 = vmatmul.f32.gmra.mxu0 %v7527_v13  ;;  %v2935_v63 = vsub.f32 %v6073_v23, %v7269_v3  ;;  %v7535_v35 = vld [vmem:[#allocation27_spill] sm:$0xff]  ;;  %v2948_v5 = vand.u32 4294901760, %v2947_v47  ;;  %v7546_v47 = vld [vmem:[#allocation53_spill] sm:$0xff] }
 0x220   : > { %2084 = vmatmul.f32.gmra.mxu1 %v7528_v52  ;;  %2230 = vmatmul.f32.gmra.mxu3 %v7529_v0 }
 0x221   : > { %v6105_v42 = vadd.f32 %v1631_v59, %v1565_v19  ;;  %2765 = vmatpush.msrb.mxu1 %v7531_v43  ;;  %2824 = vmatpush.msrb.mxu2 %v6042_v4  ;;  %v2941_v59 = vsub.f32 %v6084_v39, %v7268_v22  ;;  %v2936_v41 = vand.u32 4294901760, %v2935_v63  ;;  %v7541_v43 = vld [vmem:[#allocation30_spill] sm:$0xff] }
 0x222   : > { %2173 = vmatmul.f32.gmra.mxu2 %v7529_v0  ;;  %2919 = vmatpush.msrb.mxu3 %v2918_v20 }
 0x223   : > { %2767 = vmatpush.msrb.mxu1 %v7532_v31  ;;  %2826 = vmatpush.msrb.mxu2 %v6061_v11  ;;  %v1637_v45 = vpop.f32.mrf.mxu3  ;;  %v2942_v1 = vand.u32 4294901760, %v2941_v59  ;;  %v7542_v31 = vld [vmem:[#allocation56_spill] sm:$0xff]  ;;  %v7543_v59 = vld [vmem:[#allocation35_spill] sm:$0xff] }
 0x224   : > { %v1400_v38 = vpop.f32.mrf.mxu0  ;;  %v1501_v29 = vpop.f32.mrf.mxu1  ;;  %2925 = vmatpush.msrb.mxu3 %v2924_v44 }
 0x225   : > { %2769 = vmatpush.msrb.mxu1 %v7533_v2  ;;  %v1502_v9 = vadd.f32 %v1501_v29, %v1393_v28  ;;  %v1569_v30 = vpop.f32.mrf.mxu2  ;;  %2828 = vmatpush.msrb.mxu2 %v6070_v56  ;;  %v1401_v12 = vadd.f32 %v1400_v38, %v7538_v58  ;;  %v7540_v28 = vld [vmem:[#allocation29_spill] sm:$0xff] }
 0x226   : > { %2931 = vmatpush.msrb.mxu3 %v2930_v55 }
 0x227   : > { %v1570_v16 = vadd.f32 %v1569_v30, %v1502_v9  ;;  %2771 = vmatpush.msrb.mxu1 %v7534_v33  ;;  %2027 = vmatmul.f32.gmra.mxu0 %v7535_v35  ;;  %v2287_v9 = vld [vmem:[#allocation2 + $0x40] sm:$0xff]  ;;  %v7545_v33 = vld [vmem:[#allocation34_spill] sm:$0xff] }
 0x228   : > { %2090 = vmatmul.f32.gmra.mxu1 %v7536_v57  ;;  %2234 = vmatmul.f32.gmra.mxu3 %v7537_v60  ;;  %v2328_v35 = vsel %vm413_vm0, %v2287_v9, 0 }
 0x229   : > { %v6130_v25 = vadd.f32 %v1637_v45, %v1570_v16  ;;  %2937 = vmatpush.msrb.mxu3 %v2936_v41  ;;  %v7544_v16 = vld [vmem:[#allocation33_spill] sm:$0xff] }
 0x22a   : > { %2177 = vmatmul.f32.gmra.mxu2 %v7537_v60 }
 0x22b   : > { %2943 = vmatpush.msrb.mxu3 %v2942_v1  ;;  %v1643_v19 = vpop.f32.mrf.mxu3 }
 0x22c   : > { %v1408_v54 = vpop.f32.mrf.mxu0  ;;  %v1505_v13 = vpop.f32.mrf.mxu1 }
 0x22d   : > { %v1506_v52 = vadd.f32 %v1505_v13, %v1401_v12  ;;  %v1574_v0 = vpop.f32.mrf.mxu2  ;;  %2949 = vmatpush.msrb.mxu3 %v2948_v5  ;;  %v1409_v45 = vadd.f32 %v1408_v54, %v7542_v31  ;;  %v6148_v12 = vand.u32 4294901760, %v2328_v35  ;;  %v2288_v13 = vld [vmem:[#allocation2 + $0x48] sm:$0xff] }
 0x22f   : > { %v1575_v20 = vadd.f32 %v1574_v0, %v1506_v52  ;;  %2032 = vmatmul.f32.gmra.mxu0 %v7539_v50  ;;  %v7547_v0 = vld [vmem:[#allocation38_spill] sm:$0xff]  ;;  %v7549_v50 = vld [vmem:[#allocation37_spill] sm:$0xff] }
 0x230   : > { %2096 = vmatmul.f32.gmra.mxu1 %v7540_v28  ;;  %2238 = vmatmul.f32.gmra.mxu3 %v7541_v43 }
 0x231   : > { %v6136_v44 = vadd.f32 %v1643_v19, %v1575_v20  ;;  %v6152_v20 = vsub.f32 %v2328_v35, %v6148_v12  ;;  %v6183_v35 = vld [vmem:[%s7169_s2 + $0x10] sm:$0xff] }
 0x232   : > { %2181 = vmatmul.f32.gmra.mxu2 %v7541_v43  ;;  %v2331_v43 = vsel %vm413_vm0, %v2288_v13, 0 }
 0x233   : > { %v1649_v63 = vpop.f32.mrf.mxu3  ;;  %7548 = vst [vmem:[#allocation16_spill] sm:$0xff] %v6152_v20 }
 0x234   : > { %v1416_v38 = vpop.f32.mrf.mxu0  ;;  %v1509_v29 = vpop.f32.mrf.mxu1 }
 0x235   : > { %v1510_v55 = vadd.f32 %v1509_v29, %v1409_v45  ;;  %v1579_v2 = vpop.f32.mrf.mxu2  ;;  %v1417_v57 = vadd.f32 %v1416_v38, %v7546_v47  ;;  %v7550_v45 = vld [vmem:[#allocation50_spill] sm:$0xff]  ;;  %v6162_v29 = vand.u32 4294901760, %v6152_v20 }
 0x237   : > { %v1580_v30 = vadd.f32 %v1579_v2, %v1510_v55  ;;  %2037 = vmatmul.f32.gmra.mxu0 %v7543_v59  ;;  %7551 = vst [vmem:[#allocation48_spill] sm:$0xff] %v6162_v29  ;;  %v4630_v55 = vmov 3   ;;  %v6171_v59 = vld [vmem:[%s7169_s2] sm:$0xff] }
 0x238   : > { %2102 = vmatmul.f32.gmra.mxu1 %v7544_v16  ;;  %2242 = vmatmul.f32.gmra.mxu3 %v7545_v33 }
 0x239   : > { %v6144_v41 = vadd.f32 %v1649_v63, %v1580_v30  ;;  %4511 = vset.pattern.permute.xlu0 %v4630_v55  ;;  %4512 = vset.pattern.permute.xlu1 %v4630_v55  ;;  %v6166_v30 = vand.u32 4294901760, %v2331_v43 }
 0x23a   : > { %2185 = vmatmul.f32.gmra.mxu2 %v7545_v33  ;;  %2296 = vperm.xlu0 %4511, %v6171_v59  }
 0x23b   : > { %v1655_v60 = vpop.f32.mrf.mxu3  ;;  %4513 = vset.pattern.permute.xlu2 %v4630_v55 }
 0x23c   : > { %v1424_v1 = vpop.f32.mrf.mxu0  ;;  %v1513_v5 = vpop.f32.mrf.mxu1  ;;  %2304 = vperm.xlu2 %4513, %v6183_v35  }
 0x23d   : > { %v1514_v19 = vadd.f32 %v1513_v5, %v1417_v57  ;;  %v1584_v54 = vpop.f32.mrf.mxu2  ;;  %v1425_v63 = vadd.f32 %v1424_v1, %v7550_v45  ;;  %v2378_v1 = vsub.f32 %v6152_v20, %v6162_v29  ;;  %v7553_v5 = vld [vmem:[#allocation40_spill] sm:$0xff] }
 0x23f   : > { %v1585_v52 = vadd.f32 %v1584_v54, %v1514_v19  ;;  %2042 = vmatmul.f32.gmra.mxu0 %v7547_v0  ;;  %v6192_v19 = vsub.f32 %v2331_v43, %v6166_v30  ;;  %v2289_v54 = vld [vmem:[#allocation2 + $0x50] sm:$0xff]  ;;  %v6199_v0 = vand.u32 4294901760, %v2378_v1  ;;  %v6212_v43 = vld [vmem:[%s7169_s2 + $0x18] sm:$0xff] }
 0x240   : > { %2108 = vmatmul.f32.gmra.mxu1 %v7549_v50  ;;  %2246 = vmatmul.f32.gmra.mxu3 %v5232_v8  ;;  %v2334_v50 = vsel %vm413_vm0, %v2289_v54, 0  ;;  %v2290_v1 = vld [vmem:[#allocation2 + $0x58] sm:$0xff] }
 0x241   : > { %v6156_v28 = vadd.f32 %v1655_v60, %v1585_v52  ;;  %v7552_v60 = vld [vmem:[#allocation42_spill] sm:$0xff]  ;;  %7554 = vst [vmem:[#allocation9_spill] sm:$0xff] %v6192_v19 }
 0x242   : > { %2189 = vmatmul.f32.gmra.mxu2 %v5232_v8  ;;  %v6177_v8 = vld [vmem:[%s7169_s2 + $0x8] sm:$0xff]  ;;  %7555 = vst [vmem:[#allocation46_spill] sm:$0xff] %v6199_v0 }
 0x243   : > { %v1661_v38 = vpop.f32.mrf.mxu3  ;;  %2300 = vperm.xlu1 %4512, %v6177_v8  }
 0x244   : > { %v6164_v2 = vpop.f32.mrf.mxu0  ;;  %v1517_v9 = vpop.f32.mrf.mxu1 }
 0x245   : > { %v1518_v16 = vadd.f32 %v1517_v9, %v1425_v63  ;;  %v1589_v33 = vpop.f32.mrf.mxu2  ;;  %v6207_v9 = vand.u32 4294901760, %v6192_v19 }
 0x247   : > { %v1590_v57 = vadd.f32 %v1589_v33, %v1518_v16  ;;  %2047 = vmatmul.f32.gmra.mxu0 %v7552_v60  ;;  %7556 = vst [vmem:[#allocation45_spill] sm:$0xff] %v6207_v9  ;;  %v6223_v16 = vand.u32 4294901760, %v2334_v50  ;;  %v6228_v33 = vld [vmem:[%s7169_s2 + $0x20] sm:$0xff]  ;;  %v2386_v60 = vsub.f32 %v6192_v19, %v6207_v9 }
 0x248   : > { %2114 = vmatmul.f32.gmra.mxu1 %v7553_v5  ;;  %2250 = vmatmul.f32.gmra.mxu3 %v7493_v26 }
 0x249   : > { %v6194_v13 = vadd.f32 %v1661_v38, %v1590_v57  ;;  %2312 = vperm.xlu2 %4513, %v6228_v33   ;;  %v7557_v57 = vld [vmem:[#allocation44_spill] sm:$0xff]  ;;  %v6240_v5 = vsub.f32 %v2334_v50, %v6223_v16  ;;  %v6249_v3 = vand.u32 4294901760, %v2386_v60  ;;  %v6254_v50 = vld [vmem:[%s7169_s2 + $0x30] sm:$0xff] }
 0x24a   : > { %2193 = vmatmul.f32.gmra.mxu2 %v7493_v26  ;;  %v6218_v26 = vld [vmem:[%s7169_s2 + $0x28] sm:$0xff] }
 0x24b   : > { %v6197_v52 = vpop.f32.mrf.mxu3  ;;  %2308 = vperm.xlu1 %4512, %v6212_v43   ;;  %2316 = vperm.xlu0 %4511, %v6218_v26   ;;  %7558 = vst [vmem:[#allocation12_spill] sm:$0xff] %v6240_v5 }
 0x24c   : > { %v6202_v63 = vpop.f32.mrf.mxu1  ;;  %v6204_v55 = vpop.f32.mrf.mxu0  ;;  %7559 = vst [vmem:[#allocation13_spill] sm:$0xff] %v6249_v3 }
 0x24d   : > { %v6221_v38 = vpop.f32.mrf.mxu2 }
 0x24f   : > { %2380 = vmatmul.f32.vlgmr.msra.gmra.mxu0 %v6199_v0 }
 0x250   : > { %2120 = vmatmul.f32.gmra.mxu1 %v7557_v57  ;;  %2629 = vmatmul.f32.vlgmr.msra.gmra.mxu3 %v6162_v29  ;;  %v2337_v57 = vsel %vm413_vm0, %v2290_v1, 0  ;;  %v6264_v1 = vand.u32 4294901760, %v6240_v5 }
 0x251   : > { %2993 = vmatpush.msra.mxu0 %v6028_v62  ;;  %3211 = vmatpush.msra.mxu3 %v6017_v61  ;;  %v6266_v15 = vand.u32 4294901760, %v2337_v57 }
 0x252   : > { %2563 = vmatmul.f32.vlgmr.msra.gmra.mxu2 %v6152_v20  ;;  %7560 = vst [vmem:[#allocation51_spill] sm:$0xff] %v6264_v1  ;;  %2324 = vperm.xlu2 %4513, %v6271_v34  }
 0x253   : > { %2996 = vmatpush.msra.mxu0 %v6009_v27  ;;  %3140 = vmatpush.msra.mxu2 %v2904_v32  ;;  %v1947_v54 = vpop.f32.mrf.mxu3  ;;  %v2291_v27 = vld [vmem:[#allocation2 + $0x60] sm:$0xff] }
 0x254   : > { %3213 = vmatpush.msra.mxu3 %v5999_v14  ;;  %v1716_v48 = vpop.f32.mrf.mxu0  ;;  %v6247_v22 = vpop.f32.mrf.mxu1  ;;  %2320 = vperm.xlu1 %4512, %v6254_v50  }
 0x255   : > { %2999 = vmatpush.msra.mxu0 %v6025_v40  ;;  %3144 = vmatpush.msra.mxu2 %v2910_v10  ;;  %v1717_v62 = vadd.f32 %v1716_v48, %v6105_v42  ;;  %v1830_v32 = vpop.f32.mrf.mxu2  ;;  %v2394_v10 = vsub.f32 %v6240_v5, %v6264_v1  ;;  %v6288_v40 = vsub.f32 %v2337_v57, %v6266_v15  ;;  %v2340_v48 = vsel %vm413_vm0, %v2291_v27, 0 }
 0x256   : > { %3215 = vmatpush.msra.mxu3 %v6006_v17  ;;  %v1831_v60 = vadd.f32 %v1830_v32, %v5772_v51  ;;  %v7563_v57 = vand.u32 4294901760, %v6049_v37 }
 0x257   : > { %3002 = vmatpush.msra.mxu0 %v6035_v21  ;;  %3148 = vmatpush.msra.mxu2 %v2916_v46  ;;  %7561 = vst [vmem:[#allocation41_spill] sm:$0xff] %v6288_v40  ;;  %v7562_v46 = vand.u32 4294901760, %v6035_v21  ;;  %v6306_v27 = vand.u32 4294901760, %v2394_v10 }
 0x258   : > { %3217 = vmatpush.msra.mxu3 %v6015_v6  ;;  %v6278_v51 = vadd.f32 %v1947_v54, %v1831_v60  ;;  %2388 = vmatmul.f32.gmra.mxu0 %v6249_v3 }
 0x259   : > { %2497 = vmatmul.f32.vlgmr.msra.gmra.mxu1 %v6148_v12  ;;  %2635 = vmatmul.f32.gmra.mxu3 %v6207_v9  ;;  %7564 = vst [vmem:[#allocation20_spill] sm:$0xff] %v6306_v27  ;;  %v6311_v9 = vand.u32 4294901760, %v2340_v48 }
 0x25a   : > { %3005 = vmatpush.msra.mxu0 %v6049_v37  ;;  %3065 = vmatpush.msra.mxu1 %v6017_v61 }
 0x25b   : > { %3152 = vmatpush.msra.mxu2 %v7562_v46  ;;  %3219 = vmatpush.msra.mxu3 %v6022_v18  ;;  %v1951_v42 = vpop.f32.mrf.mxu3  ;;  %v6309_v46 = vand.u32 4294901760, %v6288_v40 }
 0x25c   : > { %2568 = vmatmul.f32.gmra.mxu2 %v6192_v19  ;;  %3008 = vmatpush.msra.mxu0 %v6073_v23  ;;  %v6296_v54 = vpop.f32.mrf.mxu0  ;;  %v1773_v61 = vpop.f32.mrf.mxu1 }
 0x25d   : > { %3067 = vmatpush.msra.mxu1 %v5999_v14  ;;  %3156 = vmatpush.msra.mxu2 %v7563_v57  ;;  %v6301_v32 = vadd.f32 %v1773_v61, %v1717_v62  ;;  %v1838_v21 = vpop.f32.mrf.mxu2  ;;  %7565 = vst [vmem:[#allocation36_spill] sm:$0xff] %v6309_v46  ;;  %v7566_v14 = vand.u32 4294901760, %v6073_v23  ;;  %v2292_v62 = vld [vmem:[#allocation2 + $0x68] sm:$0xff]  ;;  %v6328_v23 = vsub.f32 %v2340_v48, %v6311_v9 }
 0x25e   : > { %3221 = vmatpush.msra.mxu3 %v6042_v4  ;;  %3011 = vmatpush.msra.mxu0 %v6084_v39  ;;  %v1839_v60 = vadd.f32 %v1838_v21, %v5764_v53  ;;  %v7567_v53 = vand.u32 4294901760, %v6084_v39  ;;  %v7569_v39 = vand.u32 4294901760, %v6094_v36 }
 0x25f   : > { %3069 = vmatpush.msra.mxu1 %v6006_v17  ;;  %3160 = vmatpush.msra.mxu2 %v7566_v14  ;;  %v2402_v17 = vsub.f32 %v6288_v40, %v6309_v46  ;;  %7568 = vst [vmem:[#allocation39_spill] sm:$0xff] %v6328_v23  ;;  %v2293_v14 = vld [vmem:[#allocation2 + $0x70] sm:$0xff] }
 0x260   : > { %3223 = vmatpush.msra.mxu3 %v6061_v11  ;;  %3014 = vmatpush.msra.mxu0 %v6094_v36  ;;  %v6318_v37 = vadd.f32 %v1951_v42, %v1839_v60  ;;  %v6346_v60 = vand.u32 4294901760, %v6328_v23 }
 0x261   : > { %3071 = vmatpush.msra.mxu1 %v6015_v6  ;;  %3164 = vmatpush.msra.mxu2 %v7567_v53  ;;  %v2343_v6 = vsel %vm413_vm0, %v2292_v62, 0  ;;  %v6343_v21 = vand.u32 4294901760, %v2402_v17 }
 0x262   : > { %3225 = vmatpush.msra.mxu3 %v6070_v56  ;;  %2396 = vmatmul.f32.gmra.mxu0 %v6306_v27  ;;  %7571 = vst [vmem:[#allocation58_spill] sm:$0xff] %v6346_v60 }
 0x263   : > { %2501 = vmatmul.f32.gmra.mxu1 %v6166_v30  ;;  %2641 = vmatmul.f32.gmra.mxu3 %v6264_v1  ;;  %v1955_v10 = vpop.f32.mrf.mxu3  ;;  %7570 = vst [vmem:[#allocation32_spill] sm:$0xff] %v6343_v21 }
 0x264   : > { %3073 = vmatpush.msra.mxu1 %v6022_v18  ;;  %3168 = vmatpush.msra.mxu2 %v7569_v39  ;;  %v6336_v42 = vpop.f32.mrf.mxu0  ;;  %v6338_v61 = vpop.f32.mrf.mxu1  ;;  %v6348_v18 = vand.u32 4294901760, %v2343_v6 }
 0x265   : > { %2573 = vmatmul.f32.gmra.mxu2 %v6240_v5  ;;  %v1846_v48 = vpop.f32.mrf.mxu2 }
 0x266   : > { %3075 = vmatpush.msra.mxu1 %v6042_v4  ;;  %v1847_v57 = vadd.f32 %v1846_v48, %v7530_v49  ;;  %7572 = vst [vmem:[#allocation55_spill] sm:$0xff] %v6348_v18  ;;  %v2410_v4 = vsub.f32 %v6328_v23, %v6346_v60  ;;  %v6358_v49 = vsub.f32 %v2343_v6, %v6348_v18 }
 0x268   : > { %3077 = vmatpush.msra.mxu1 %v6061_v11  ;;  %v6351_v36 = vadd.f32 %v1955_v10, %v1847_v57  ;;  %7574 = vst [vmem:[#allocation52_spill] sm:$0xff] %v6358_v49  ;;  %v2346_v11 = vsel %vm413_vm0, %v2293_v14, 0  ;;  %v6367_v39 = vand.u32 4294901760, %v2410_v4  ;;  %v6370_v6 = vand.u32 4294901760, %v6358_v49 }
 0x269   : > { %v6372_v48 = vand.u32 4294901760, %v2346_v11 }
 0x26a   : > { %7573 = vst [vmem:[#allocation28_spill] sm:$0xff] %v6351_v36  ;;  %3079 = vmatpush.msra.mxu1 %v6070_v56  ;;  %2404 = vmatmul.f32.gmra.mxu0 %v6343_v21  ;;  %v2418_v14 = vsub.f32 %v6358_v49, %v6370_v6 }
 0x26b   : > { %2505 = vmatmul.f32.gmra.mxu1 %v6223_v16  ;;  %2647 = vmatmul.f32.gmra.mxu3 %v6309_v46  ;;  %v1959_v62 = vpop.f32.mrf.mxu3  ;;  %7575 = vst [vmem:[#allocation11_spill] sm:$0xff] %v6367_v39  ;;  %v2294_v46 = vld [vmem:[#allocation2 + $0x78] sm:$0xff]  ;;  %v6380_v1 = vsub.f32 %v2346_v11, %v6372_v48 }
 0x26c   : > { %v1728_v53 = vpop.f32.mrf.mxu0  ;;  %v6363_v17 = vpop.f32.mrf.mxu1  ;;  %7576 = vst [vmem:[#allocation24_spill] sm:$0xff] %v6370_v6  ;;  %v2349_v4 = vsel %vm413_vm0, %v2294_v46, 0  ;;  %v6387_v5 = vand.u32 4294901760, %v2418_v14 }
 0x26d   : > { %2578 = vmatmul.f32.gmra.mxu2 %v6288_v40  ;;  %v1854_v56 = vpop.f32.mrf.mxu2  ;;  %7578 = vst [vmem:[#allocation17_spill] sm:$0xff] %v6380_v1  ;;  %v6390_v29 = vand.u32 4294901760, %v6380_v1  ;;  %v6392_v11 = vand.u32 4294901760, %v2349_v4 }
 0x26e   : > { %v1855_v10 = vadd.f32 %v1854_v56, %v7538_v58  ;;  %7579 = vst [vmem:[#allocation19_spill] sm:$0xff] %v6387_v5 }
 0x26f   : > { %7580 = vst [vmem:[#allocation18_spill] sm:$0xff] %v6390_v29  ;;  %v2426_v46 = vsub.f32 %v6380_v1, %v6390_v29 }
 0x270   : > { %v6374_v57 = vadd.f32 %v1959_v62, %v1855_v10 }
 0x272   : > { %7577 = vst [vmem:[#allocation10_spill] sm:$0xff] %v6374_v57  ;;  %2412 = vmatmul.f32.gmra.mxu0 %v6367_v39 }
 0x273   : > { %2509 = vmatmul.f32.gmra.mxu1 %v6266_v15  ;;  %2653 = vmatmul.f32.gmra.mxu3 %v6346_v60  ;;  %v1963_v58 = vpop.f32.mrf.mxu3  ;;  %v6400_v60 = vsub.f32 %v2349_v4, %v6392_v11  ;;  %v1433_v4 = vadd.f32 %v6164_v2, %v7511_v24  ;;  %v1729_v24 = vadd.f32 %v1728_v53, %v6144_v41 }
 0x274   : > { %v1732_v56 = vpop.f32.mrf.mxu0  ;;  %v1785_v40 = vpop.f32.mrf.mxu1  ;;  %v1721_v41 = vadd.f32 %v6296_v54, %v6130_v25 }
 0x275   : > { %2583 = vmatmul.f32.gmra.mxu2 %v6328_v23  ;;  %v1862_v62 = vpop.f32.mrf.mxu2  ;;  %7582 = vst [vmem:[#allocation8_spill] sm:$0xff] %v6400_v60  ;;  %v6409_v20 = vand.u32 4294901760, %v6400_v60 }
 0x276   : > { %v1863_v10 = vadd.f32 %v1862_v62, %v7542_v31 }
 0x277   : > { %7584 = vst [vmem:[#allocation21_spill] sm:$0xff] %v6409_v20 }
 0x278   : > { %v6394_v19 = vadd.f32 %v1963_v58, %v1863_v10  ;;  %v6406_v10 = vand.u32 4294901760, %v2426_v46 }
 0x27a   : > { %7581 = vst [vmem:[#allocation49_spill] sm:$0xff] %v6394_v19  ;;  %2420 = vmatmul.f32.gmra.mxu0 %v6387_v5 }
 0x27b   : > { %2513 = vmatmul.f32.gmra.mxu1 %v6311_v9  ;;  %2659 = vmatmul.f32.gmra.mxu3 %v6370_v6  ;;  %v1967_v31 = vpop.f32.mrf.mxu3  ;;  %7583 = vst [vmem:[#allocation23_spill] sm:$0xff] %v6406_v10  ;;  %v1522_v6 = vadd.f32 %v6202_v63, %v1433_v4 }
 0x27c   : > { %v1736_v14 = vpop.f32.mrf.mxu0  ;;  %v1789_v62 = vpop.f32.mrf.mxu1 }
 0x27d   : > { %2588 = vmatmul.f32.gmra.mxu2 %v6358_v49  ;;  %v1870_v23 = vpop.f32.mrf.mxu2  ;;  %v2434_v49 = vsub.f32 %v6400_v60, %v6409_v20  ;;  %v1737_v57 = vadd.f32 %v1736_v14, %v6194_v13  ;;  %v1595_v2 = vadd.f32 %v6221_v38, %v1522_v6 }
 0x27e   : > { %v1871_v58 = vadd.f32 %v1870_v23, %v7546_v47 }
 0x27f   : > { %v6426_v19 = vand.u32 4294901760, %v2434_v49 }
 0x280   : > { %v6413_v36 = vadd.f32 %v1967_v31, %v1871_v58  ;;  %v1733_v31 = vadd.f32 %v1732_v56, %v6156_v28  ;;  %v1725_v28 = vadd.f32 %v6336_v42, %v6136_v44 }
 0x282   : > { %7585 = vst [vmem:[#allocation22_spill] sm:$0xff] %v6413_v36  ;;  %2428 = vmatmul.f32.gmra.mxu0 %v6406_v10  ;;  %v1790_v13 = vadd.f32 %v1789_v62, %v1733_v31  ;;  %v4631_v36 = vmov 4   ;;  %v1782_v53 = vadd.f32 %v6363_v17, %v1725_v28 }
 0x283   : > { %2517 = vmatmul.f32.gmra.mxu1 %v6348_v18  ;;  %2665 = vmatmul.f32.gmra.mxu3 %v6390_v29  ;;  %v1971_v47 = vpop.f32.mrf.mxu3  ;;  %v1668_v29 = vadd.f32 %v6197_v52, %v1595_v2 }
 0x284   : > { %v1740_v23 = vpop.f32.mrf.mxu0  ;;  %v1793_v46 = vpop.f32.mrf.mxu1  ;;  %4514 = vset.pattern.permute.xlu0 %v4631_v36  ;;  %4515 = vset.pattern.permute.xlu1 %v4631_v36  ;;  %v2276_v38 = vmax.f32 %v1790_v13, 0.0  ;;  %v2268_v17 = vmax.f32 %v1782_v53, 0.0 }
 0x285   : > { %2593 = vmatmul.f32.gmra.mxu2 %v6380_v1  ;;  %v1794_v63 = vadd.f32 %v1793_v46, %v1737_v57  ;;  %v1878_v58 = vpop.f32.mrf.mxu2  ;;  %4200 = vperm.xlu0 %4514, %v6171_v59   ;;  %v1741_v49 = vadd.f32 %v1740_v23, %v1668_v29  ;;  %v7590_v1 = vld [vmem:[#allocation10_spill] sm:$0xff] }
 0x286   : > { %v1879_v4 = vadd.f32 %v1878_v58, %v7550_v45  ;;  %v1786_v45 = vadd.f32 %v1785_v40, %v1729_v24  ;;  %4204 = vperm.xlu1 %4515, %v6177_v8   ;;  %4516 = vset.pattern.permute.xlu2 %v4631_v36  ;;  %v1778_v40 = vadd.f32 %v6338_v61, %v1721_v41  ;;  %v6451_v25 = vand.u32 4294901760, %v2276_v38 }
 0x287   : > { %v2280_v10 = vmax.f32 %v1794_v63, 0.0  ;;  %4208 = vperm.xlu2 %4516, %v6183_v35   ;;  %v1713_v36 = vadd.f32 %v6204_v55, %v6044_v7  ;;  %v6476_v55 = vand.u32 4294901760, %v2268_v17 }
 0x288   : > { %v6428_v14 = vadd.f32 %v1971_v47, %v1879_v4  ;;  %v2272_v42 = vmax.f32 %v1786_v45, 0.0  ;;  %v2264_v56 = vmax.f32 %v1778_v40, 0.0  ;;  %v6471_v47 = vsub.f32 %v2276_v38, %v6451_v25 }
 0x289   : > { %v6444_v59 = vand.u32 4294901760, %v2280_v10  ;;  %v6474_v7 = vadd.f32 %v6247_v22, %v1713_v36  ;;  %v2260_v22 = vmax.f32 %v6301_v32, 0.0 }
 0x28a   : > { %2436 = vmatmul.f32.gmra.mxu0 %v6426_v19  ;;  %v6462_v35 = vand.u32 4294901760, %v2272_v42  ;;  %v6486_v58 = vand.u32 4294901760, %v2264_v56 }
 0x28b   : > { %2521 = vmatmul.f32.gmra.mxu1 %v6372_v48  ;;  %2671 = vmatmul.f32.gmra.mxu3 %v6409_v20  ;;  %v6438_v52 = vpop.f32.mrf.mxu3  ;;  %v6456_v8 = vsub.f32 %v2280_v10, %v6444_v59  ;;  %v2256_v32 = vmax.f32 %v6474_v7, 0.0  ;;  %v6511_v41 = vand.u32 4294901760, %v2260_v22 }
 0x28c   : > { %v1797_v6 = vpop.f32.mrf.mxu1  ;;  %v2013_v44 = vpop.f32.mrf.mxu0  ;;  %v6495_v13 = vsub.f32 %v2272_v42, %v6462_v35  ;;  %v6521_v53 = vsub.f32 %v2264_v56, %v6486_v58 }
 0x28d   : > { %2598 = vmatmul.f32.gmra.mxu2 %v6400_v60  ;;  %v1798_v24 = vadd.f32 %v1797_v6, %v1741_v49  ;;  %v6447_v29 = vpop.f32.mrf.mxu2  ;;  %4220 = vperm.xlu0 %4514, %v6218_v26   ;;  %v2014_v62 = vadd.f32 %v2013_v44, %v6278_v51  ;;  %v7307_v63 = vand.u32 4294901760, %v6456_v8  ;;  %v6509_v49 = vsub.f32 %v2268_v17, %v6476_v55 }
 0x28e   : > { %4212 = vperm.xlu1 %4515, %v6212_v43   ;;  %v7306_v43 = vand.u32 4294901760, %v6471_v47  ;;  %v7305_v44 = vand.u32 4294901760, %v6495_v13 }
 0x28f   : > { %v2284_v54 = vmax.f32 %v1798_v24, 0.0  ;;  %4216 = vperm.xlu2 %4516, %v6228_v33   ;;  %v3365_v38 = vsub.f32 %v6456_v8, %v7307_v63  ;;  %v6524_v24 = vand.u32 4294901760, %v2256_v32  ;;  %v7304_v36 = vand.u32 4294901760, %v6509_v49 }
 0x290   : > { %v3371_v33 = vsub.f32 %v6471_v47, %v7306_v43  ;;  %v3377_v7 = vsub.f32 %v6495_v13, %v7305_v44  ;;  %v7587_v43 = vld [vmem:[#allocation23_spill] sm:$0xff] }
 0x291   : > { %v6453_v57 = vand.u32 4294901760, %v2284_v54 }
 0x292   : > { %2716 = vmatmul.f32.vlgmr.msrb.gmra.mxu0 %v6148_v12 }
 0x293   : > { %v6465_v61 = vsub.f32 %v2284_v54, %v6453_v57  ;;  %2525 = vmatmul.f32.gmra.mxu1 %v6392_v11  ;;  %2951 = vmatmul.f32.vlgmr.msrb.gmra.mxu3 %v6148_v12  ;;  %v2223_v10 = vpop.f32.mrf.mxu3  ;;  %v3366_v54 = vand.u32 4294901760, %v3365_v38 }
 0x294   : > { %3268 = vmatpush.msrb.mxu0 %v6453_v57  ;;  %3519 = vmatpush.msrb.mxu3 %v6453_v57  ;;  %v2018_v26 = vpop.f32.mrf.mxu0  ;;  %v2079_v23 = vpop.f32.mrf.mxu1 }
 0x295   : > { %v7308_v51 = vand.u32 4294901760, %v6465_v61  ;;  %2834 = vmatmul.f32.vlgmr.msrb.gmra.mxu2 %v6199_v0  ;;  %v2019_v46 = vadd.f32 %v2018_v26, %v6318_v37  ;;  %v2080_v2 = vadd.f32 %v2079_v23, %v2014_v62  ;;  %v2166_v31 = vpop.f32.mrf.mxu2  ;;  %v6535_v62 = vsub.f32 %v2260_v22, %v6511_v41 }
 0x296   : > { %3270 = vmatpush.msrb.mxu0 %v6444_v59  ;;  %3447 = vmatpush.msrb.mxu2 %v6465_v61  ;;  %v7303_v26 = vand.u32 4294901760, %v6521_v53 }
 0x297   : > { %3521 = vmatpush.msrb.mxu3 %v6444_v59  ;;  %v2167_v4 = vadd.f32 %v2166_v31, %v2080_v2  ;;  %v3359_v37 = vsub.f32 %v6465_v61, %v7308_v51  ;;  %v3383_v2 = vsub.f32 %v6509_v49, %v7304_v36  ;;  %v7302_v22 = vand.u32 4294901760, %v6535_v62  ;;  %4224 = vperm.xlu1 %4515, %v6254_v50  }
 0x298   : > { %3272 = vmatpush.msrb.mxu0 %v6451_v25  ;;  %3450 = vmatpush.msrb.mxu2 %v6456_v8 }
 0x299   : > { %3523 = vmatpush.msrb.mxu3 %v6451_v25  ;;  %v6503_v28 = vadd.f32 %v2223_v10, %v2167_v4  ;;  %v3360_v45 = vand.u32 4294901760, %v3359_v37  ;;  %v3372_v10 = vand.u32 4294901760, %v3371_v33  ;;  %v3378_v4 = vand.u32 4294901760, %v3377_v7  ;;  %4228 = vperm.xlu2 %4516, %v6271_v34  }
 0x29a   : > { %2720 = vmatmul.f32.gmra.mxu0 %v6166_v30  ;;  %3453 = vmatpush.msrb.mxu2 %v6471_v47  ;;  %v3389_v37 = vsub.f32 %v6521_v53, %v7303_v26  ;;  %v3384_v33 = vand.u32 4294901760, %v3383_v2 }
 0x29b   : > { %2773 = vmatmul.f32.vlgmr.msrb.gmra.mxu1 %v6148_v12  ;;  %2955 = vmatmul.f32.gmra.mxu3 %v6166_v30  ;;  %v2227_v6 = vpop.f32.mrf.mxu3 }
 0x29c   : > { %3274 = vmatpush.msrb.mxu0 %v6462_v35  ;;  %3525 = vmatpush.msrb.mxu3 %v6462_v35  ;;  %v6528_v40 = vpop.f32.mrf.mxu0 }
 0x29d   : > { %2842 = vmatmul.f32.gmra.mxu2 %v6249_v3  ;;  %3361 = vmatpush.msrb.mxu1 %v3360_v45  ;;  %v2085_v42 = vpop.f32.mrf.mxu1  ;;  %v2170_v17 = vpop.f32.mrf.mxu2 }
 0x29e   : > { %3276 = vmatpush.msrb.mxu0 %v6476_v55  ;;  %3456 = vmatpush.msrb.mxu2 %v6495_v13  ;;  %v2086_v56 = vadd.f32 %v2085_v42, %v2019_v46  ;;  %v6545_v46 = vsub.f32 %v2256_v32, %v6524_v24 }
 0x29f   : > { %3527 = vmatpush.msrb.mxu3 %v6476_v55  ;;  %3367 = vmatpush.msrb.mxu1 %v3366_v54  ;;  %v3395_v54 = vsub.f32 %v6535_v62, %v7302_v22  ;;  %v7586_v22 = vld [vmem:[#allocation22_spill] sm:$0xff] }
 0x2a0   : > { %3278 = vmatpush.msrb.mxu0 %v6486_v58  ;;  %3459 = vmatpush.msrb.mxu2 %v6509_v49  ;;  %v2171_v23 = vadd.f32 %v2170_v17, %v2086_v56  ;;  %v7301_v38 = vand.u32 4294901760, %v6545_v46  ;;  %v3390_v17 = vand.u32 4294901760, %v3389_v37 }
 0x2a1   : > { %3529 = vmatpush.msrb.mxu3 %v6486_v58  ;;  %3373 = vmatpush.msrb.mxu1 %v3372_v10  ;;  %v3396_v10 = vand.u32 4294901760, %v3395_v54 }
 0x2a2   : > { %2724 = vmatmul.f32.gmra.mxu0 %v6223_v16  ;;  %3462 = vmatpush.msrb.mxu2 %v6521_v53  ;;  %v6553_v31 = vadd.f32 %v2227_v6, %v2171_v23  ;;  %v3401_v56 = vsub.f32 %v6545_v46, %v7301_v38 }
 0x2a3   : > { %2777 = vmatmul.f32.gmra.mxu1 %v6166_v30  ;;  %2959 = vmatmul.f32.gmra.mxu3 %v6223_v16  ;;  %v6561_v32 = vpop.f32.mrf.mxu3 }
 0x2a4   : > { %3280 = vmatpush.msrb.mxu0 %v6511_v41  ;;  %3531 = vmatpush.msrb.mxu3 %v6511_v41  ;;  %v2028_v45 = vpop.f32.mrf.mxu0  ;;  %v3402_v23 = vand.u32 4294901760, %v3401_v56 }
 0x2a5   : > { %2850 = vmatmul.f32.gmra.mxu2 %v6306_v27  ;;  %3379 = vmatpush.msrb.mxu1 %v3378_v4  ;;  %v6567_v6 = vpop.f32.mrf.mxu1  ;;  %v6569_v42 = vpop.f32.mrf.mxu2 }
 0x2a6   : > { %3282 = vmatpush.msrb.mxu0 %v6524_v24  ;;  %3465 = vmatpush.msrb.mxu2 %v6535_v62 }
 0x2a7   : > { %3533 = vmatpush.msrb.mxu3 %v6524_v24  ;;  %3385 = vmatpush.msrb.mxu1 %v3384_v33 }
 0x2a8   : > { %3468 = vmatpush.msrb.mxu2 %v6545_v46 }
 0x2a9   : > { %3391 = vmatpush.msrb.mxu1 %v3390_v17 }
 0x2aa   : > { %2728 = vmatmul.f32.gmra.mxu0 %v6266_v15 }
 0x2ab   : > { %2781 = vmatmul.f32.gmra.mxu1 %v6223_v16  ;;  %2963 = vmatmul.f32.gmra.mxu3 %v6266_v15  ;;  %v6586_v7 = vpop.f32.mrf.mxu3 }
 0x2ac   : > { %3397 = vmatpush.msrb.mxu1 %v3396_v10  ;;  %v2033_v2 = vpop.f32.mrf.mxu0 }
 0x2ad   : > { %2858 = vmatmul.f32.gmra.mxu2 %v6343_v21  ;;  %v2097_v4 = vpop.f32.mrf.mxu1  ;;  %v2178_v37 = vpop.f32.mrf.mxu2  ;;  %v7589_v21 = vld [vmem:[#allocation49_spill] sm:$0xff] }
 0x2ae   : > { %3403 = vmatpush.msrb.mxu1 %v3402_v23  ;;  %v2034_v27 = vadd.f32 %v2033_v2, %v7589_v21 }
 0x2b2   : > { %2732 = vmatmul.f32.gmra.mxu0 %v6311_v9 }
 0x2b3   : > { %2785 = vmatmul.f32.gmra.mxu1 %v6266_v15  ;;  %2967 = vmatmul.f32.gmra.mxu3 %v6311_v9  ;;  %v2239_v34 = vpop.f32.mrf.mxu3 }
 0x2b4   : > { %v2038_v50 = vpop.f32.mrf.mxu0 }
 0x2b5   : > { %2866 = vmatmul.f32.gmra.mxu2 %v6367_v39  ;;  %v2103_v33 = vpop.f32.mrf.mxu1  ;;  %v2182_v54 = vpop.f32.mrf.mxu2  ;;  %v2039_v26 = vadd.f32 %v2038_v50, %v7586_v22  ;;  %v7588_v39 = vld [vmem:[#allocation54_spill] sm:$0xff] }
 0x2b6   : > { %v2104_v0 = vadd.f32 %v2103_v33, %v2034_v27 }
 0x2ba   : > { %2736 = vmatmul.f32.gmra.mxu0 %v6348_v18 }
 0x2bb   : > { %2789 = vmatmul.f32.gmra.mxu1 %v6311_v9  ;;  %2971 = vmatmul.f32.gmra.mxu3 %v6348_v18  ;;  %v2243_v17 = vpop.f32.mrf.mxu3 }
 0x2bc   : > { %v2043_v56 = vpop.f32.mrf.mxu0 }
 0x2bd   : > { %2874 = vmatmul.f32.gmra.mxu2 %v6387_v5  ;;  %v2109_v10 = vpop.f32.mrf.mxu1  ;;  %v2186_v23 = vpop.f32.mrf.mxu2  ;;  %v2044_v36 = vadd.f32 %v2043_v56, %v6428_v14  ;;  %v1887_v5 = vadd.f32 %v6447_v29, %v7588_v39  ;;  %v7591_v14 = vld [vmem:[#allocation28_spill] sm:$0xff]  ;;  %v2183_v39 = vadd.f32 %v2182_v54, %v2104_v0 }
 0x2be   : > { %v2110_v3 = vadd.f32 %v2109_v10, %v2039_v26  ;;  %v2024_v56 = vadd.f32 %v6528_v40, %v7591_v14  ;;  %v6615_v26 = vpop.permute.xlu0 %2296 }
 0x2bf   : > { %v1976_v22 = vadd.f32 %v6438_v52, %v1887_v5  ;;  %v2240_v40 = vadd.f32 %v2239_v34, %v2183_v39  ;;  %v7593_v34 = vand.u32 4294901760, %v6465_v61  ;;  %v7595_v39 = vand.u32 4294901760, %v6471_v47 }
 0x2c0   : > { %v2187_v50 = vadd.f32 %v2186_v23, %v2110_v3 }
 0x2c2   : > { %2740 = vmatmul.f32.gmra.mxu0 %v6372_v48  ;;  %v2244_v52 = vadd.f32 %v2243_v17, %v2187_v50 }
 0x2c3   : > { %2793 = vmatmul.f32.gmra.mxu1 %v6348_v18  ;;  %2975 = vmatmul.f32.gmra.mxu3 %v6372_v48  ;;  %v2247_v38 = vpop.f32.mrf.mxu3  ;;  %v2029_v18 = vadd.f32 %v2028_v45, %v7590_v1  ;;  %v2092_v1 = vadd.f32 %v6567_v6, %v2024_v56 }
 0x2c4   : > { %v2048_v44 = vpop.f32.mrf.mxu0  ;;  %v2277_v0 = vmax.f32 %v2244_v52, 0.0  ;;  %v7597_v52 = vld [vmem:[#allocation9_spill] sm:$0xff] }
 0x2c5   : > { %2882 = vmatmul.f32.gmra.mxu2 %v7587_v43  ;;  %v2115_v63 = vpop.f32.mrf.mxu1  ;;  %v2190_v51 = vpop.f32.mrf.mxu2  ;;  %v2098_v43 = vadd.f32 %v2097_v4, %v2029_v18  ;;  %v2049_v29 = vadd.f32 %v2048_v44, %v1976_v22  ;;  %v2175_v45 = vadd.f32 %v6569_v42, %v2092_v1  ;;  %v7592_v44 = vld [vmem:[#allocation16_spill] sm:$0xff]  ;;  %v195_v4 = vld [vmem:[%s7169_s2] sm:$0x1]  ;;  %v2273_v42 = vmax.f32 %v2240_v40, 0.0 }
 0x2c6   : > { %v2116_v20 = vadd.f32 %v2115_v63, %v2044_v36  ;;  %v6632_v10 = vand.u32 4294901760, %v2277_v0  ;;  %v7594_v22 = vand.u32 4294901760, %v6456_v8  ;;  %v7596_v1 = vand.u32 4294901760, %v6495_v13 }
 0x2c7   : > { %v2179_v63 = vadd.f32 %v2178_v37, %v2098_v43  ;;  %v6638_v61 = vand.u32 4294901760, %v2273_v42  ;;  %v7599_v13 = vand.u32 4294901760, %v6509_v49  ;;  %v7600_v49 = vand.u32 4294901760, %v6521_v53 }
 0x2c8   : > { %v2191_v60 = vadd.f32 %v2190_v51, %v2116_v20  ;;  %v6650_v8 = vsub.f32 %v2277_v0, %v6632_v10 }
 0x2c9   : > { %v2236_v6 = vadd.f32 %v6586_v7, %v2179_v63  ;;  %v2232_v7 = vadd.f32 %v6561_v32, %v2175_v45  ;;  %v6666_v40 = vsub.f32 %v2273_v42, %v6638_v61  ;;  %v2257_v45 = vmax.f32 %v6503_v28, 0.0 }
 0x2ca   : > { %2744 = vmatmul.f32.gmra.mxu0 %v6392_v11  ;;  %v2248_v27 = vadd.f32 %v2247_v38, %v2191_v60  ;;  %v4632_v38 = vmov 5  }
 0x2cb   : > { %2797 = vmatmul.f32.gmra.mxu1 %v6372_v48  ;;  %2979 = vmatmul.f32.gmra.mxu3 %v6392_v11  ;;  %v2251_v21 = vpop.f32.mrf.mxu3  ;;  %v2269_v14 = vmax.f32 %v2236_v6, 0.0  ;;  %v7334_v6 = vand.u32 4294901760, %v6650_v8 }
 0x2cc   : > { %v2381_v20 = vpop.f32.mrf.mxu0  ;;  %v2281_v18 = vmax.f32 %v2248_v27, 0.0  ;;  %4517 = vset.pattern.permute.xlu0 %v4632_v38 }
 0x2cd   : > { %2890 = vmatmul.f32.gmra.mxu2 %v6426_v19  ;;  %v2121_v3 = vpop.f32.mrf.mxu1  ;;  %v2194_v5 = vpop.f32.mrf.mxu2  ;;  %v2382_v43 = vadd.f32 %v2381_v20, %v6615_v26  ;;  %4317 = vperm.xlu0 %4517, %v195_v4   ;;  %v6659_v47 = vand.u32 4294901760, %v2269_v14  ;;  %v7601_v4 = vand.u32 4294901760, %v6535_v62  ;;  %v7602_v62 = vand.u32 4294901760, %v6545_v46  ;;  %v7604_v46 = vld [vmem:[#allocation45_spill] sm:$0xff] }
 0x2ce   : > { %v2122_v51 = vadd.f32 %v2121_v3, %v2049_v29  ;;  %v6626_v37 = vand.u32 4294901760, %v2281_v18  ;;  %v2265_v29 = vmax.f32 %v2232_v7, 0.0  ;;  %v6656_v3 = vpop.permute.xlu1 %2300 }
 0x2cf   : > { %v6688_v28 = vsub.f32 %v2269_v14, %v6659_v47 }
 0x2d0   : > { %v2195_v36 = vadd.f32 %v2194_v5, %v2122_v51  ;;  %v2261_v5 = vmax.f32 %v6553_v31, 0.0  ;;  %v7598_v51 = vld [vmem:[#allocation48_spill] sm:$0xff]  ;;  %v6676_v0 = vand.u32 4294901760, %v2265_v29 }
 0x2d1   : > { %v7332_v14 = vand.u32 4294901760, %v6688_v28 }
 0x2d2   : > { %3017 = vmatmul.f32.vlgmr.msra.gmra.mxu0 %v7592_v44  ;;  %v2252_v60 = vadd.f32 %v2251_v21, %v2195_v36  ;;  %v6641_v21 = vsub.f32 %v2281_v18, %v6626_v37  ;;  %v6701_v7 = vsub.f32 %v2265_v29, %v6676_v0 }
 0x2d3   : > { %2801 = vmatmul.f32.gmra.mxu1 %v6392_v11  ;;  %3227 = vmatmul.f32.vlgmr.msra.gmra.mxu3 %v6148_v12  ;;  %v2630_v2 = vpop.f32.mrf.mxu3 }
 0x2d4   : > { %3594 = vmatpush.msra.mxu0 %v7593_v34  ;;  %v2285_v33 = vmax.f32 %v2252_v60, 0.0  ;;  %v7335_v36 = vand.u32 4294901760, %v6641_v21  ;;  %v7333_v34 = vand.u32 4294901760, %v6666_v40 }
 0x2d5   : > { %3170 = vmatmul.f32.vlgmr.msra.gmra.mxu2 %v6148_v12  ;;  %v2389_v54 = vpop.f32.mrf.mxu0  ;;  %v2564_v17 = vpop.f32.mrf.mxu2 }
 0x2d6   : > { %v6634_v23 = vand.u32 4294901760, %v2285_v33  ;;  %3598 = vmatpush.msra.mxu0 %v7594_v22  ;;  %v2498_v50 = vpop.f32.mrf.mxu1  ;;  %v2390_v60 = vadd.f32 %v2389_v54, %v6656_v3  ;;  %v3819_v53 = vsub.f32 %v6641_v21, %v7335_v36  ;;  %v6707_v54 = vpop.permute.xlu2 %2304 }
 0x2d7   : > { %v2499_v56 = vadd.f32 %v2498_v50, %v2382_v43  ;;  %v6685_v43 = vand.u32 4294901760, %v2261_v5 }
 0x2d8   : > { %v6644_v32 = vsub.f32 %v2285_v33, %v6634_v23  ;;  %3602 = vmatpush.msra.mxu0 %v7595_v39  ;;  %3722 = vmatpush.msra.mxu2 %v6634_v23  ;;  %v6698_v33 = vand.u32 4294901760, %v2257_v45  ;;  %v3831_v39 = vsub.f32 %v6666_v40, %v7333_v34 }
 0x2d9   : > { %v2565_v27 = vadd.f32 %v2564_v17, %v2499_v56  ;;  %v3825_v17 = vsub.f32 %v6650_v8, %v7334_v6  ;;  %v6713_v22 = vsub.f32 %v2261_v5, %v6685_v43  ;;  %v3820_v56 = vand.u32 4294901760, %v3819_v53 }
 0x2da   : > { %v7336_v20 = vand.u32 4294901760, %v6644_v32  ;;  %3606 = vmatpush.msra.mxu0 %v7596_v1  ;;  %3724 = vmatpush.msra.mxu2 %v6626_v37  ;;  %v6724_v29 = vsub.f32 %v2257_v45, %v6698_v33  ;;  %v7331_v1 = vand.u32 4294901760, %v6701_v7 }
 0x2db   : > { %3022 = vmatmul.f32.gmra.mxu0 %v7597_v52  ;;  %3083 = vmatmul.f32.vlgmr.msra.gmra.mxu1 %v7598_v51  ;;  %v6663_v63 = vadd.f32 %v2630_v2, %v2565_v27  ;;  %v3826_v5 = vand.u32 4294901760, %v3825_v17 }
 0x2dc   : > { %3231 = vmatmul.f32.gmra.mxu3 %v6166_v30  ;;  %3610 = vmatpush.msra.mxu0 %v7599_v13  ;;  %v3813_v31 = vsub.f32 %v6644_v32, %v7336_v20  ;;  %v2636_v18 = vpop.f32.mrf.mxu3  ;;  %v7619_v20 = vld [vmem:[#allocation18_spill] sm:$0xff] }
 0x2dd   : > { %3665 = vmatpush.msra.mxu1 %v6453_v57  ;;  %3174 = vmatmul.f32.gmra.mxu2 %v6166_v30 }
 0x2de   : > { %3614 = vmatpush.msra.mxu0 %v7600_v49  ;;  %3726 = vmatpush.msra.mxu2 %v6632_v10  ;;  %v3814_v38 = vand.u32 4294901760, %v3813_v31 }
 0x2df   : > { %3667 = vmatpush.msra.mxu1 %v6444_v59  ;;  %v2397_v57 = vpop.f32.mrf.mxu0  ;;  %v2569_v2 = vpop.f32.mrf.mxu2 }
 0x2e0   : > { %3618 = vmatpush.msra.mxu0 %v7601_v4  ;;  %v2502_v42 = vpop.f32.mrf.mxu1  ;;  %3728 = vmatpush.msra.mxu2 %v6638_v61  ;;  %v2398_v27 = vadd.f32 %v2397_v57, %v6707_v54  ;;  %v7329_v57 = vand.u32 4294901760, %v6724_v29 }
 0x2e1   : > { %3669 = vmatpush.msra.mxu1 %v6451_v25  ;;  %v2503_v59 = vadd.f32 %v2502_v42, %v2390_v60  ;;  %3815 = vmatpush.msra.mxu3 %v3814_v38  ;;  %v7603_v25 = vld [vmem:[#allocation12_spill] sm:$0xff]  ;;  %v3832_v60 = vand.u32 4294901760, %v3831_v39  ;;  %v7606_v42 = vld [vmem:[#allocation41_spill] sm:$0xff] }
 0x2e2   : > { %3622 = vmatpush.msra.mxu0 %v7602_v62  ;;  %3730 = vmatpush.msra.mxu2 %v6659_v47 }
 0x2e3   : > { %3671 = vmatpush.msra.mxu1 %v6462_v35  ;;  %v2570_v50 = vadd.f32 %v2569_v2, %v2503_v59  ;;  %3027 = vmatmul.f32.gmra.mxu0 %v7603_v25  ;;  %v6745_v2 = vpop.permute.xlu1 %2308  ;;  %v7607_v59 = vld [vmem:[#allocation51_spill] sm:$0xff] }
 0x2e4   : > { %3089 = vmatmul.f32.gmra.mxu1 %v7604_v46  ;;  %3235 = vmatmul.f32.gmra.mxu3 %v6223_v16  ;;  %7605 = vst [vmem:[#allocation59_spill] sm:$0xff] %v6745_v2 }
 0x2e5   : > { %3673 = vmatpush.msra.mxu1 %v6476_v55  ;;  %v6727_v35 = vadd.f32 %v2636_v18, %v2570_v50  ;;  %3178 = vmatmul.f32.gmra.mxu2 %v6223_v16  ;;  %v3837_v55 = vsub.f32 %v6688_v28, %v7332_v14  ;;  %v7330_v18 = vand.u32 4294901760, %v6713_v22  ;;  %v3855_v50 = vsub.f32 %v6724_v29, %v7329_v57  ;;  %v7617_v14 = vld [vmem:[#allocation24_spill] sm:$0xff] }
 0x2e6   : > { %3732 = vmatpush.msra.mxu2 %v6676_v0  ;;  %3821 = vmatpush.msra.mxu3 %v3820_v56  ;;  %v2642_v13 = vpop.f32.mrf.mxu3 }
 0x2e7   : > { %3675 = vmatpush.msra.mxu1 %v6486_v58  ;;  %v2405_v31 = vpop.f32.mrf.mxu0  ;;  %v3843_v58 = vsub.f32 %v6701_v7, %v7331_v1  ;;  %v3838_v53 = vand.u32 4294901760, %v3837_v55 }
 0x2e8   : > { %3734 = vmatpush.msra.mxu2 %v6685_v43  ;;  %3827 = vmatpush.msra.mxu3 %v3826_v5  ;;  %v2506_v45 = vpop.f32.mrf.mxu1  ;;  %v2574_v49 = vpop.f32.mrf.mxu2 }
 0x2e9   : > { %3677 = vmatpush.msra.mxu1 %v6511_v41  ;;  %v2507_v38 = vadd.f32 %v2506_v45, %v2398_v27  ;;  %v3849_v41 = vsub.f32 %v6713_v22, %v7330_v18  ;;  %v3844_v17 = vand.u32 4294901760, %v3843_v58 }
 0x2ea   : > { %3736 = vmatpush.msra.mxu2 %v6698_v33  ;;  %3833 = vmatpush.msra.mxu3 %v3832_v60  ;;  %v3856_v60 = vand.u32 4294901760, %v3855_v50 }
 0x2eb   : > { %3679 = vmatpush.msra.mxu1 %v6524_v24  ;;  %v2575_v4 = vadd.f32 %v2574_v49, %v2507_v38  ;;  %3032 = vmatmul.f32.gmra.mxu0 %v7606_v42  ;;  %v2406_v24 = vadd.f32 %v2405_v31, %v6745_v2  ;;  %v3850_v39 = vand.u32 4294901760, %v3849_v41  ;;  %v7609_v38 = vld [vmem:[#allocation39_spill] sm:$0xff]  ;;  %v7610_v31 = vld [vmem:[#allocation36_spill] sm:$0xff]  ;;  %v7620_v2 = vld [vmem:[#allocation46_spill] sm:$0xff] }
 0x2ec   : > { %3095 = vmatmul.f32.gmra.mxu1 %v7607_v59  ;;  %3239 = vmatmul.f32.gmra.mxu3 %v6266_v15 }
 0x2ed   : > { %3839 = vmatpush.msra.mxu3 %v3838_v53  ;;  %v6754_v62 = vadd.f32 %v2642_v13, %v2575_v4  ;;  %3182 = vmatmul.f32.gmra.mxu2 %v6266_v15  ;;  %v6761_v13 = vpop.permute.xlu2 %2312 }
 0x2ee   : > { %v2648_v56 = vpop.f32.mrf.mxu3  ;;  %7608 = vst [vmem:[#allocation15_spill] sm:$0xff] %v6761_v13 }
 0x2ef   : > { %3845 = vmatpush.msra.mxu3 %v3844_v17  ;;  %v2413_v27 = vpop.f32.mrf.mxu0 }
 0x2f0   : > { %v2510_v5 = vpop.f32.mrf.mxu1  ;;  %v2579_v55 = vpop.f32.mrf.mxu2  ;;  %v2414_v4 = vadd.f32 %v2413_v27, %v6761_v13 }
 0x2f1   : > { %3851 = vmatpush.msra.mxu3 %v3850_v39  ;;  %v2511_v45 = vadd.f32 %v2510_v5, %v2406_v24  ;;  %v6770_v39 = vpop.permute.xlu0 %2316 }
 0x2f2   : > { %7611 = vst [vmem:[#allocation43_spill] sm:$0xff] %v6770_v39 }
 0x2f3   : > { %3857 = vmatpush.msra.mxu3 %v3856_v60  ;;  %v2580_v49 = vadd.f32 %v2579_v55, %v2511_v45  ;;  %3037 = vmatmul.f32.gmra.mxu0 %v7609_v38  ;;  %v7612_v55 = vld [vmem:[#allocation52_spill] sm:$0xff]  ;;  %v7613_v45 = vld [vmem:[#allocation58_spill] sm:$0xff]  ;;  %v7614_v60 = vld [vmem:[#allocation55_spill] sm:$0xff] }
 0x2f4   : > { %3101 = vmatmul.f32.gmra.mxu1 %v7610_v31  ;;  %3243 = vmatmul.f32.gmra.mxu3 %v6311_v9 }
 0x2f5   : > { %v6766_v58 = vadd.f32 %v2648_v56, %v2580_v49  ;;  %3186 = vmatmul.f32.gmra.mxu2 %v6311_v9 }
 0x2f6   : > { %v2654_v53 = vpop.f32.mrf.mxu3 }
 0x2f7   : > { %v2421_v41 = vpop.f32.mrf.mxu0 }
 0x2f8   : > { %v2514_v17 = vpop.f32.mrf.mxu1  ;;  %v2584_v24 = vpop.f32.mrf.mxu2  ;;  %v2422_v27 = vadd.f32 %v2421_v41, %v6770_v39 }
 0x2f9   : > { %v2515_v50 = vadd.f32 %v2514_v17, %v2414_v4  ;;  %v6779_v17 = vpop.permute.xlu1 %2320 }
 0x2fa   : > { %7615 = vst [vmem:[#allocation14_spill] sm:$0xff] %v6779_v17 }
 0x2fb   : > { %v2585_v5 = vadd.f32 %v2584_v24, %v2515_v50  ;;  %3042 = vmatmul.f32.gmra.mxu0 %v7612_v55  ;;  %v7616_v50 = vld [vmem:[#allocation17_spill] sm:$0xff] }
 0x2fc   : > { %3107 = vmatmul.f32.gmra.mxu1 %v7613_v45  ;;  %3247 = vmatmul.f32.gmra.mxu3 %v7614_v60 }
 0x2fd   : > { %v6775_v56 = vadd.f32 %v2654_v53, %v2585_v5  ;;  %3190 = vmatmul.f32.gmra.mxu2 %v7614_v60 }
 0x2fe   : > { %v2660_v49 = vpop.f32.mrf.mxu3 }
 0x2ff   : > { %v2429_v57 = vpop.f32.mrf.mxu0 }
 0x300   : > { %v2518_v18 = vpop.f32.mrf.mxu1  ;;  %v2589_v1 = vpop.f32.mrf.mxu2  ;;  %v2430_v41 = vadd.f32 %v2429_v57, %v6779_v17 }
 0x301   : > { %v2519_v4 = vadd.f32 %v2518_v18, %v2422_v27  ;;  %v6788_v27 = vpop.permute.xlu2 %2324 }
 0x303   : > { %v2590_v24 = vadd.f32 %v2589_v1, %v2519_v4  ;;  %3047 = vmatmul.f32.gmra.mxu0 %v7616_v50  ;;  %v7618_v4 = vld [vmem:[#allocation8_spill] sm:$0xff] }
 0x304   : > { %3113 = vmatmul.f32.gmra.mxu1 %v7617_v14  ;;  %3251 = vmatmul.f32.gmra.mxu3 %v6372_v48 }
 0x305   : > { %v6784_v53 = vadd.f32 %v2660_v49, %v2590_v24  ;;  %3194 = vmatmul.f32.gmra.mxu2 %v6372_v48 }
 0x306   : > { %v2666_v5 = vpop.f32.mrf.mxu3 }
 0x307   : > { %v2437_v34 = vpop.f32.mrf.mxu0 }
 0x308   : > { %v2522_v6 = vpop.f32.mrf.mxu1  ;;  %v2594_v36 = vpop.f32.mrf.mxu2  ;;  %v2438_v57 = vadd.f32 %v2437_v34, %v6788_v27 }
 0x309   : > { %v2523_v18 = vadd.f32 %v2522_v6, %v2430_v41 }
 0x30b   : > { %v2595_v1 = vadd.f32 %v2594_v36, %v2523_v18  ;;  %3052 = vmatmul.f32.gmra.mxu0 %v7618_v4  ;;  %v7621_v36 = vld [vmem:[#allocation21_spill] sm:$0xff] }
 0x30c   : > { %3119 = vmatmul.f32.gmra.mxu1 %v7619_v20  ;;  %3255 = vmatmul.f32.gmra.mxu3 %v6392_v11 }
 0x30d   : > { %v6793_v49 = vadd.f32 %v2666_v5, %v2595_v1  ;;  %3198 = vmatmul.f32.gmra.mxu2 %v6392_v11 }
 0x30e   : > { %v2672_v24 = vpop.f32.mrf.mxu3 }
 0x30f   : > { %v2717_v17 = vpop.f32.mrf.mxu0 }
 0x310   : > { %v2526_v39 = vpop.f32.mrf.mxu1  ;;  %v2599_v13 = vpop.f32.mrf.mxu2 }
 0x311   : > { %v2527_v6 = vadd.f32 %v2526_v39, %v2438_v57  ;;  %v7623_v57 = vand.u32 4294901760, %v6641_v21 }
 0x313   : > { %v2600_v41 = vadd.f32 %v2599_v13, %v2527_v6  ;;  %3288 = vmatmul.f32.vlgmr.msrb.gmra.mxu0 %v7620_v2  ;;  %v7622_v13 = vand.u32 4294901760, %v6644_v32  ;;  %v7625_v6 = vld [vmem:[#allocation13_spill] sm:$0xff] }
 0x314   : > { %3125 = vmatmul.f32.gmra.mxu1 %v7621_v36  ;;  %3537 = vmatmul.f32.vlgmr.msrb.gmra.mxu3 %v7598_v51 }
 0x315   : > { %3901 = vmatpush.msrb.mxu0 %v6644_v32  ;;  %4119 = vmatpush.msrb.mxu3 %v6634_v23  ;;  %v6802_v5 = vadd.f32 %v2672_v24, %v2600_v41  ;;  %v2718_v24 = vadd.f32 %v2717_v17, %v6663_v63  ;;  %v7624_v32 = vand.u32 4294901760, %v6650_v8 }
 0x316   : > { %3471 = vmatmul.f32.vlgmr.msrb.gmra.mxu2 %v7592_v44  ;;  %v6805_v34 = vpop.f32.mrf.mxu3 }
 0x317   : > { %3904 = vmatpush.msrb.mxu0 %v6641_v21  ;;  %4048 = vmatpush.msrb.mxu2 %v7622_v13  ;;  %v2721_v39 = vpop.f32.mrf.mxu0  ;;  %v7626_v21 = vand.u32 4294901760, %v6666_v40  ;;  %v7627_v13 = vand.u32 4294901760, %v6688_v28 }
 0x318   : > { %4121 = vmatpush.msrb.mxu3 %v6626_v37  ;;  %v2774_v18 = vpop.f32.mrf.mxu1  ;;  %v6811_v1 = vpop.f32.mrf.mxu2  ;;  %v2722_v17 = vadd.f32 %v2721_v39, %v6727_v35 }
 0x319   : > { %3907 = vmatpush.msrb.mxu0 %v6650_v8  ;;  %4052 = vmatpush.msrb.mxu2 %v7623_v57  ;;  %v2775_v41 = vadd.f32 %v2774_v18, %v2718_v24  ;;  %v6840_v35 = vpop.permute.xlu0 %4200  ;;  %v6844_v39 = vpop.permute.xlu1 %4204 }
 0x31a   : > { %4123 = vmatpush.msrb.mxu3 %v6632_v10 }
 0x31b   : > { %3910 = vmatpush.msrb.mxu0 %v6666_v40  ;;  %4056 = vmatpush.msrb.mxu2 %v7624_v32  ;;  %v7629_v32 = vand.u32 4294901760, %v6713_v22 }
 0x31c   : > { %4125 = vmatpush.msrb.mxu3 %v6638_v61  ;;  %3296 = vmatmul.f32.gmra.mxu0 %v7625_v6 }
 0x31d   : > { %3405 = vmatmul.f32.vlgmr.msrb.gmra.mxu1 %v6148_v12  ;;  %3913 = vmatpush.msrb.mxu0 %v6688_v28 }
 0x31e   : > { %3973 = vmatpush.msrb.mxu1 %v6634_v23  ;;  %4060 = vmatpush.msrb.mxu2 %v7626_v21  ;;  %v6828_v63 = vpop.f32.mrf.mxu3  ;;  %v4167_v23 = vmax.f32 %v2775_v41, 0.0 }
 0x31f   : > { %4127 = vmatpush.msrb.mxu3 %v6659_v47  ;;  %3916 = vmatpush.msrb.mxu0 %v6701_v7  ;;  %v2725_v8 = vpop.f32.mrf.mxu0 }
 0x320   : > { %3975 = vmatpush.msrb.mxu1 %v6626_v37  ;;  %4064 = vmatpush.msrb.mxu2 %v7627_v13  ;;  %v2778_v18 = vpop.f32.mrf.mxu1  ;;  %v6836_v57 = vpop.f32.mrf.mxu2  ;;  %v7628_v37 = vand.u32 4294901760, %v6701_v7  ;;  %v4231_v24 = vmul.f32 %v6840_v35, %v4167_v23  ;;  %v7630_v7 = vld [vmem:[#allocation20_spill] sm:$0xff]  ;;  %v2726_v21 = vadd.f32 %v2725_v8, %v6754_v62 }
 0x321   : > { %4129 = vmatpush.msrb.mxu3 %v6676_v0  ;;  %3476 = vmatmul.f32.gmra.mxu2 %v7597_v52  ;;  %v2779_v40 = vadd.f32 %v2778_v18, %v2722_v17  ;;  %v7631_v17 = vand.u32 4294901760, %v6724_v29 }
 0x322   : > { %3919 = vmatpush.msrb.mxu0 %v6713_v22  ;;  %3977 = vmatpush.msrb.mxu1 %v6632_v10 }
 0x323   : > { %4068 = vmatpush.msrb.mxu2 %v7628_v37  ;;  %4131 = vmatpush.msrb.mxu3 %v6685_v43  ;;  %v4171_v28 = vmax.f32 %v2779_v40, 0.0  ;;  %v6869_v40 = vpop.permute.xlu2 %4208 }
 0x324   : > { %3543 = vmatmul.f32.gmra.mxu3 %v7604_v46  ;;  %3922 = vmatpush.msrb.mxu0 %v6724_v29 }
 0x325   : > { %3979 = vmatpush.msrb.mxu1 %v6638_v61  ;;  %4072 = vmatpush.msrb.mxu2 %v7629_v32  ;;  %v4235_v10 = vmul.f32 %v6844_v39, %v4171_v28 }
 0x326   : > { %4133 = vmatpush.msrb.mxu3 %v6698_v33  ;;  %3304 = vmatmul.f32.gmra.mxu0 %v7630_v7  ;;  %v6858_v41 = vpop.f32.mrf.mxu3 }
 0x327   : > { %3409 = vmatmul.f32.gmra.mxu1 %v6166_v30  ;;  %4076 = vmatpush.msrb.mxu2 %v7631_v17  ;;  %v4263_v13 = vadd.f32 %v4235_v10, %v4231_v24  ;;  %v2729_v61 = vpop.f32.mrf.mxu0  ;;  %v6883_v10 = vpop.permute.xlu1 %4212  ;;  %v7633_v17 = vld [vmem:[#allocation11_spill] sm:$0xff] }
 0x328   : > { %3981 = vmatpush.msrb.mxu1 %v6659_v47  ;;  %v2782_v22 = vpop.f32.mrf.mxu1  ;;  %v6865_v18 = vpop.f32.mrf.mxu2  ;;  %v7632_v47 = vld [vmem:[#allocation32_spill] sm:$0xff]  ;;  %v2730_v37 = vadd.f32 %v2729_v61, %v6766_v58 }
 0x329   : > { %3481 = vmatmul.f32.gmra.mxu2 %v7603_v25  ;;  %v2783_v23 = vadd.f32 %v2782_v22, %v2726_v21 }
 0x32a   : > { %3983 = vmatpush.msrb.mxu1 %v6676_v0 }
 0x32b   : > { %v4175_v62 = vmax.f32 %v2783_v23, 0.0 }
 0x32c   : > { %3985 = vmatpush.msrb.mxu1 %v6685_v43  ;;  %3549 = vmatmul.f32.gmra.mxu3 %v7607_v59 }
 0x32d   : > { %v4239_v29 = vmul.f32 %v6869_v40, %v4175_v62 }
 0x32e   : > { %3987 = vmatpush.msrb.mxu1 %v6698_v33  ;;  %3312 = vmatmul.f32.gmra.mxu0 %v7632_v47  ;;  %v6876_v8 = vpop.f32.mrf.mxu3 }
 0x32f   : > { %3413 = vmatmul.f32.gmra.mxu1 %v6223_v16  ;;  %v4264_v0 = vadd.f32 %v4263_v13, %v4239_v29  ;;  %v2733_v28 = vpop.f32.mrf.mxu0 }
 0x330   : > { %v2786_v24 = vpop.f32.mrf.mxu1  ;;  %v6880_v32 = vpop.f32.mrf.mxu2  ;;  %v2734_v13 = vadd.f32 %v2733_v28, %v6775_v56 }
 0x331   : > { %3486 = vmatmul.f32.gmra.mxu2 %v7606_v42  ;;  %v2787_v43 = vadd.f32 %v2786_v24, %v2730_v37  ;;  %v6895_v37 = vpop.permute.xlu2 %4216 }
 0x333   : > { %v4179_v21 = vmax.f32 %v2787_v43, 0.0 }
 0x334   : > { %3555 = vmatmul.f32.gmra.mxu3 %v7610_v31 }
 0x335   : > { %v4243_v33 = vmul.f32 %v6883_v10, %v4179_v21  ;;  %v7634_v21 = vld [vmem:[#allocation19_spill] sm:$0xff] }
 0x336   : > { %3320 = vmatmul.f32.gmra.mxu0 %v7633_v17  ;;  %v6888_v58 = vpop.f32.mrf.mxu3 }
 0x337   : > { %3417 = vmatmul.f32.gmra.mxu1 %v6266_v15  ;;  %v4265_v61 = vadd.f32 %v4264_v0, %v4243_v33  ;;  %v2737_v22 = vpop.f32.mrf.mxu0 }
 0x338   : > { %v2790_v23 = vpop.f32.mrf.mxu1  ;;  %v6892_v62 = vpop.f32.mrf.mxu2  ;;  %v2738_v0 = vadd.f32 %v2737_v22, %v6784_v53 }
 0x339   : > { %3491 = vmatmul.f32.gmra.mxu2 %v7609_v38  ;;  %v2791_v29 = vadd.f32 %v2790_v23, %v2734_v13  ;;  %v6907_v23 = vpop.permute.xlu0 %4220 }
 0x33b   : > { %v4183_v24 = vmax.f32 %v2791_v29, 0.0 }
 0x33c   : > { %3561 = vmatmul.f32.gmra.mxu3 %v7613_v45  ;;  %v7635_v45 = vld [vmem:[#allocation23_spill] sm:$0xff] }
 0x33d   : > { %v4247_v43 = vmul.f32 %v6895_v37, %v4183_v24 }
 0x33e   : > { %3328 = vmatmul.f32.gmra.mxu0 %v7634_v21  ;;  %v6900_v56 = vpop.f32.mrf.mxu3 }
 0x33f   : > { %3421 = vmatmul.f32.gmra.mxu1 %v6311_v9  ;;  %v4266_v28 = vadd.f32 %v4265_v61, %v4247_v43  ;;  %v2741_v33 = vpop.f32.mrf.mxu0 }
 0x340   : > { %v2794_v31 = vpop.f32.mrf.mxu1  ;;  %v6904_v38 = vpop.f32.mrf.mxu2  ;;  %v2742_v61 = vadd.f32 %v2741_v33, %v6793_v49 }
 0x341   : > { %3496 = vmatmul.f32.gmra.mxu2 %v7612_v55  ;;  %v2795_v13 = vadd.f32 %v2794_v31, %v2738_v0  ;;  %v6919_v0 = vpop.permute.xlu1 %4224 }
 0x343   : > { %v4187_v29 = vmax.f32 %v2795_v13, 0.0 }
 0x344   : > { %3567 = vmatmul.f32.gmra.mxu3 %v7617_v14 }
 0x345   : > { %v4251_v24 = vmul.f32 %v6907_v23, %v4187_v29 }
 0x346   : > { %3336 = vmatmul.f32.gmra.mxu0 %v7635_v45  ;;  %v6912_v53 = vpop.f32.mrf.mxu3 }
 0x347   : > { %3425 = vmatmul.f32.gmra.mxu1 %v7614_v60  ;;  %v2745_v22 = vpop.f32.mrf.mxu0  ;;  %v4267_v43 = vadd.f32 %v4266_v28, %v4251_v24 }
 0x348   : > { %v2798_v59 = vpop.f32.mrf.mxu1  ;;  %v6916_v55 = vpop.f32.mrf.mxu2  ;;  %v2746_v33 = vadd.f32 %v2745_v22, %v6802_v5 }
 0x349   : > { %3501 = vmatmul.f32.gmra.mxu2 %v7616_v50  ;;  %v2799_v31 = vadd.f32 %v2798_v59, %v2742_v61  ;;  %v2836_v59 = vadd.f32 %v6811_v1, %v6615_v26 }
 0x34b   : > { %v4191_v13 = vmax.f32 %v2799_v31, 0.0  ;;  %v6933_v31 = vpop.permute.xlu2 %4228  ;;  %v2953_v5 = vadd.f32 %v6805_v34, %v2836_v59 }
 0x34c   : > { %3573 = vmatmul.f32.gmra.mxu3 %v7619_v20 }
 0x34d   : > { %v4255_v29 = vmul.f32 %v6919_v0, %v4191_v13 }
 0x34e   : > { %3344 = vmatmul.f32.gmra.mxu0 %v6426_v19  ;;  %v6924_v49 = vpop.f32.mrf.mxu3 }
 0x34f   : > { %3429 = vmatmul.f32.gmra.mxu1 %v6372_v48  ;;  %v4268_v28 = vadd.f32 %v4267_v43, %v4255_v29  ;;  %v3018_v24 = vpop.f32.mrf.mxu0 }
 0x350   : > { %v2802_v14 = vpop.f32.mrf.mxu1  ;;  %v6928_v50 = vpop.f32.mrf.mxu2  ;;  %v3019_v29 = vadd.f32 %v3018_v24, %v2953_v5 }
 0x351   : > { %3506 = vmatmul.f32.gmra.mxu2 %v7618_v4  ;;  %v2803_v61 = vadd.f32 %v2802_v14, %v2746_v33 }
 0x353   : > { %v4195_v13 = vmax.f32 %v2803_v61, 0.0  ;;  %v2844_v61 = vadd.f32 %v6836_v57, %v6656_v3  ;;  %v2852_v57 = vadd.f32 %v6865_v18, %v6707_v54 }
 0x354   : > { %3579 = vmatmul.f32.gmra.mxu3 %v7621_v36 }
 0x355   : > { %v4259_v22 = vmul.f32 %v6933_v31, %v4195_v13  ;;  %v2957_v13 = vadd.f32 %v6828_v63, %v2844_v61  ;;  %v2961_v63 = vadd.f32 %v6858_v41, %v2852_v57 }
 0x356   : > { %3624 = vmatmul.f32.vlgmr.msra.gmra.mxu0 %v6148_v12  ;;  %v3228_v43 = vpop.f32.mrf.mxu3 }
 0x357   : > { %3433 = vmatmul.f32.gmra.mxu1 %v6392_v11  ;;  %v6940_v20 = vadd.f32 %v4268_v28, %v4259_v22 }
 0x358   : > { %v3023_v1 = vpop.f32.mrf.mxu0  ;;  %v3084_v4 = vpop.f32.mrf.mxu1 }
 0x359   : > { %3742 = vmatmul.f32.vlgmr.msra.gmra.mxu2 %v7620_v2  ;;  %v3085_v14 = vadd.f32 %v3084_v4, %v3019_v29  ;;  %v3171_v33 = vpop.f32.mrf.mxu2  ;;  %v3024_v24 = vadd.f32 %v3023_v1, %v2957_v13  ;;  %v7636_v13 = vld [vmem:[#allocation59_spill] sm:$0xff] }
 0x35b   : > { %v3172_v34 = vadd.f32 %v3171_v33, %v3085_v14 }
 0x35c   : > { %3859 = vmatmul.f32.vlgmr.msra.gmra.mxu3 %v6148_v12 }
 0x35d   : > { %v3229_v59 = vadd.f32 %v3228_v43, %v3172_v34 }
 0x35e   : > { %3628 = vmatmul.f32.gmra.mxu0 %v6166_v30 }
 0x35f   : > { %3681 = vmatmul.f32.vlgmr.msra.gmra.mxu1 %v6148_v12  ;;  %v3232_v28 = vpop.f32.mrf.mxu3  ;;  %v4168_v29 = vmax.f32 %v3229_v59, 0.0 }
 0x360   : > { %v3028_v5 = vpop.f32.mrf.mxu0 }
 0x361   : > { %3750 = vmatmul.f32.gmra.mxu2 %v7625_v6  ;;  %v3090_v2 = vpop.f32.mrf.mxu1  ;;  %v3175_v4 = vpop.f32.mrf.mxu2  ;;  %v3029_v33 = vadd.f32 %v3028_v5, %v2961_v63 }
 0x362   : > { %v3091_v22 = vadd.f32 %v3090_v2, %v3024_v24  ;;  %v2860_v24 = vadd.f32 %v6880_v32, %v7636_v13  ;;  %v4232_v2 = vmul.f32 %v6840_v35, %v4168_v29 }
 0x364   : > { %3863 = vmatmul.f32.gmra.mxu3 %v6166_v30  ;;  %v3176_v43 = vadd.f32 %v3175_v4, %v3091_v22  ;;  %v2965_v5 = vadd.f32 %v6876_v8, %v2860_v24 }
 0x366   : > { %3632 = vmatmul.f32.gmra.mxu0 %v6223_v16  ;;  %v3233_v14 = vadd.f32 %v3232_v28, %v3176_v43 }
 0x367   : > { %3685 = vmatmul.f32.gmra.mxu1 %v6166_v30  ;;  %v3236_v1 = vpop.f32.mrf.mxu3 }
 0x368   : > { %v4172_v6 = vmax.f32 %v3233_v14, 0.0  ;;  %v3033_v61 = vpop.f32.mrf.mxu0  ;;  %v7637_v14 = vld [vmem:[#allocation15_spill] sm:$0xff] }
 0x369   : > { %3758 = vmatmul.f32.gmra.mxu2 %v7630_v7  ;;  %v3096_v34 = vpop.f32.mrf.mxu1  ;;  %v3179_v18 = vpop.f32.mrf.mxu2  ;;  %v3034_v22 = vadd.f32 %v3033_v61, %v2965_v5 }
 0x36a   : > { %v4236_v41 = vmul.f32 %v6844_v39, %v4172_v6  ;;  %v3097_v59 = vadd.f32 %v3096_v34, %v3029_v33  ;;  %v2868_v33 = vadd.f32 %v6892_v62, %v7637_v14 }
 0x36c   : > { %v4276_v4 = vadd.f32 %v4236_v41, %v4232_v2  ;;  %3867 = vmatmul.f32.gmra.mxu3 %v6223_v16  ;;  %v3180_v28 = vadd.f32 %v3179_v18, %v3097_v59  ;;  %v2969_v18 = vadd.f32 %v6888_v58, %v2868_v33 }
 0x36e   : > { %3636 = vmatmul.f32.gmra.mxu0 %v6266_v15  ;;  %v3237_v57 = vadd.f32 %v3236_v1, %v3180_v28  ;;  %v7638_v28 = vld [vmem:[#allocation43_spill] sm:$0xff] }
 0x36f   : > { %3689 = vmatmul.f32.gmra.mxu1 %v6223_v16  ;;  %v3240_v7 = vpop.f32.mrf.mxu3 }
 0x370   : > { %v4176_v43 = vmax.f32 %v3237_v57, 0.0  ;;  %v3038_v32 = vpop.f32.mrf.mxu0 }
 0x371   : > { %3766 = vmatmul.f32.gmra.mxu2 %v7632_v47  ;;  %v3102_v63 = vpop.f32.mrf.mxu1  ;;  %v3183_v29 = vpop.f32.mrf.mxu2  ;;  %v3039_v24 = vadd.f32 %v3038_v32, %v2969_v18 }
 0x372   : > { %v4240_v6 = vmul.f32 %v6869_v40, %v4176_v43  ;;  %v3103_v34 = vadd.f32 %v3102_v63, %v3034_v22 }
 0x374   : > { %v4277_v8 = vadd.f32 %v4276_v4, %v4240_v6  ;;  %3871 = vmatmul.f32.gmra.mxu3 %v6266_v15  ;;  %v3184_v1 = vadd.f32 %v3183_v29, %v3103_v34  ;;  %v2876_v4 = vadd.f32 %v6904_v38, %v7638_v28  ;;  %v7639_v6 = vld [vmem:[#allocation14_spill] sm:$0xff] }
 0x375   : > { %v2884_v34 = vadd.f32 %v6916_v55, %v7639_v6 }
 0x376   : > { %3640 = vmatmul.f32.gmra.mxu0 %v6311_v9  ;;  %v3241_v61 = vadd.f32 %v3240_v7, %v3184_v1  ;;  %v2973_v22 = vadd.f32 %v6900_v56, %v2876_v4 }
 0x377   : > { %3693 = vmatmul.f32.gmra.mxu1 %v6266_v15  ;;  %v3244_v47 = vpop.f32.mrf.mxu3 }
 0x378   : > { %v4180_v2 = vmax.f32 %v3241_v61, 0.0  ;;  %v3043_v41 = vpop.f32.mrf.mxu0  ;;  %v2977_v61 = vadd.f32 %v6912_v53, %v2884_v34 }
 0x379   : > { %3774 = vmatmul.f32.gmra.mxu2 %v7633_v17  ;;  %v3108_v62 = vpop.f32.mrf.mxu1  ;;  %v3187_v59 = vpop.f32.mrf.mxu2  ;;  %v3044_v32 = vadd.f32 %v3043_v41, %v2973_v22 }
 0x37a   : > { %v4244_v5 = vmul.f32 %v6883_v10, %v4180_v2  ;;  %v3109_v57 = vadd.f32 %v3108_v62, %v3039_v24 }
 0x37c   : > { %v4278_v58 = vadd.f32 %v4277_v8, %v4244_v5  ;;  %3875 = vmatmul.f32.gmra.mxu3 %v6311_v9  ;;  %v3188_v7 = vadd.f32 %v3187_v59, %v3109_v57  ;;  %v2892_v59 = vadd.f32 %v6928_v50, %v6788_v27 }
 0x37e   : > { %3644 = vmatmul.f32.gmra.mxu0 %v7614_v60  ;;  %v3245_v43 = vadd.f32 %v3244_v47, %v3188_v7 }
 0x37f   : > { %3697 = vmatmul.f32.gmra.mxu1 %v6311_v9  ;;  %v3248_v17 = vpop.f32.mrf.mxu3 }
 0x380   : > { %v4184_v63 = vmax.f32 %v3245_v43, 0.0  ;;  %v3048_v29 = vpop.f32.mrf.mxu0 }
 0x381   : > { %3782 = vmatmul.f32.gmra.mxu2 %v7634_v21  ;;  %v3114_v38 = vpop.f32.mrf.mxu1  ;;  %v3191_v33 = vpop.f32.mrf.mxu2  ;;  %v3049_v21 = vadd.f32 %v3048_v29, %v2977_v61 }
 0x382   : > { %v4248_v8 = vmul.f32 %v6895_v37, %v4184_v63  ;;  %v3115_v1 = vadd.f32 %v3114_v38, %v3044_v32  ;;  %v4270_v38 = vrot.slane %v6940_v20, 4 }
 0x384   : > { %v4279_v56 = vadd.f32 %v4278_v58, %v4248_v8  ;;  %3879 = vmatmul.f32.gmra.mxu3 %v7614_v60  ;;  %v3192_v18 = vadd.f32 %v3191_v33, %v3115_v1  ;;  %v2981_v58 = vadd.f32 %v6924_v49, %v2892_v59 }
 0x386   : > { %3648 = vmatmul.f32.gmra.mxu0 %v6372_v48  ;;  %v3249_v47 = vadd.f32 %v3248_v17, %v3192_v18 }
 0x387   : > { %3701 = vmatmul.f32.gmra.mxu1 %v7614_v60  ;;  %v3252_v41 = vpop.f32.mrf.mxu3 }
 0x388   : > { %v4188_v24 = vmax.f32 %v3249_v47, 0.0  ;;  %v3053_v2 = vpop.f32.mrf.mxu0 }
 0x389   : > { %3790 = vmatmul.f32.gmra.mxu2 %v7635_v45  ;;  %v3120_v55 = vpop.f32.mrf.mxu1  ;;  %v3195_v62 = vpop.f32.mrf.mxu2  ;;  %v3054_v45 = vadd.f32 %v3053_v2, %v2981_v58 }
 0x38a   : > { %v4252_v4 = vmul.f32 %v6907_v23, %v4188_v24  ;;  %v3121_v5 = vadd.f32 %v3120_v55, %v3049_v21 }
 0x38c   : > { %v4280_v53 = vadd.f32 %v4279_v56, %v4252_v4  ;;  %3883 = vmatmul.f32.gmra.mxu3 %v6372_v48  ;;  %v3196_v57 = vadd.f32 %v3195_v62, %v3121_v5 }
 0x38e   : > { %3652 = vmatmul.f32.gmra.mxu0 %v6392_v11  ;;  %v3253_v7 = vadd.f32 %v3252_v41, %v3196_v57 }
 0x38f   : > { %3705 = vmatmul.f32.gmra.mxu1 %v6372_v48  ;;  %v3256_v29 = vpop.f32.mrf.mxu3 }
 0x390   : > { %v4192_v22 = vmax.f32 %v3253_v7, 0.0  ;;  %v3289_v43 = vpop.f32.mrf.mxu0 }
 0x391   : > { %3798 = vmatmul.f32.gmra.mxu2 %v6426_v19  ;;  %v3126_v50 = vpop.f32.mrf.mxu1  ;;  %v3199_v17 = vpop.f32.mrf.mxu2  ;;  %v3290_v8 = vadd.f32 %v3289_v43, %v6615_v26  ;;  %v4271_v19 = vadd.f32 %v4270_v38, %v6940_v20 }
 0x392   : > { %v4256_v32 = vmul.f32 %v6919_v0, %v4192_v22  ;;  %v3127_v63 = vadd.f32 %v3126_v50, %v3054_v45 }
 0x393   : > { %v4272_v24 = vrot.slane %v4271_v19, 2 }
 0x394   : > { %v4281_v33 = vadd.f32 %v4280_v53, %v4256_v32  ;;  %3887 = vmatmul.f32.gmra.mxu3 %v6392_v11  ;;  %v3200_v49 = vadd.f32 %v3199_v17, %v3127_v63  ;;  %v7017_v17 = vpop.permute.xlu0 %4317 }
 0x395   : > { %v4273_v62 = vadd.f32 %v4272_v24, %v4271_v19  ;;  %v7640_v19 = vld [vmem:[#allocation51_spill] sm:$0xff] }
 0x396   : > { %3925 = vmatmul.f32.vlgmr.msrb.gmra.mxu0 %v7592_v44  ;;  %v3257_v34 = vadd.f32 %v3256_v29, %v3200_v49  ;;  %v7641_v24 = vld [vmem:[#allocation39_spill] sm:$0xff] }
 0x397   : > { %3709 = vmatmul.f32.gmra.mxu1 %v6392_v11  ;;  %v3538_v44 = vpop.f32.mrf.mxu3  ;;  %v4274_v57 = vrot.slane %v4273_v62, 1 }
 0x398   : > { %v4196_v1 = vmax.f32 %v3257_v34, 0.0 }
 0x399   : > { %4078 = vmatmul.f32.vlgmr.msrb.gmra.mxu2 %v6148_v12  ;;  %v3297_v56 = vpop.f32.mrf.mxu0  ;;  %v3472_v47 = vpop.f32.mrf.mxu2  ;;  %v4275_v43 = vadd.f32 %v4274_v57, %v4273_v62  ;;  %v7644_v57 = vld [vmem:[#allocation58_spill] sm:$0xff] }
 0x39a   : > { %v4260_v18 = vmul.f32 %v6933_v31, %v4196_v1  ;;  %v3406_v61 = vpop.f32.mrf.mxu1  ;;  %v3298_v4 = vadd.f32 %v3297_v56, %v6656_v3 }
 0x39b   : > { %v3407_v21 = vadd.f32 %v3406_v61, %v3290_v8 }
 0x39c   : > { %v4282_v2 = vadd.f32 %v4281_v33, %v4260_v18  ;;  %4135 = vmatmul.f32.vlgmr.msrb.gmra.mxu3 %v6148_v12 }
 0x39d   : > { %v3473_v41 = vadd.f32 %v3472_v47, %v3407_v21 }
 0x39e   : > { %v4283_v55 = vrot.slane %v4282_v2, 4  ;;  %3930 = vmatmul.f32.gmra.mxu0 %v7597_v52 }
 0x39f   : > { %3991 = vmatmul.f32.vlgmr.msrb.gmra.mxu1 %v7598_v51  ;;  %v7010_v20 = vadd.f32 %v3538_v44, %v3473_v41 }
 0x3a0   : > { %v4284_v59 = vadd.f32 %v4283_v55, %v4282_v2  ;;  %v7642_v2 = vld [vmem:[#allocation36_spill] sm:$0xff] }
 0x3a1   : > { %4082 = vmatmul.f32.gmra.mxu2 %v6166_v30 }
 0x3a2   : > { %v4285_v5 = vrot.slane %v4284_v59, 2 }
 0x3a3   : > { %v3305_v53 = vpop.f32.mrf.mxu0 }
 0x3a4   : > { %v4286_v58 = vadd.f32 %v4285_v5, %v4284_v59  ;;  %v3410_v12 = vpop.f32.mrf.mxu1  ;;  %4139 = vmatmul.f32.gmra.mxu3 %v6166_v30  ;;  %v3477_v7 = vpop.f32.mrf.mxu2  ;;  %v3306_v32 = vadd.f32 %v3305_v53, %v6707_v54  ;;  %v7643_v5 = vld [vmem:[#allocation52_spill] sm:$0xff] }
 0x3a5   : > { %v3411_v45 = vadd.f32 %v3410_v12, %v3298_v4 }
 0x3a6   : > { %v4287_v52 = vrot.slane %v4286_v58, 1  ;;  %3935 = vmatmul.f32.gmra.mxu0 %v7603_v25  ;;  %v4320_v25 = vadd.f32 %v7017_v17, %v4275_v43 }
 0x3a7   : > { %v3478_v51 = vadd.f32 %v3477_v7, %v3411_v45  ;;  %3997 = vmatmul.f32.gmra.mxu1 %v7604_v46  ;;  %v3544_v22 = vpop.f32.mrf.mxu3 }
 0x3a8   : > { %v4288_v50 = vadd.f32 %v4287_v52, %v4286_v58 }
 0x3a9   : > { %v7020_v63 = vadd.f32 %v3544_v22, %v3478_v51  ;;  %4086 = vmatmul.f32.gmra.mxu2 %v6223_v16  ;;  %v7645_v22 = vld [vmem:[#allocation17_spill] sm:$0xff] }
 0x3aa   : > { %v4321_v30 = vadd.f32 %v7017_v17, %v4288_v50  ;;  %v7646_v50 = vld [vmem:[#allocation24_spill] sm:$0xff] }
 0x3ab   : > { %v3313_v29 = vpop.f32.mrf.mxu0 }
 0x3ac   : > { %v4328_v38 = vrot.slane %v4321_v30, 7  ;;  %v3414_v33 = vpop.f32.mrf.mxu1  ;;  %4143 = vmatmul.f32.gmra.mxu3 %v6223_v16  ;;  %v3482_v46 = vpop.f32.mrf.mxu2  ;;  %v3314_v56 = vadd.f32 %v3313_v29, %v7636_v13 }
 0x3ad   : > { %v3415_v49 = vadd.f32 %v3414_v33, %v3306_v32 }
 0x3ae   : > { %3940 = vmatmul.f32.gmra.mxu0 %v7606_v42  ;;  %v7027_v34 = vsel %vm4331_vm1, %v4320_v25, %v4328_v38 }
 0x3af   : > { %v3483_v8 = vadd.f32 %v3482_v46, %v3415_v49  ;;  %4003 = vmatmul.f32.gmra.mxu1 %v7640_v19  ;;  %v3550_v1 = vpop.f32.mrf.mxu3  ;;  %v7647_v46 = vld [vmem:[#allocation8_spill] sm:$0xff] }
 0x3b1   : > { %v7031_v18 = vadd.f32 %v3550_v1, %v3483_v8  ;;  %4090 = vmatmul.f32.gmra.mxu2 %v6266_v15  ;;  %v7648_v8 = vld [vmem:[#allocation18_spill] sm:$0xff] }
 0x3b3   : > { %v3321_v61 = vpop.f32.mrf.mxu0 }
 0x3b4   : > { %v3418_v47 = vpop.f32.mrf.mxu1  ;;  %4147 = vmatmul.f32.gmra.mxu3 %v6266_v15  ;;  %v3487_v16 = vpop.f32.mrf.mxu2  ;;  %v3322_v41 = vadd.f32 %v3321_v61, %v7637_v14 }
 0x3b5   : > { %v3419_v21 = vadd.f32 %v3418_v47, %v3314_v56 }
 0x3b6   : > { %3945 = vmatmul.f32.gmra.mxu0 %v7641_v24 }
 0x3b7   : > { %v3488_v42 = vadd.f32 %v3487_v16, %v3419_v21  ;;  %4009 = vmatmul.f32.gmra.mxu1 %v7642_v2  ;;  %v3556_v44 = vpop.f32.mrf.mxu3 }
 0x3b9   : > { %v7038_v55 = vadd.f32 %v3556_v44, %v3488_v42  ;;  %4094 = vmatmul.f32.gmra.mxu2 %v6311_v9 }
 0x3bb   : > { %v3329_v62 = vpop.f32.mrf.mxu0 }
 0x3bc   : > { %v3422_v59 = vpop.f32.mrf.mxu1  ;;  %4151 = vmatmul.f32.gmra.mxu3 %v6311_v9  ;;  %v3492_v4 = vpop.f32.mrf.mxu2  ;;  %v3330_v12 = vadd.f32 %v3329_v62, %v7638_v28 }
 0x3bd   : > { %v3423_v15 = vadd.f32 %v3422_v59, %v3322_v41 }
 0x3be   : > { %3950 = vmatmul.f32.gmra.mxu0 %v7643_v5 }
 0x3bf   : > { %v3493_v53 = vadd.f32 %v3492_v4, %v3423_v15  ;;  %4015 = vmatmul.f32.gmra.mxu1 %v7644_v57  ;;  %v3562_v58 = vpop.f32.mrf.mxu3 }
 0x3c1   : > { %v7045_v7 = vadd.f32 %v3562_v58, %v3493_v53  ;;  %4098 = vmatmul.f32.gmra.mxu2 %v7614_v60 }
 0x3c3   : > { %v3337_v45 = vpop.f32.mrf.mxu0 }
 0x3c4   : > { %v3426_v52 = vpop.f32.mrf.mxu1  ;;  %4155 = vmatmul.f32.gmra.mxu3 %v7614_v60  ;;  %v3497_v51 = vpop.f32.mrf.mxu2  ;;  %v3338_v30 = vadd.f32 %v3337_v45, %v7639_v6 }
 0x3c5   : > { %v3427_v9 = vadd.f32 %v3426_v52, %v3330_v12 }
 0x3c6   : > { %3955 = vmatmul.f32.gmra.mxu0 %v7645_v22 }
 0x3c7   : > { %v3498_v43 = vadd.f32 %v3497_v51, %v3427_v9  ;;  %4021 = vmatmul.f32.gmra.mxu1 %v7646_v50  ;;  %v3568_v32 = vpop.f32.mrf.mxu3 }
 0x3c9   : > { %v7052_v29 = vadd.f32 %v3568_v32, %v3498_v43  ;;  %4102 = vmatmul.f32.gmra.mxu2 %v6372_v48 }
 0x3cb   : > { %v3345_v25 = vpop.f32.mrf.mxu0 }
 0x3cc   : > { %v3430_v38 = vpop.f32.mrf.mxu1  ;;  %4159 = vmatmul.f32.gmra.mxu3 %v6372_v48  ;;  %v3502_v33 = vpop.f32.mrf.mxu2  ;;  %v3346_v1 = vadd.f32 %v3345_v25, %v6788_v27 }
 0x3cd   : > { %v3431_v60 = vadd.f32 %v3430_v38, %v3338_v30 }
 0x3ce   : > { %3960 = vmatmul.f32.gmra.mxu0 %v7647_v46 }
 0x3cf   : > { %v3503_v49 = vadd.f32 %v3502_v33, %v3431_v60  ;;  %4027 = vmatmul.f32.gmra.mxu1 %v7648_v8  ;;  %v3574_v19 = vpop.f32.mrf.mxu3 }
 0x3d1   : > { %v7059_v56 = vadd.f32 %v3574_v19, %v3503_v49  ;;  %4106 = vmatmul.f32.gmra.mxu2 %v6392_v11 }
 0x3d3   : > { %v3625_v61 = vpop.f32.mrf.mxu0 }
 0x3d4   : > { %v3434_v47 = vpop.f32.mrf.mxu1  ;;  %v3626_v16 = vadd.f32 %v3625_v61, %v7010_v20  ;;  %4163 = vmatmul.f32.gmra.mxu3 %v6392_v11  ;;  %v3507_v48 = vpop.f32.mrf.mxu2 }
 0x3d5   : > { %v3435_v21 = vadd.f32 %v3434_v47, %v3346_v1 }
 0x3d7   : > { %v3508_v24 = vadd.f32 %v3507_v48, %v3435_v21  ;;  %4033 = vmatmul.f32.gmra.mxu1 %v7621_v36  ;;  %v3580_v42 = vpop.f32.mrf.mxu3 }
 0x3d9   : > { %v7065_v2 = vadd.f32 %v3580_v42, %v3508_v24 }
 0x3db   : > { %v3629_v44 = vpop.f32.mrf.mxu0 }
 0x3dc   : > { %v3630_v41 = vadd.f32 %v3629_v44, %v7020_v63  ;;  %v3682_v62 = vpop.f32.mrf.mxu1  ;;  %v3743_v59 = vpop.f32.mrf.mxu2 }
 0x3dd   : > { %v3683_v4 = vadd.f32 %v3682_v62, %v3626_v16  ;;  %v3744_v15 = vadd.f32 %v3743_v59, %v6615_v26 }
 0x3df   : > { %v3860_v5 = vpop.f32.mrf.mxu3  ;;  %v4169_v36 = vmax.f32 %v3683_v4, 0.0 }
 0x3e0   : > { %v7069_v20 = vadd.f32 %v3860_v5, %v3744_v15 }
 0x3e1   : > { %v4233_v9 = vmul.f32 %v6840_v35, %v4169_v36 }
 0x3e3   : > { %v3633_v11 = vpop.f32.mrf.mxu0 }
 0x3e4   : > { %v3634_v53 = vadd.f32 %v3633_v11, %v7031_v18  ;;  %v3686_v57 = vpop.f32.mrf.mxu1  ;;  %v3751_v58 = vpop.f32.mrf.mxu2 }
 0x3e5   : > { %v3687_v12 = vadd.f32 %v3686_v57, %v3630_v41  ;;  %v3752_v45 = vadd.f32 %v3751_v58, %v6656_v3 }
 0x3e7   : > { %v4173_v52 = vmax.f32 %v3687_v12, 0.0  ;;  %v3864_v51 = vpop.f32.mrf.mxu3 }
 0x3e8   : > { %v7073_v63 = vadd.f32 %v3864_v51, %v3752_v45 }
 0x3e9   : > { %v4237_v26 = vmul.f32 %v6844_v39, %v4173_v52 }
 0x3eb   : > { %v4289_v22 = vadd.f32 %v4237_v26, %v4233_v9  ;;  %v3637_v43 = vpop.f32.mrf.mxu0 }
 0x3ec   : > { %v3638_v50 = vadd.f32 %v3637_v43, %v7038_v55  ;;  %v3690_v32 = vpop.f32.mrf.mxu1  ;;  %v3759_v18 = vpop.f32.mrf.mxu2 }
 0x3ed   : > { %v3691_v30 = vadd.f32 %v3690_v32, %v3634_v53  ;;  %v3760_v25 = vadd.f32 %v3759_v18, %v6707_v54 }
 0x3ef   : > { %v4177_v38 = vmax.f32 %v3691_v30, 0.0  ;;  %v3868_v33 = vpop.f32.mrf.mxu3 }
 0x3f0   : > { %v7079_v3 = vadd.f32 %v3868_v33, %v3760_v25 }
 0x3f1   : > { %v4241_v60 = vmul.f32 %v6869_v40, %v4177_v38 }
 0x3f3   : > { %v4290_v46 = vadd.f32 %v4289_v22, %v4241_v60  ;;  %v3641_v49 = vpop.f32.mrf.mxu0 }
 0x3f4   : > { %v3642_v8 = vadd.f32 %v3641_v49, %v7045_v7  ;;  %v3694_v19 = vpop.f32.mrf.mxu1  ;;  %v3767_v1 = vpop.f32.mrf.mxu2 }
 0x3f5   : > { %v3695_v61 = vadd.f32 %v3694_v19, %v3638_v50  ;;  %v3768_v55 = vadd.f32 %v3767_v1, %v7636_v13 }
 0x3f7   : > { %v4181_v47 = vmax.f32 %v3695_v61, 0.0  ;;  %v3872_v16 = vpop.f32.mrf.mxu3 }
 0x3f8   : > { %v7084_v48 = vadd.f32 %v3872_v16, %v3768_v55 }
 0x3f9   : > { %v4245_v54 = vmul.f32 %v6883_v10, %v4181_v47 }
 0x3fb   : > { %v4291_v21 = vadd.f32 %v4290_v46, %v4245_v54  ;;  %v3645_v24 = vpop.f32.mrf.mxu0 }
 0x3fc   : > { %v3646_v42 = vadd.f32 %v3645_v24, %v7052_v29  ;;  %v3698_v44 = vpop.f32.mrf.mxu1  ;;  %v3775_v41 = vpop.f32.mrf.mxu2 }
 0x3fd   : > { %v3699_v62 = vadd.f32 %v3698_v44, %v3642_v8  ;;  %v3776_v7 = vadd.f32 %v3775_v41, %v7637_v14 }
 0x3ff   : > { %v4185_v59 = vmax.f32 %v3699_v62, 0.0  ;;  %v3876_v4 = vpop.f32.mrf.mxu3 }
 0x400   : > { %v7089_v15 = vadd.f32 %v3876_v4, %v3776_v7 }
 0x401   : > { %v4249_v13 = vmul.f32 %v6895_v37, %v4185_v59 }
 0x403   : > { %v4292_v5 = vadd.f32 %v4291_v21, %v4249_v13  ;;  %v3649_v11 = vpop.f32.mrf.mxu0 }
 0x404   : > { %v3650_v53 = vadd.f32 %v3649_v11, %v7059_v56  ;;  %v3702_v57 = vpop.f32.mrf.mxu1  ;;  %v3783_v58 = vpop.f32.mrf.mxu2 }
 0x405   : > { %v3703_v36 = vadd.f32 %v3702_v57, %v3646_v42  ;;  %v3784_v29 = vadd.f32 %v3783_v58, %v7638_v28 }
 0x407   : > { %v4189_v12 = vmax.f32 %v3703_v36, 0.0  ;;  %v3880_v45 = vpop.f32.mrf.mxu3 }
 0x408   : > { %v7094_v52 = vadd.f32 %v3880_v45, %v3784_v29 }
 0x409   : > { %v4253_v14 = vmul.f32 %v6907_v23, %v4189_v12 }
 0x40b   : > { %v4293_v51 = vadd.f32 %v4292_v5, %v4253_v14  ;;  %v3653_v9 = vpop.f32.mrf.mxu0 }
 0x40c   : > { %v3654_v26 = vadd.f32 %v3653_v9, %v7065_v2  ;;  %v3706_v22 = vpop.f32.mrf.mxu1  ;;  %v7098_v43 = vpop.f32.mrf.mxu2 }
 0x40d   : > { %v3707_v50 = vadd.f32 %v3706_v22, %v3650_v53 }
 0x40f   : > { %v4193_v56 = vmax.f32 %v3707_v50, 0.0  ;;  %v7100_v32 = vpop.f32.mrf.mxu3 }
 0x411   : > { %v4257_v18 = vmul.f32 %v6919_v0, %v4193_v56 }
 0x413   : > { %v4294_v28 = vadd.f32 %v4293_v51, %v4257_v18  ;;  %v3926_v30 = vpop.f32.mrf.mxu0 }
 0x414   : > { %v3710_v25 = vpop.f32.mrf.mxu1  ;;  %v7103_v38 = vpop.f32.mrf.mxu2  ;;  %v3927_v8 = vadd.f32 %v3926_v30, %v7069_v20 }
 0x415   : > { %v3711_v33 = vadd.f32 %v3710_v25, %v3654_v26 }
 0x417   : > { %v4197_v60 = vmax.f32 %v3711_v33, 0.0  ;;  %v7105_v46 = vpop.f32.mrf.mxu3 }
 0x419   : > { %v4261_v2 = vmul.f32 %v6933_v31, %v4197_v60 }
 0x41b   : > { %v7108_v49 = vadd.f32 %v4294_v28, %v4261_v2  ;;  %v3931_v19 = vpop.f32.mrf.mxu0 }
 0x41c   : > { %v3992_v1 = vpop.f32.mrf.mxu1  ;;  %v4079_v61 = vpop.f32.mrf.mxu2  ;;  %v3932_v54 = vadd.f32 %v3931_v19, %v7073_v63 }
 0x41d   : > { %v3993_v55 = vadd.f32 %v3992_v1, %v3927_v8 }
 0x41f   : > { %v4136_v47 = vpop.f32.mrf.mxu3  ;;  %v4080_v16 = vadd.f32 %v4079_v61, %v3993_v55 }
 0x421   : > { %v4137_v44 = vadd.f32 %v4136_v47, %v4080_v16 }
 0x423   : > { %v3936_v21 = vpop.f32.mrf.mxu0  ;;  %v4170_v59 = vmax.f32 %v4137_v44, 0.0 }
 0x424   : > { %v3998_v24 = vpop.f32.mrf.mxu1  ;;  %v4083_v42 = vpop.f32.mrf.mxu2  ;;  %v3937_v13 = vadd.f32 %v3936_v21, %v7079_v3 }
 0x425   : > { %v3999_v41 = vadd.f32 %v3998_v24, %v3932_v54  ;;  %v4234_v57 = vmul.f32 %v6840_v35, %v4170_v59  ;;  %v3792_v54 = vadd.f32 %v7098_v43, %v7639_v6 }
 0x427   : > { %v4084_v62 = vadd.f32 %v4083_v42, %v3999_v41  ;;  %v4140_v7 = vpop.f32.mrf.mxu3  ;;  %v3885_v41 = vadd.f32 %v7100_v32, %v3792_v54  ;;  %v4296_v32 = vrot.slane %v7108_v49, 4 }
 0x429   : > { %v4141_v4 = vadd.f32 %v4140_v7, %v4084_v62 }
 0x42b   : > { %v4174_v20 = vmax.f32 %v4141_v4, 0.0  ;;  %v3941_v5 = vpop.f32.mrf.mxu0 }
 0x42c   : > { %v4004_v11 = vpop.f32.mrf.mxu1  ;;  %v4087_v53 = vpop.f32.mrf.mxu2  ;;  %v3942_v14 = vadd.f32 %v3941_v5, %v7084_v48 }
 0x42d   : > { %v4238_v58 = vmul.f32 %v6844_v39, %v4174_v20  ;;  %v4005_v63 = vadd.f32 %v4004_v11, %v3937_v13  ;;  %v3800_v13 = vadd.f32 %v7103_v38, %v6788_v27  ;;  %v4297_v27 = vadd.f32 %v4296_v32, %v7108_v49 }
 0x42f   : > { %v4302_v36 = vadd.f32 %v4238_v58, %v4234_v57  ;;  %v4088_v29 = vadd.f32 %v4087_v53, %v4005_v63  ;;  %v4144_v12 = vpop.f32.mrf.mxu3  ;;  %v3889_v53 = vadd.f32 %v7105_v46, %v3800_v13 }
 0x431   : > { %v4145_v45 = vadd.f32 %v4144_v12, %v4088_v29 }
 0x433   : > { %v4178_v51 = vmax.f32 %v4145_v45, 0.0  ;;  %v3946_v9 = vpop.f32.mrf.mxu0 }
 0x434   : > { %v4010_v26 = vpop.f32.mrf.mxu1  ;;  %v4091_v22 = vpop.f32.mrf.mxu2  ;;  %v3947_v39 = vadd.f32 %v3946_v9, %v7089_v15 }
 0x435   : > { %v4242_v3 = vmul.f32 %v6869_v40, %v4178_v51  ;;  %v4011_v50 = vadd.f32 %v4010_v26, %v3942_v14  ;;  %v4298_v51 = vrot.slane %v4297_v27, 2 }
 0x437   : > { %v4303_v56 = vadd.f32 %v4302_v36, %v4242_v3  ;;  %v4092_v18 = vadd.f32 %v4091_v22, %v4011_v50  ;;  %v4148_v28 = vpop.f32.mrf.mxu3  ;;  %v4299_v22 = vadd.f32 %v4298_v51, %v4297_v27 }
 0x439   : > { %v4149_v35 = vadd.f32 %v4148_v28, %v4092_v18 }
 0x43b   : > { %v4182_v30 = vmax.f32 %v4149_v35, 0.0  ;;  %v3951_v25 = vpop.f32.mrf.mxu0 }
 0x43c   : > { %v4016_v33 = vpop.f32.mrf.mxu1  ;;  %v4095_v60 = vpop.f32.mrf.mxu2  ;;  %v3952_v40 = vadd.f32 %v3951_v25, %v7094_v52  ;;  %v4338_v25 = vlaneseq }
 0x43d   : > { %v4246_v2 = vmul.f32 %v6883_v10, %v4182_v30  ;;  %v4017_v48 = vadd.f32 %v4016_v33, %v3947_v39 }
 0x43e   : > { %vm4340_vm4 = vcmp.lt.s32.totalorder %v4338_v25, 512 }
 0x43f   : > { %v4304_v8 = vadd.f32 %v4303_v56, %v4246_v2  ;;  %v4096_v19 = vadd.f32 %v4095_v60, %v4017_v48  ;;  %v4152_v1 = vpop.f32.mrf.mxu3  ;;  %v4300_v56 = vrot.slane %v4299_v22, 1 }
 0x441   : > { %v4153_v61 = vadd.f32 %v4152_v1, %v4096_v19  ;;  %v4301_v35 = vadd.f32 %v4300_v56, %v4299_v22 }
 0x443   : > { %v4186_v55 = vmax.f32 %v4153_v61, 0.0  ;;  %v3956_v24 = vpop.f32.mrf.mxu0 }
 0x444   : > { %v4022_v47 = vpop.f32.mrf.mxu1  ;;  %v4099_v16 = vpop.f32.mrf.mxu2  ;;  %v3957_v7 = vadd.f32 %v3956_v24, %v3885_v41 }
 0x445   : > { %v4250_v15 = vmul.f32 %v6895_v37, %v4186_v55  ;;  %v4023_v21 = vadd.f32 %v4022_v47, %v3952_v40 }
 0x447   : > { %v4305_v42 = vadd.f32 %v4304_v8, %v4250_v15  ;;  %v4100_v44 = vadd.f32 %v4099_v16, %v4023_v21  ;;  %v4156_v10 = vpop.f32.mrf.mxu3 }
 0x449   : > { %v4157_v62 = vadd.f32 %v4156_v10, %v4100_v44 }
 0x44b   : > { %v4190_v59 = vmax.f32 %v4157_v62, 0.0  ;;  %v3961_v11 = vpop.f32.mrf.mxu0 }
 0x44c   : > { %v4028_v4 = vpop.f32.mrf.mxu1  ;;  %v4103_v52 = vpop.f32.mrf.mxu2  ;;  %v3962_v58 = vadd.f32 %v3961_v11, %v3889_v53 }
 0x44d   : > { %v4254_v20 = vmul.f32 %v6907_v23, %v4190_v59  ;;  %v4029_v6 = vadd.f32 %v4028_v4, %v3957_v7 }
 0x44f   : > { %v4306_v43 = vadd.f32 %v4305_v42, %v4254_v20  ;;  %v4104_v37 = vadd.f32 %v4103_v52, %v4029_v6  ;;  %v4160_v5 = vpop.f32.mrf.mxu3 }
 0x451   : > { %v4161_v57 = vadd.f32 %v4160_v5, %v4104_v37 }
 0x453   : > { %v4194_v29 = vmax.f32 %v4161_v57, 0.0 }
 0x454   : > { %v4034_v63 = vpop.f32.mrf.mxu1  ;;  %v4107_v36 = vpop.f32.mrf.mxu2 }
 0x455   : > { %v4035_v12 = vadd.f32 %v4034_v63, %v3962_v58  ;;  %v4258_v45 = vmul.f32 %v6919_v0, %v4194_v29  ;;  %v4322_v0 = vadd.f32 %v7017_v17, %v4301_v35 }
 0x457   : > { %v4108_v38 = vadd.f32 %v4107_v36, %v4035_v12  ;;  %v4164_v23 = vpop.f32.mrf.mxu3  ;;  %v4307_v46 = vadd.f32 %v4306_v43, %v4258_v45  ;;  %v4329_v33 = vrot.slane %v4322_v0, 6 }
 0x459   : > { %v4165_v14 = vadd.f32 %v4164_v23, %v4108_v38 }
 0x45b   : > { %v4198_v9 = vmax.f32 %v4165_v14, 0.0 }
 0x45d   : > { %v4262_v26 = vmul.f32 %v6933_v31, %v4198_v9 }
 0x45f   : > { %v4308_v3 = vadd.f32 %v4307_v46, %v4262_v26 }
 0x461   : > { %v4309_v50 = vrot.slane %v4308_v3, 4 }
 0x463   : > { %v4310_v18 = vadd.f32 %v4309_v50, %v4308_v3 }
 0x465   : > { %v4311_v28 = vrot.slane %v4310_v18, 2 }
 0x467   : > { %v4312_v49 = vadd.f32 %v4311_v28, %v4310_v18 }
 0x469   : > { %v4313_v39 = vrot.slane %v4312_v49, 1 }
 0x46b   : > { %v4314_v30 = vadd.f32 %v4313_v39, %v4312_v49 }
 0x46d   : > { %v4323_v31 = vadd.f32 %v7017_v17, %v4314_v30 }
 0x46f   : > { %v4330_v60 = vrot.slane %v4323_v31, 5 }
 0x471   : > { %v4334_v2 = vsel %vm4333_vm2, %v4329_v33, %v4330_v60 }
 0x472   : > { %v4336_v48 = vsel %vm4335_vm3, %v7027_v34, %v4334_v2 }
 0x473   : > { %4342 = vst.msk [vmem:[%s179_s11] sm:$0xf] %vm4340_vm4, %v4336_v48 }
 0x474   : > { %4583 = shalt.err (!%p4580_p8)
}
 0x475   : > { %4443 = dma.vmem_to_hbm [thread:$0]  (%p4691_p5), %s4357_s17, 64, %s4359_s19, %s4344_s20  }
 0x476 PF: > { %p4455_p9 = scmp.ge.s32.totalorder %s4622_s15, 2  ;;  %s4370_s4 = sand.u32 1, %s4610_s12  }
 0x477   : > { %s4371_s5 = scalar_lea.sflag [#allocation4], %s4370_s4 }
 0x478   : > { %p4450_p10 = pnand %p4455_p9, %p4695_p6 }
 0x47a   : > { %p4451_p11 = pneg %p4450_p10 }
 0x47c   : > { %4605 = dma.done.wait (%p4451_p11), %s4371_s5, 64  }
 0x47d   : > { %4607 = vsyncadd (%p4451_p11), %s4371_s5, 4294967232  ;;  %p14_p12 = scmp.ge.s32.totalorder %s4678_s18, 4   ;;  %s7649_s12 = smov %s4614_s13 }
 0x47e   : > { %s7650_s13 = smov %s4618_s14  ;;  %s7651_s14 = smov %s4689_s21 }
 0x47f   : > { %s7652_s15 = smov %s4678_s18  ;;  %16 = sbr.rel (!%p14_p12) target bundleno = 4 (0x4), region = 73 }
 0x484   :  { %4377 = vsyncpa [#allocation3], 1 }
 0x485   :  { %4379 = vsyncpa [#allocation3 + $0x1], 1 }
 0x486   :  { %4380 = vsyncpa [#allocation4], 1 }
 0x487   :  { %4382 = vsyncpa [#allocation4 + $0x1], 1 }

</bundles_post_ra>
